<compile_context>
chip_gen: v7x
topology: tpu7x:2x2x1
jax: 0.10.0
libtpu: 0.0.40
codegen_flags: <defaults>
</compile_context>

<pallas_src>
import functools

import jax
import jax.numpy as jnp
from jax.experimental import pallas as pl
from jax.experimental.pallas import tpu as pltpu

EPS = 1e-5        # nn.BatchNorm2d default eps
LANE = 128        # TPU lane width


def _device_kind():
    try:
        return jax.devices()[0].device_kind.lower()
    except Exception:
        return ""


def _vmem_limit_bytes():
    kind = _device_kind()
    if "v5" in kind or "v6" in kind:
        return 64 * 1024 * 1024    # 128 MiB physical -> plenty of headroom
    return 44 * 1024 * 1024        # v7x has only 64 MiB physical; stay safe


def _pick_tco(cout_pad):
    kind = _device_kind()
    narrow_mxu = any(s in kind for s in ("v2", "v3", "v4", "v5"))
    if (not narrow_mxu) and cout_pad % 256 == 0:
        return 256                 # fill the 256-wide MXU on v6e / v7x
    return 128


def _pick_row_tile(oh, ow, target_rows=1024, max_rows=2048):
    """Pick TH | OH.  Prefer TH*OW % 128 == 0 (lane-dense channel-major
    stores) close to target_rows; fall back to TH = OH (single H tile)."""
    best = None
    for th in range(1, oh + 1):
        if oh % th:
            continue
        rows = th * ow
        if rows > max_rows or rows % 128:
            continue
        if best is None or abs(rows - target_rows) < abs(best * ow - target_rows):
            best = th
    if best is not None:
        return best
    # TODO(synk): halo-tiled H blocking (manual DMA) for very large feature
    # maps where no 128-aligned row tile exists, to bound VMEM on v7x.
    return oh


@functools.partial(jax.jit, static_argnames=("padding", "compute_dtype"))
def basic_conv2d(x_nchw, w_oihw, gamma, beta, *, padding=1,
                 compute_dtype=jnp.bfloat16):
    """BasicConv2d forward: Conv2d(bias=False, stride=1) + BN(train) + ReLU."""
    # TODO(synk): stride != 1 / dilation / groups are not supported here.
    N, Cin, H, W = x_nchw.shape
    Cout, _, KH, KW = w_oihw.shape
    Hp, Wp = H + 2 * padding, W + 2 * padding
    OH, OW = Hp - KH + 1, Wp - KW + 1
    K = KH * KW * Cin
    rows = N * OH * OW
    rows_per_sample = OH * OW

    vmem_limit = _vmem_limit_bytes()
    cpad = (-Cout) % LANE
    Cout_pad = Cout + cpad
    TCO = _pick_tco(Cout_pad)
    n_co = Cout_pad // TCO
    TH = _pick_row_tile(OH, OW)
    n_h = OH // TH
    THK = TH + KH - 1              # input rows per tile (halo)
    TROWS = TH * OW                # output rows per tile

    dsize = jnp.dtype(compute_dtype).itemsize
    out_dtype = x_nchw.dtype
    out_dsize = jnp.dtype(out_dtype).itemsize

    per_tap = Cin >= 128           # deep channels: KH*KW accumulating dots
    w_bytes = K * Cout_pad * dsize
    weights_resident = (2 * w_bytes) <= (vmem_limit // 3)

    # ---- layout prep (one fused XLA copy each) -----------------------------
    x_pad = jnp.pad(
        jnp.transpose(x_nchw, (0, 2, 3, 1)).astype(compute_dtype),
        ((0, 0), (padding, padding), (padding, padding), (0, 0)))
    # TODO(synk): lane-align small Cin (pad Cin / pack W*Cin onto lanes) so the
    # im2col window slices become aligned moves instead of masked repacks.
    w2d = jnp.pad(
        jnp.transpose(w_oihw, (2, 3, 1, 0)).astype(compute_dtype).reshape(K, Cout),
        ((0, 0), (0, cpad)))                               # (K, Cout_pad)
    w3d = w2d.reshape(K, n_co, TCO).transpose(1, 0, 2)      # (n_co, K, TCO)

    # ------------- pass 1: conv + per-(sample, Cout-block) Welford stats ----
    def conv_stats_kernel(x_ref, w_ref, y_ref, st_ref):
        # x_ref:  (1, Hp, Wp, Cin)     one padded sample (resident across co,h)
        # w_ref:  (n_co, K, TCO) resident  OR  (1, K, TCO) per-co-block
        # y_ref:  (1, TCO, TROWS)      conv tile, channel-major, compute_dtype
        # st_ref: (1, 2, TCO)          running [mean, M2] (resident across h)
        co = pl.program_id(1)
        h = pl.program_id(2)
        h0 = pl.multiple_of(h * TH, TH)
        xs = x_ref[0, pl.ds(h0, THK), :, :]                 # (THK, Wp, Cin)
        wslab = w_ref[co if weights_resident else 0]        # (K, TCO)

        if per_tap:
            acc = jnp.zeros((TROWS, TCO), jnp.float32)
            for dh in range(KH):
                for dw in range(KW):
                    win = xs[dh:dh + TH, dw:dw + OW, :].reshape(TROWS, Cin)
                    tap = (dh * KW + dw) * Cin
                    acc = acc + jnp.dot(win, wslab[tap:tap + Cin, :],
                                        preferred_element_type=jnp.float32)
        else:
            cols = []
            for dh in range(KH):
                for dw in range(KW):
                    cols.append(xs[dh:dh + TH, dw:dw + OW, :].reshape(TROWS, Cin))
            patches = jnp.concatenate(cols, axis=-1)        # (TROWS, K)
            acc = jnp.dot(patches, wslab,
                          preferred_element_type=jnp.float32)  # (TROWS, TCO)

        # channel-major store -> no XLA transpose after pass 2
        y_ref[...] = jnp.transpose(acc).astype(y_ref.dtype).reshape(1, TCO, TROWS)

        # Welford / Chan combination across H tiles (robust BN variance)
        m_t = jnp.sum(acc, axis=0, keepdims=True) * (1.0 / TROWS)   # (1, TCO)
        d_t = acc - m_t
        m2_t = jnp.sum(d_t * d_t, axis=0, keepdims=True)            # (1, TCO)

        @pl.when(h == 0)
        def _init():
            st_ref[...] = jnp.zeros_like(st_ref)

        prev = st_ref[...]                                  # (1, 2, TCO)
        m_a, m2_a = prev[:, 0, :], prev[:, 1, :]
        c_a = (h * TROWS).astype(jnp.float32)
        c_n = c_a + TROWS
        delta = m_t - m_a
        m_new = m_a + delta * (TROWS / c_n)
        m2_new = m2_a + m2_t + delta * delta * (c_a * TROWS / c_n)
        st_ref[...] = jnp.concatenate([m_new, m2_new], axis=0)[None]

    if weights_resident:
        w_spec = pl.BlockSpec((n_co, K, TCO), lambda n, co, h: (0, 0, 0))
        w_fetch_bytes = w_bytes
    else:
        w_spec = pl.BlockSpec((1, K, TCO), lambda n, co, h: (co, 0, 0))
        w_fetch_bytes = N * n_co * K * TCO * dsize

    conv_out, stats = pl.pallas_call(
        conv_stats_kernel,
        out_shape=(
            jax.ShapeDtypeStruct((N, Cout_pad, OH * OW), compute_dtype),
            jax.ShapeDtypeStruct((N, 2, Cout_pad), jnp.float32),
        ),
        grid=(N, n_co, n_h),
        in_specs=[
            pl.BlockSpec((1, Hp, Wp, Cin), lambda n, co, h: (n, 0, 0, 0)),
            w_spec,
        ],
        out_specs=(
            pl.BlockSpec((1, TCO, TROWS), lambda n, co, h: (n, co, h)),
            pl.BlockSpec((1, 2, TCO), lambda n, co, h: (n, 0, co)),
        ),
        compiler_params=pltpu.CompilerParams(
            dimension_semantics=("parallel", "parallel", "arbitrary"),
            vmem_limit_bytes=vmem_limit),
        cost_estimate=pl.CostEstimate(
            flops=2 * rows * K * Cout_pad,
            transcendentals=0,
            bytes_accessed=(N * Hp * Wp * Cin * dsize + w_fetch_bytes
                            + rows * Cout_pad * dsize + N * 2 * Cout_pad * 4)),
    )(x_pad, w3d)

    # ---- global BatchNorm2d (training) statistics: tiny per-channel math ---
    means = stats[:, 0, :]                                  # (N, Cout_pad)
    m2s = stats[:, 1, :]
    grand_mean = jnp.mean(means, axis=0)
    total_m2 = jnp.sum(m2s, axis=0) + rows_per_sample * jnp.sum(
        (means - grand_mean) ** 2, axis=0)
    var = jnp.maximum(total_m2 / rows, 0.0)                 # biased variance
    inv_std = jax.lax.rsqrt(var + EPS)
    gamma_p = jnp.pad(gamma.astype(jnp.float32), (0, cpad))
    beta_p = jnp.pad(beta.astype(jnp.float32), (0, cpad))
    scale = (gamma_p * inv_std).reshape(1, Cout_pad, 1)
    shift = (beta_p - grand_mean * gamma_p * inv_std).reshape(1, Cout_pad, 1)

    # ------------- pass 2: fused affine BN + ReLU (streaming elementwise) ---
    def bn_relu_kernel(y_ref, sc_ref, sh_ref, o_ref):
        y = y_ref[...].astype(jnp.float32)                  # (1, TCO, TROWS)
        o_ref[...] = jnp.maximum(y * sc_ref[...] + sh_ref[...],
                                 0.0).astype(o_ref.dtype)

    alias = {0: 0} if jnp.dtype(compute_dtype) == jnp.dtype(out_dtype) else {}
    y_bn = pl.pallas_call(
        bn_relu_kernel,
        out_shape=jax.ShapeDtypeStruct((N, Cout_pad, OH * OW), out_dtype),
        grid=(N, n_co, n_h),
        in_specs=[
            pl.BlockSpec((1, TCO, TROWS), lambda n, co, h: (n, co, h)),
            pl.BlockSpec((1, TCO, 1), lambda n, co, h: (0, co, 0)),
            pl.BlockSpec((1, TCO, 1), lambda n, co, h: (0, co, 0)),
        ],
        out_specs=pl.BlockSpec((1, TCO, TROWS), lambda n, co, h: (n, co, h)),
        compiler_params=pltpu.CompilerParams(
            dimension_semantics=("parallel", "parallel", "parallel"),
            vmem_limit_bytes=vmem_limit),
        input_output_aliases=alias,
        cost_estimate=pl.CostEstimate(
            flops=3 * rows * Cout_pad, transcendentals=0,
            bytes_accessed=rows * Cout_pad * (dsize + out_dsize)
                           + 2 * Cout_pad * 4),
    )(conv_out, scale, shift)

    # already NCHW-ordered; just drop padded channels
    y = y_bn.reshape(N, Cout_pad, OH, OW)
    if cpad:
        y = y[:, :Cout]
    return y


def _reference(x_nchw, w_oihw, gamma, beta, *, padding=1):
    """Pure-JAX reference of Conv2d(bias=False)+BatchNorm2d(train)+ReLU."""
    y = jax.lax.conv_general_dilated(
        x_nchw, w_oihw, window_strides=(1, 1),
        padding=((padding, padding), (padding, padding)),
        dimension_numbers=('NCHW', 'OIHW', 'NCHW'),
        precision=jax.lax.Precision.HIGHEST)
    mean = jnp.mean(y, axis=(0, 2, 3), keepdims=True)
    var = jnp.mean((y - mean) ** 2, axis=(0, 2, 3), keepdims=True)
    yn = (y - mean) * jax.lax.rsqrt(var + EPS)
    yn = yn * gamma.reshape(1, -1, 1, 1) + beta.reshape(1, -1, 1, 1)
    return jnp.maximum(yn, 0.0)


if __name__ == "__main__":
    root = jax.random.PRNGKey(0)

    def make_inputs(k, n, cin, h, w, cout, kh, kw):
        kx, kw_, kg, kb = jax.random.split(k, 4)
        x = jax.random.normal(kx, (n, cin, h, w), dtype=jnp.float32)
        wt = 0.1 * jax.random.normal(kw_, (cout, cin, kh, kw), dtype=jnp.float32)
        g = 1.0 + 0.1 * jax.random.normal(kg, (cout,), dtype=jnp.float32)
        b = 0.1 * jax.random.normal(kb, (cout,), dtype=jnp.float32)
        return x, wt, g, b

    # case 1: BasicConv2d(4, 8, kernel_size=3, padding=1) -- im2col path
    x, w, g, b = make_inputs(jax.random.fold_in(root, 0), 2, 4, 16, 16, 8, 3, 3)
    y_ref = jax.block_until_ready(_reference(x, w, g, b, padding=1))
    y32 = jax.block_until_ready(
        basic_conv2d(x, w, g, b, padding=1, compute_dtype=jnp.float32))
    assert y32.shape == y_ref.shape, y32.shape
    assert jnp.allclose(y32, y_ref, atol=1e-3, rtol=1e-3), \
        float(jnp.max(jnp.abs(y32 - y_ref)))
    ybf = jax.block_until_ready(basic_conv2d(x, w, g, b, padding=1))
    assert ybf.shape == y_ref.shape, ybf.shape
    assert jnp.allclose(ybf, y_ref, atol=5e-2, rtol=5e-2), \
        float(jnp.max(jnp.abs(ybf - y_ref)))

    # case 2: deep-Cin layer -> per-tap accumulating-dot path
    x, w, g, b = make_inputs(jax.random.fold_in(root, 1), 1, 128, 8, 8, 16, 3, 3)
    y_ref = jax.block_until_ready(_reference(x, w, g, b, padding=1))
    y32 = jax.block_until_ready(
        basic_conv2d(x, w, g, b, padding=1, compute_dtype=jnp.float32))
    assert jnp.allclose(y32, y_ref, atol=2e-3, rtol=2e-3), \
        float(jnp.max(jnp.abs(y32 - y_ref)))

    # case 3: multiple H tiles (n_h > 1) -> exercises cross-tile Welford stats
    x, w, g, b = make_inputs(jax.random.fold_in(root, 2), 1, 4, 64, 64, 8, 3, 3)
    y_ref = jax.block_until_ready(_reference(x, w, g, b, padding=1))
    y32 = jax.block_until_ready(
        basic_conv2d(x, w, g, b, padding=1, compute_dtype=jnp.float32))
    assert jnp.allclose(y32, y_ref, atol=2e-3, rtol=2e-3), \
        float(jnp.max(jnp.abs(y32 - y_ref)))

    print("KERNEL_OK")
</pallas_src>

<mosaic_0001>
module attributes {stable_mosaic.version = 11 : i64} {
  func.func @bn_relu_kernel(%arg0: i32, %arg1: i32, %arg2: i32, %arg3: memref<1x128x256xf32, #tpu.memory_space<vmem>>, %arg4: memref<1x128x1xf32, #tpu.memory_space<vmem>>, %arg5: memref<1x128x1xf32, #tpu.memory_space<vmem>>, %arg6: memref<1x128x256xf32, #tpu.memory_space<vmem>>) attributes {dimension_semantics = [#tpu.dimension_semantics<parallel>, #tpu.dimension_semantics<parallel>, #tpu.dimension_semantics<parallel>], iteration_bounds = array<i64: 2, 1, 1>, scalar_prefetch = 0 : i64, scratch_operands = 0 : i64, tpu.core_type = #tpu.core_type<tc>, window_params = [{transform_indices = @transform_0, window_bounds = array<i64: 1, 128, 256>}, {transform_indices = @transform_1, window_bounds = array<i64: 1, 128, 1>}, {transform_indices = @transform_2, window_bounds = array<i64: 1, 128, 1>}, {transform_indices = @transform_3, window_bounds = array<i64: 1, 128, 256>}]} {
    %c0 = arith.constant 0 : index
    %c0_0 = arith.constant 0 : index
    %c0_1 = arith.constant 0 : index
    %0 = vector.load %arg3[%c0, %c0_0, %c0_1] : memref<1x128x256xf32, #tpu.memory_space<vmem>>, vector<1x128x256xf32>
    %c0_2 = arith.constant 0 : index
    %c0_3 = arith.constant 0 : index
    %c0_4 = arith.constant 0 : index
    %1 = vector.load %arg4[%c0_2, %c0_3, %c0_4] : memref<1x128x1xf32, #tpu.memory_space<vmem>>, vector<1x128x1xf32>
    %2 = vector.broadcast %1 : vector<1x128x1xf32> to vector<1x128x256xf32>
    %3 = arith.mulf %0, %2 : vector<1x128x256xf32>
    %c0_5 = arith.constant 0 : index
    %c0_6 = arith.constant 0 : index
    %c0_7 = arith.constant 0 : index
    %4 = vector.load %arg5[%c0_5, %c0_6, %c0_7] : memref<1x128x1xf32, #tpu.memory_space<vmem>>, vector<1x128x1xf32>
    %5 = vector.broadcast %4 : vector<1x128x1xf32> to vector<1x128x256xf32>
    %6 = arith.addf %3, %5 : vector<1x128x256xf32>
    %cst = arith.constant 0.000000e+00 : f32
    %7 = vector.broadcast %cst : f32 to vector<1x128x256xf32>
    %8 = arith.maximumf %6, %7 : vector<1x128x256xf32>
    %c0_8 = arith.constant 0 : index
    %c0_9 = arith.constant 0 : index
    %c0_10 = arith.constant 0 : index
    %9 = vector.load %arg6[%c0_8, %c0_9, %c0_10] : memref<1x128x256xf32, #tpu.memory_space<vmem>>, vector<1x128x256xf32>
    tpu.vector_store %arg6[%c0_8, %c0_9, %c0_10], %8 {strides = array<i32>} : memref<1x128x256xf32, #tpu.memory_space<vmem>>, vector<1x128x256xf32>,
    return
  }
  func.func @transform_0(%arg0: i32, %arg1: i32, %arg2: i32) -> (i32, i32, i32) {
    %c0_i32 = arith.constant 0 : i32
    return %arg0, %arg1, %arg2 : i32, i32, i32
  }
  func.func @transform_1(%arg0: i32, %arg1: i32, %arg2: i32) -> (i32, i32, i32) {
    %c0_i32 = arith.constant 0 : i32
    %c0_i32_0 = arith.constant 0 : i32
    %c0_i32_1 = arith.constant 0 : i32
    return %c0_i32, %arg1, %c0_i32_0 : i32, i32, i32
  }
  func.func @transform_2(%arg0: i32, %arg1: i32, %arg2: i32) -> (i32, i32, i32) {
    %c0_i32 = arith.constant 0 : i32
    %c0_i32_0 = arith.constant 0 : i32
    %c0_i32_1 = arith.constant 0 : i32
    return %c0_i32, %arg1, %c0_i32_0 : i32, i32, i32
  }
  func.func @transform_3(%arg0: i32, %arg1: i32, %arg2: i32) -> (i32, i32, i32) {
    %c0_i32 = arith.constant 0 : i32
    return %arg0, %arg1, %arg2 : i32, i32, i32
  }
}

module attributes {stable_mosaic.version = 11 : i64} {
  func.func @conv_stats_kernel(%arg0: i32, %arg1: i32, %arg2: i32, %arg3: memref<1x18x18x4xf32, #tpu.memory_space<vmem>>, %arg4: memref<1x36x128xf32, #tpu.memory_space<vmem>>, %arg5: memref<1x128x256xf32, #tpu.memory_space<vmem>>, %arg6: memref<1x2x128xf32, #tpu.memory_space<vmem>>) attributes {dimension_semantics = [#tpu.dimension_semantics<parallel>, #tpu.dimension_semantics<parallel>, #tpu.dimension_semantics<arbitrary>], iteration_bounds = array<i64: 2, 1, 1>, scalar_prefetch = 0 : i64, scratch_operands = 0 : i64, tpu.core_type = #tpu.core_type<tc>, window_params = [{transform_indices = @transform_0, window_bounds = array<i64: 1, 18, 18, 4>}, {pipeline_mode = #tpu.pipeline_mode<synchronous>, transform_indices = @transform_1, window_bounds = array<i64: 1, 36, 128>}, {transform_indices = @transform_2, window_bounds = array<i64: 1, 128, 256>}, {transform_indices = @transform_3, window_bounds = array<i64: 1, 2, 128>}]} {
    %c16_i32 = arith.constant 16 : i32
    %0 = arith.muli %arg2, %c16_i32 : i32
    %1 = tpu.assume_multiple %0, 16 : i32
    %c0 = arith.constant 0 : index
    %2 = arith.index_cast %1 : i32 to index
    %c0_0 = arith.constant 0 : index
    %c0_1 = arith.constant 0 : index
    %3 = vector.load %arg3[%c0, %2, %c0_0, %c0_1] : memref<1x18x18x4xf32, #tpu.memory_space<vmem>>, vector<1x18x18x4xf32>
    %4 = vector.shape_cast %3 : vector<1x18x18x4xf32> to vector<18x18x4xf32>
    %5 = arith.index_cast %arg1 : i32 to index
    %c0_2 = arith.constant 0 : index
    %c0_3 = arith.constant 0 : index
    %6 = vector.load %arg4[%5, %c0_2, %c0_3] : memref<1x36x128xf32, #tpu.memory_space<vmem>>, vector<1x36x128xf32>
    %7 = vector.shape_cast %6 : vector<1x36x128xf32> to vector<36x128xf32>
    %8 = vector.extract_strided_slice %4 {offsets = [0, 0, 0], sizes = [16, 16, 4], strides = [1, 1, 1]} : vector<18x18x4xf32> to vector<16x16x4xf32>
    %9 = vector.shape_cast %8 : vector<16x16x4xf32> to vector<256x4xf32>
    %10 = vector.extract_strided_slice %4 {offsets = [0, 1, 0], sizes = [16, 16, 4], strides = [1, 1, 1]} : vector<18x18x4xf32> to vector<16x16x4xf32>
    %11 = vector.shape_cast %10 : vector<16x16x4xf32> to vector<256x4xf32>
    %12 = vector.extract_strided_slice %4 {offsets = [0, 2, 0], sizes = [16, 16, 4], strides = [1, 1, 1]} : vector<18x18x4xf32> to vector<16x16x4xf32>
    %13 = vector.shape_cast %12 : vector<16x16x4xf32> to vector<256x4xf32>
    %14 = vector.extract_strided_slice %4 {offsets = [1, 0, 0], sizes = [16, 16, 4], strides = [1, 1, 1]} : vector<18x18x4xf32> to vector<16x16x4xf32>
    %15 = vector.shape_cast %14 : vector<16x16x4xf32> to vector<256x4xf32>
    %16 = vector.extract_strided_slice %4 {offsets = [1, 1, 0], sizes = [16, 16, 4], strides = [1, 1, 1]} : vector<18x18x4xf32> to vector<16x16x4xf32>
    %17 = vector.shape_cast %16 : vector<16x16x4xf32> to vector<256x4xf32>
    %18 = vector.extract_strided_slice %4 {offsets = [1, 2, 0], sizes = [16, 16, 4], strides = [1, 1, 1]} : vector<18x18x4xf32> to vector<16x16x4xf32>
    %19 = vector.shape_cast %18 : vector<16x16x4xf32> to vector<256x4xf32>
    %20 = vector.extract_strided_slice %4 {offsets = [2, 0, 0], sizes = [16, 16, 4], strides = [1, 1, 1]} : vector<18x18x4xf32> to vector<16x16x4xf32>
    %21 = vector.shape_cast %20 : vector<16x16x4xf32> to vector<256x4xf32>
    %22 = vector.extract_strided_slice %4 {offsets = [2, 1, 0], sizes = [16, 16, 4], strides = [1, 1, 1]} : vector<18x18x4xf32> to vector<16x16x4xf32>
    %23 = vector.shape_cast %22 : vector<16x16x4xf32> to vector<256x4xf32>
    %24 = vector.extract_strided_slice %4 {offsets = [2, 2, 0], sizes = [16, 16, 4], strides = [1, 1, 1]} : vector<18x18x4xf32> to vector<16x16x4xf32>
    %25 = vector.shape_cast %24 : vector<16x16x4xf32> to vector<256x4xf32>
    %26 = tpu.concatenate %9, %11, %13, %15, %17, %19, %21, %23, %25 in 1 : vector<256x4xf32>, vector<256x4xf32>, vector<256x4xf32>, vector<256x4xf32>, vector<256x4xf32>, vector<256x4xf32>, vector<256x4xf32>, vector<256x4xf32>, vector<256x4xf32> -> vector<256x36xf32>
    %cst = arith.constant dense<0.000000e+00> : vector<256x128xf32>
    %27 = tpu.matmul %26, %7, %cst {dimension_numbers = #tpu.dot_dimension_numbers<[1], [0], [0], [1], [0, 0, 1, 1], [], []>} : vector<256x36xf32>, vector<36x128xf32>, vector<256x128xf32> -> vector<256x128xf32>
    %28 = tpu.transpose %27, [1, 0] : vector<256x128xf32> -> vector<128x256xf32>
    %29 = vector.shape_cast %28 : vector<128x256xf32> to vector<1x128x256xf32>
    %c0_4 = arith.constant 0 : index
    %c0_5 = arith.constant 0 : index
    %c0_6 = arith.constant 0 : index
    %30 = vector.load %arg5[%c0_4, %c0_5, %c0_6] : memref<1x128x256xf32, #tpu.memory_space<vmem>>, vector<1x128x256xf32>
    tpu.vector_store %arg5[%c0_4, %c0_5, %c0_6], %29 {strides = array<i32>} : memref<1x128x256xf32, #tpu.memory_space<vmem>>, vector<1x128x256xf32>,
    %cst_7 = arith.constant dense<0.000000e+00> : vector<128xf32>
    %31 = vector.multi_reduction <add>, %27, %cst_7 [0] : vector<256x128xf32> to vector<128xf32>
    %32 = vector.shape_cast %31 : vector<128xf32> to vector<1x128xf32>
    %cst_8 = arith.constant 3.906250e-03 : f32
    %33 = vector.broadcast %cst_8 : f32 to vector<1x128xf32>
    %34 = arith.mulf %32, %33 : vector<1x128xf32>
    %35 = vector.broadcast %34 : vector<1x128xf32> to vector<256x128xf32>
    %36 = arith.subf %27, %35 : vector<256x128xf32>
    %37 = arith.mulf %36, %36 : vector<256x128xf32>
    %cst_9 = arith.constant dense<0.000000e+00> : vector<128xf32>
    %38 = vector.multi_reduction <add>, %37, %cst_9 [0] : vector<256x128xf32> to vector<128xf32>
    %39 = vector.shape_cast %38 : vector<128xf32> to vector<1x128xf32>
    %c0_i32 = arith.constant 0 : i32
    %40 = arith.cmpi eq, %arg2, %c0_i32 : i32
    %41 = arith.extui %40 : i1 to i32
    %c0_i32_10 = arith.constant 0 : i32
    %42 = arith.cmpi ne, %41, %c0_i32_10 : i32
    scf.if %42 {
      %cst_20 = arith.constant 0.000000e+00 : f32
      %66 = vector.broadcast %cst_20 : f32 to vector<1x2x128xf32>
      %c0_21 = arith.constant 0 : index
      %c0_22 = arith.constant 0 : index
      %c0_23 = arith.constant 0 : index
      %67 = vector.load %arg6[%c0_21, %c0_22, %c0_23] : memref<1x2x128xf32, #tpu.memory_space<vmem>>, vector<1x2x128xf32>
      tpu.vector_store %arg6[%c0_21, %c0_22, %c0_23], %66 {strides = array<i32>} : memref<1x2x128xf32, #tpu.memory_space<vmem>>, vector<1x2x128xf32>,
    } else {
    }
    %c0_11 = arith.constant 0 : index
    %c0_12 = arith.constant 0 : index
    %c0_13 = arith.constant 0 : index
    %43 = vector.load %arg6[%c0_11, %c0_12, %c0_13] : memref<1x2x128xf32, #tpu.memory_space<vmem>>, vector<1x2x128xf32>
    %44 = vector.extract_strided_slice %43 {offsets = [0, 0, 0], sizes = [1, 1, 128], strides = [1, 1, 1]} : vector<1x2x128xf32> to vector<1x1x128xf32>
    %45 = vector.shape_cast %44 : vector<1x1x128xf32> to vector<1x128xf32>
    %46 = vector.extract_strided_slice %43 {offsets = [0, 1, 0], sizes = [1, 1, 128], strides = [1, 1, 1]} : vector<1x2x128xf32> to vector<1x1x128xf32>
    %47 = vector.shape_cast %46 : vector<1x1x128xf32> to vector<1x128xf32>
    %c256_i32 = arith.constant 256 : i32
    %48 = arith.muli %arg2, %c256_i32 : i32
    %49 = arith.sitofp %48 : i32 to f32
    %cst_14 = arith.constant 2.560000e+02 : f32
    %50 = arith.addf %49, %cst_14 : f32
    %51 = arith.subf %34, %45 : vector<1x128xf32>
    %cst_15 = arith.constant 2.560000e+02 : f32
    %52 = arith.divf %cst_15, %50 : f32
    %53 = vector.broadcast %52 : f32 to vector<1x128xf32>
    %54 = arith.mulf %51, %53 : vector<1x128xf32>
    %55 = arith.addf %45, %54 : vector<1x128xf32>
    %56 = arith.addf %47, %39 : vector<1x128xf32>
    %57 = arith.mulf %51, %51 : vector<1x128xf32>
    %cst_16 = arith.constant 2.560000e+02 : f32
    %58 = arith.mulf %49, %cst_16 : f32
    %59 = arith.divf %58, %50 : f32
    %60 = vector.broadcast %59 : f32 to vector<1x128xf32>
    %61 = arith.mulf %57, %60 : vector<1x128xf32>
    %62 = arith.addf %56, %61 : vector<1x128xf32>
    %63 = tpu.concatenate %55, %62 in 0 : vector<1x128xf32>, vector<1x128xf32> -> vector<2x128xf32>
    %64 = vector.shape_cast %63 : vector<2x128xf32> to vector<1x2x128xf32>
    %c0_17 = arith.constant 0 : index
    %c0_18 = arith.constant 0 : index
    %c0_19 = arith.constant 0 : index
    %65 = vector.load %arg6[%c0_17, %c0_18, %c0_19] : memref<1x2x128xf32, #tpu.memory_space<vmem>>, vector<1x2x128xf32>
    tpu.vector_store %arg6[%c0_17, %c0_18, %c0_19], %64 {strides = array<i32>} : memref<1x2x128xf32, #tpu.memory_space<vmem>>, vector<1x2x128xf32>,
    return
  }
  func.func @transform_0(%arg0: i32, %arg1: i32, %arg2: i32) -> (i32, i32, i32, i32) {
    %c0_i32 = arith.constant 0 : i32
    %c0_i32_0 = arith.constant 0 : i32
    %c0_i32_1 = arith.constant 0 : i32
    %c0_i32_2 = arith.constant 0 : i32
    return %arg0, %c0_i32, %c0_i32_0, %c0_i32_1 : i32, i32, i32, i32
  }
  func.func @transform_1(%arg0: i32, %arg1: i32, %arg2: i32) -> (i32, i32, i32) {
    %c0_i32 = arith.constant 0 : i32
    %c0_i32_0 = arith.constant 0 : i32
    %c0_i32_1 = arith.constant 0 : i32
    %c0_i32_2 = arith.constant 0 : i32
    return %c0_i32, %c0_i32_0, %c0_i32_1 : i32, i32, i32
  }
  func.func @transform_2(%arg0: i32, %arg1: i32, %arg2: i32) -> (i32, i32, i32) {
    %c0_i32 = arith.constant 0 : i32
    return %arg0, %arg1, %arg2 : i32, i32, i32
  }
  func.func @transform_3(%arg0: i32, %arg1: i32, %arg2: i32) -> (i32, i32, i32) {
    %c0_i32 = arith.constant 0 : i32
    %c0_i32_0 = arith.constant 0 : i32
    return %arg0, %c0_i32, %arg1 : i32, i32, i32
  }
}

</mosaic_0001>

<bundles_post_ra>
// kernel: basic_conv2d.3
= control target key start
LH: loop header
LB: loop body
LE: loop exit
PB: predicated region body
PF: predicated region fallthrough
CT: control target
= control target key end

     0   :  { %s877_s12 = smov 0   ;;  %s879_s13 = smov 0   ;;  %s1181_s0 = inlined_call_operand.vmem [shape: f32[2,128,256], index: 0, kind: input, shape index: {}, may-alias: {0,3}]   ;;  %s1182_s1 = inlined_call_operand.vmem [shape: f32[1,128,1], index: 1, kind: input, shape index: {}]   ;;  %s1183_s2 = inlined_call_operand.vmem [shape: f32[1,128,1], index: 2, kind: input, shape index: {}]   ;;  %s1184_s3 = inlined_call_operand.vmem [shape: f32[2,128,256], index: 3, kind: output, shape index: {}, may-alias: {0,3}]  }
   0x1   :  { %s881_s14 = smov 0  }
   0x2 LB: > { %s32_s15 = sadd.s32 1, %s850_s13  ;;  %p796_p0 = scmp.ge.s32.totalorder %s854_s14, 1  ;;  %s854_s14 = sphi %s881_s14, %s13_s14   ;;  %s850_s13 = sphi %s879_s13, %s1186_s13   ;;  %s846_s12 = sphi %s877_s12, %s1185_s12  }
   0x3   : > { %p34_p1 = scmp.ge.s32.totalorder %s32_s15, 2  ;;  %p197_p2 = scmp.lt.s32.totalorder %s854_s14, 3 }
   0x5   : > { %s1188_s15 = smov (%p34_p1, %s32_s15), 0  ;;  %p198_p3 = pnand %p796_p0, %p197_p2 }
   0x6   : > { %v327_v0 = vld [vmem:[%s1182_s1 + $0x10] sm:$0xff] (!%p198_p3)  ;;  %v325_v1 = vld [vmem:[%s1182_s1] sm:$0xff] (!%p198_p3)  ;;  %v856_v2 = vmov (!%p198_p3), 0   ;;  %v328_v3 = vld [vmem:[%s1182_s1 + $0x18] sm:$0xff] (!%p198_p3)  ;;  %p251_p4 = scmp.lt.s32.totalorder (!%p198_p3), %s846_s12, 1 }
   0x7   : > { %201 = sbr.rel (%p198_p3) target bundleno = 202 (0xca), region = 32  ;;  %831 = vset.pattern.permute.xlu1 (!%p198_p3), %v856_v2  ;;  %830 = vset.pattern.permute.xlu0 (!%p198_p3), %v856_v2  ;;  %v326_v4 = vld [vmem:[%s1182_s1 + $0x8] sm:$0xff] (!%p198_p3)  ;;  %v329_v6 = vld [vmem:[%s1182_s1 + $0x20] sm:$0xff] (!%p198_p3)  ;;  %v332_v7 = vld [vmem:[%s1182_s1 + $0x38] sm:$0xff] (!%p198_p3) }
   0x8   : > { %353 = vperm.xlu1 (!%p198_p3), %831, %v327_v0   ;;  %343 = vperm.xlu0 (!%p198_p3), %830, %v325_v1   ;;  %v330_v5 = vld [vmem:[%s1182_s1 + $0x28] sm:$0xff] (!%p198_p3)  ;;  %v331_v8 = vld [vmem:[%s1182_s1 + $0x30] sm:$0xff] (!%p198_p3)  ;;  %v333_v10 = vld [vmem:[%s1182_s1 + $0x40] sm:$0xff] (!%p198_p3) }
   0x9   : > { %v334_v9 = vld [vmem:[%s1182_s1 + $0x48] sm:$0xff] (!%p198_p3)  ;;  %v336_v11 = vld [vmem:[%s1182_s1 + $0x58] sm:$0xff] (!%p198_p3)  ;;  %v335_v12 = vld [vmem:[%s1182_s1 + $0x50] sm:$0xff] (!%p198_p3) }
   0xa   : > { %v338_v13 = vld [vmem:[%s1182_s1 + $0x68] sm:$0xff] (!%p198_p3)  ;;  %v337_v14 = vld [vmem:[%s1182_s1 + $0x60] sm:$0xff] (!%p198_p3)  ;;  %v340_v15 = vld [vmem:[%s1182_s1 + $0x78] sm:$0xff] (!%p198_p3) }
   0xb   : > { %v339_v16 = vld [vmem:[%s1182_s1 + $0x70] sm:$0xff] (!%p198_p3)  ;;  %v454_v17 = vld [vmem:[%s1183_s2 + $0x8] sm:$0xff] (!%p198_p3)  ;;  %v453_v18 = vld [vmem:[%s1183_s2] sm:$0xff] (!%p198_p3) }
   0xc   : > { %358 = vperm.xlu1 (!%p198_p3), %831, %v328_v3   ;;  %348 = vperm.xlu0 (!%p198_p3), %830, %v326_v4   ;;  %v456_v19 = vld [vmem:[%s1183_s2 + $0x18] sm:$0xff] (!%p198_p3)  ;;  %v455_v20 = vld [vmem:[%s1183_s2 + $0x10] sm:$0xff] (!%p198_p3)  ;;  %v458_v21 = vld [vmem:[%s1183_s2 + $0x28] sm:$0xff] (!%p198_p3) }
   0xd   : > { %v457_v22 = vld [vmem:[%s1183_s2 + $0x20] sm:$0xff] (!%p198_p3)  ;;  %v460_v23 = vld [vmem:[%s1183_s2 + $0x38] sm:$0xff] (!%p198_p3)  ;;  %v459_v24 = vld [vmem:[%s1183_s2 + $0x30] sm:$0xff] (!%p198_p3) }
   0xe   : > { %v462_v25 = vld [vmem:[%s1183_s2 + $0x48] sm:$0xff]  ;;  %v461_v26 = vld [vmem:[%s1183_s2 + $0x40] sm:$0xff]  ;;  %v464_v27 = vld [vmem:[%s1183_s2 + $0x58] sm:$0xff]  ;;  %s1190_s12 = smov (!%p251_p4, %s846_s12), 1 }
   0xf   : > { %v463_v28 = vld [vmem:[%s1183_s2 + $0x50] sm:$0xff]  ;;  %v466_v29 = vld [vmem:[%s1183_s2 + $0x68] sm:$0xff]  ;;  %v465_v30 = vld [vmem:[%s1183_s2 + $0x60] sm:$0xff]  ;;  %s803_s7 = sshll.u32 %s1190_s12, 8 }
  0x10   : > { %368 = vperm.xlu1 %831, %v330_v5   ;;  %363 = vperm.xlu0 %830, %v329_v6   ;;  %v468_v31 = vld [vmem:[%s1183_s2 + $0x78] sm:$0xff]  ;;  %v467_v32 = vld [vmem:[%s1183_s2 + $0x70] sm:$0xff]  ;;  %s1019_s10 = scalar_lea.vmem %s1181_s0, %s803_s7  ;;  %s1083_s17 = scalar_lea.vmem %s1184_s3, %s803_s7 }
  0x11   : > { %v293_v47 = vld [vmem:[%s1019_s10] sm:$0xff]  ;;  %v294_v48 = vld [vmem:[%s1019_s10 + $0x8] sm:$0xff]  ;;  %v295_v49 = vld [vmem:[%s1019_s10 + $0x10] sm:$0xff] }
  0x12   : > { %v296_v50 = vld [vmem:[%s1019_s10 + $0x18] sm:$0xff]  ;;  %v297_v53 = vld [vmem:[%s1019_s10 + $0x20] sm:$0xff]  ;;  %v298_v54 = vld [vmem:[%s1019_s10 + $0x28] sm:$0xff] }
  0x13   : > { %v299_v57 = vld [vmem:[%s1019_s10 + $0x30] sm:$0xff]  ;;  %v300_v58 = vld [vmem:[%s1019_s10 + $0x38] sm:$0xff]  ;;  %v301_v1 = vld [vmem:[%s1019_s10 + $0x40] sm:$0xff] }
  0x14   : > { %378 = vperm.xlu1 %831, %v332_v7   ;;  %373 = vperm.xlu0 %830, %v331_v8   ;;  %v303_v63 = vld [vmem:[%s1019_s10 + $0x50] sm:$0xff]  ;;  %v304_v0 = vld [vmem:[%s1019_s10 + $0x58] sm:$0xff]  ;;  %v302_v2 = vld [vmem:[%s1019_s10 + $0x48] sm:$0xff] }
  0x18   : > { %388 = vperm.xlu1 %831, %v334_v9   ;;  %383 = vperm.xlu0 %830, %v333_v10  }
  0x1c   : > { %398 = vperm.xlu1 %831, %v336_v11   ;;  %393 = vperm.xlu0 %830, %v335_v12   ;;  %v307_v11 = vld [vmem:[%s1019_s10 + $0x70] sm:$0xff]  ;;  %v308_v12 = vld [vmem:[%s1019_s10 + $0x78] sm:$0xff] }
  0x20   : > { %408 = vperm.xlu1 %831, %v338_v13   ;;  %403 = vperm.xlu0 %830, %v337_v14   ;;  %v305_v13 = vld [vmem:[%s1019_s10 + $0x60] sm:$0xff]  ;;  %v306_v14 = vld [vmem:[%s1019_s10 + $0x68] sm:$0xff] }
  0x24   : > { %418 = vperm.xlu1 %831, %v340_v15   ;;  %413 = vperm.xlu0 %830, %v339_v16   ;;  %v1046_v15 = vld [vmem:[%s1019_s10 + $0x90] sm:$0xff]  ;;  %v1049_v16 = vld [vmem:[%s1019_s10 + $0x98] sm:$0xff] }
  0x28   : > { %476 = vperm.xlu1 %831, %v454_v17   ;;  %471 = vperm.xlu0 %830, %v453_v18   ;;  %v1052_v17 = vld [vmem:[%s1019_s10 + $0x80] sm:$0xff]  ;;  %v1055_v18 = vld [vmem:[%s1019_s10 + $0x88] sm:$0xff] }
  0x2c   : > { %486 = vperm.xlu1 %831, %v456_v19   ;;  %481 = vperm.xlu0 %830, %v455_v20   ;;  %v1058_v19 = vld [vmem:[%s1019_s10 + $0xb0] sm:$0xff]  ;;  %v1061_v20 = vld [vmem:[%s1019_s10 + $0xb8] sm:$0xff] }
  0x30   : > { %496 = vperm.xlu1 %831, %v458_v21   ;;  %491 = vperm.xlu0 %830, %v457_v22   ;;  %v1064_v21 = vld [vmem:[%s1019_s10 + $0xa0] sm:$0xff]  ;;  %v1067_v22 = vld [vmem:[%s1019_s10 + $0xa8] sm:$0xff] }
  0x34   : > { %506 = vperm.xlu1 %831, %v460_v23   ;;  %501 = vperm.xlu0 %830, %v459_v24   ;;  %v1070_v23 = vld [vmem:[%s1019_s10 + $0xd0] sm:$0xff]  ;;  %v1073_v24 = vld [vmem:[%s1019_s10 + $0xd8] sm:$0xff] }
  0x38   : > { %516 = vperm.xlu1 %831, %v462_v25   ;;  %511 = vperm.xlu0 %830, %v461_v26   ;;  %v1076_v25 = vld [vmem:[%s1019_s10 + $0xc0] sm:$0xff]  ;;  %v1086_v26 = vld [vmem:[%s1019_s10 + $0xc8] sm:$0xff] }
  0x3c   : > { %526 = vperm.xlu1 %831, %v464_v27   ;;  %521 = vperm.xlu0 %830, %v463_v28   ;;  %v1089_v27 = vld [vmem:[%s1019_s10 + $0xf0] sm:$0xff] }
  0x40   : > { %536 = vperm.xlu1 %831, %v466_v29   ;;  %531 = vperm.xlu0 %830, %v465_v30  }
  0x44   : > { %546 = vperm.xlu1 %831, %v468_v31   ;;  %541 = vperm.xlu0 %830, %v467_v32   ;;  %v1092_v32 = vld [vmem:[%s1019_s10 + $0xf8] sm:$0xff] }
  0x87   : > { %v354_v33 = vpop.permute.xlu1 %353  ;;  %v344_v34 = vpop.permute.xlu0 %343 }
  0x88   : > { %v421_v55 = vmul.f32 %v344_v34, %v293_v47  ;;  %v422_v56 = vmul.f32 %v344_v34, %v294_v48  ;;  %v425_v7 = vmul.f32 %v354_v33, %v297_v53  ;;  %v426_v8 = vmul.f32 %v354_v33, %v298_v54  ;;  %v1095_v33 = vld [vmem:[%s1019_s10 + $0xe0] sm:$0xff]  ;;  %v1098_v34 = vld [vmem:[%s1019_s10 + $0xe8] sm:$0xff] }
  0x8b   : > { %v359_v35 = vpop.permute.xlu1 %358  ;;  %v349_v36 = vpop.permute.xlu0 %348 }
  0x8c   : > { %v423_v59 = vmul.f32 %v349_v36, %v295_v49  ;;  %v424_v60 = vmul.f32 %v349_v36, %v296_v50  ;;  %v427_v9 = vmul.f32 %v359_v35, %v299_v57  ;;  %v428_v10 = vmul.f32 %v359_v35, %v300_v58 }
  0x8f   : > { %v993_v37 = vpop.permute.xlu1 %368  ;;  %v995_v38 = vpop.permute.xlu0 %363 }
  0x90   : > { %v431_v53 = vmul.f32 %v993_v37, %v303_v63  ;;  %v432_v54 = vmul.f32 %v993_v37, %v304_v0 }
  0x93   : > { %v997_v39 = vpop.permute.xlu1 %378  ;;  %v999_v40 = vpop.permute.xlu0 %373 }
  0x97   : > { %v1002_v41 = vpop.permute.xlu1 %388  ;;  %v1004_v42 = vpop.permute.xlu0 %383 }
  0x9b   : > { %v1009_v43 = vpop.permute.xlu1 %398  ;;  %v1011_v44 = vpop.permute.xlu0 %393 }
  0x9f   : > { %v1021_v45 = vpop.permute.xlu1 %408  ;;  %v1023_v46 = vpop.permute.xlu0 %403 }
  0xa3   : > { %v1029_v51 = vpop.permute.xlu1 %418  ;;  %v1031_v52 = vpop.permute.xlu0 %413 }
  0xa7   : > { %v477_v61 = vpop.permute.xlu1 %476  ;;  %v472_v62 = vpop.permute.xlu0 %471 }
  0xa8   : > { %v551_v3 = vadd.f32 %v477_v61, %v423_v59  ;;  %v552_v4 = vadd.f32 %v477_v61, %v424_v60  ;;  %v549_v5 = vadd.f32 %v472_v62, %v421_v55  ;;  %v550_v6 = vadd.f32 %v472_v62, %v422_v56 }
  0xa9   : > { %v429_v55 = vmul.f32 %v995_v38, %v301_v1  ;;  %v430_v56 = vmul.f32 %v995_v38, %v302_v2  ;;  %v435_v38 = vmul.f32 %v997_v39, %v307_v11  ;;  %v436_v1 = vmul.f32 %v997_v39, %v308_v12 }
  0xaa   : > { %v583_v28 = vmax.f32 %v551_v3, 0.0  ;;  %v584_v29 = vmax.f32 %v552_v4, 0.0  ;;  %v581_v30 = vmax.f32 %v549_v5, 0.0  ;;  %v582_v31 = vmax.f32 %v550_v6, 0.0 }
  0xab   : > { %v487_v35 = vpop.permute.xlu1 %486  ;;  %v482_v36 = vpop.permute.xlu0 %481  ;;  %v433_v2 = vmul.f32 %v999_v40, %v305_v13  ;;  %v434_v4 = vmul.f32 %v999_v40, %v306_v14  ;;  %v439_v40 = vmul.f32 %v1002_v41, %v1046_v15  ;;  %v440_v13 = vmul.f32 %v1002_v41, %v1049_v16 }
  0xac   : > { %615 = vst [vmem:[%s1083_s17 + $0x10] sm:$0xff] %v583_v28  ;;  %616 = vst [vmem:[%s1083_s17 + $0x18] sm:$0xff] %v584_v29  ;;  %v555_v47 = vadd.f32 %v487_v35, %v427_v9  ;;  %v556_v48 = vadd.f32 %v487_v35, %v428_v10  ;;  %v553_v49 = vadd.f32 %v482_v36, %v425_v7 }
  0xad   : > { %613 = vst [vmem:[%s1083_s17] sm:$0xff] %v581_v30  ;;  %614 = vst [vmem:[%s1083_s17 + $0x8] sm:$0xff] %v582_v31  ;;  %v554_v50 = vadd.f32 %v482_v36, %v426_v8  ;;  %v437_v14 = vmul.f32 %v1004_v42, %v1052_v17  ;;  %v438_v29 = vmul.f32 %v1004_v42, %v1055_v18 }
  0xae   : > { %v587_v57 = vmax.f32 %v555_v47, 0.0  ;;  %v588_v58 = vmax.f32 %v556_v48, 0.0  ;;  %v585_v59 = vmax.f32 %v553_v49, 0.0  ;;  %v443_v42 = vmul.f32 %v1009_v43, %v1058_v19 }
  0xaf   : > { %v586_v60 = vmax.f32 %v554_v50, 0.0  ;;  %v497_v61 = vpop.permute.xlu1 %496  ;;  %v492_v62 = vpop.permute.xlu0 %491  ;;  %v444_v18 = vmul.f32 %v1009_v43, %v1061_v20  ;;  %v441_v49 = vmul.f32 %v1011_v44, %v1064_v21  ;;  %v442_v50 = vmul.f32 %v1011_v44, %v1067_v22 }
  0xb0   : > { %619 = vst [vmem:[%s1083_s17 + $0x30] sm:$0xff] %v587_v57  ;;  %620 = vst [vmem:[%s1083_s17 + $0x38] sm:$0xff] %v588_v58  ;;  %v559_v3 = vadd.f32 %v497_v61, %v431_v53  ;;  %v560_v63 = vadd.f32 %v497_v61, %v432_v54  ;;  %v557_v37 = vadd.f32 %v492_v62, %v429_v55 }
  0xb1   : > { %617 = vst [vmem:[%s1083_s17 + $0x20] sm:$0xff] %v585_v59  ;;  %618 = vst [vmem:[%s1083_s17 + $0x28] sm:$0xff] %v586_v60  ;;  %v558_v0 = vadd.f32 %v492_v62, %v430_v56  ;;  %v447_v44 = vmul.f32 %v1021_v45, %v1070_v23  ;;  %v448_v22 = vmul.f32 %v1021_v45, %v1073_v24 }
  0xb2   : > { %v591_v5 = vmax.f32 %v559_v3, 0.0  ;;  %v592_v6 = vmax.f32 %v560_v63, 0.0  ;;  %v589_v7 = vmax.f32 %v557_v37, 0.0  ;;  %v445_v59 = vmul.f32 %v1023_v46, %v1076_v25 }
  0xb3   : > { %v590_v8 = vmax.f32 %v558_v0, 0.0  ;;  %v507_v9 = vpop.permute.xlu1 %506  ;;  %v502_v10 = vpop.permute.xlu0 %501  ;;  %v446_v60 = vmul.f32 %v1023_v46, %v1086_v26  ;;  %v451_v46 = vmul.f32 %v1029_v51, %v1089_v27  ;;  %v452_v26 = vmul.f32 %v1029_v51, %v1092_v32 }
  0xb4   : > { %623 = vst [vmem:[%s1083_s17 + $0x50] sm:$0xff] %v591_v5  ;;  %624 = vst [vmem:[%s1083_s17 + $0x58] sm:$0xff] %v592_v6  ;;  %v563_v28 = vadd.f32 %v507_v9, %v435_v38  ;;  %v564_v11 = vadd.f32 %v507_v9, %v436_v1  ;;  %v561_v39 = vadd.f32 %v502_v10, %v433_v2 }
  0xb5   : > { %621 = vst [vmem:[%s1083_s17 + $0x40] sm:$0xff] %v589_v7  ;;  %622 = vst [vmem:[%s1083_s17 + $0x48] sm:$0xff] %v590_v8  ;;  %v562_v12 = vadd.f32 %v502_v10, %v434_v4  ;;  %v449_v38 = vmul.f32 %v1031_v52, %v1095_v33  ;;  %v450_v1 = vmul.f32 %v1031_v52, %v1098_v34 }
  0xb6   : > { %v595_v30 = vmax.f32 %v563_v28, 0.0  ;;  %v596_v31 = vmax.f32 %v564_v11, 0.0  ;;  %v593_v35 = vmax.f32 %v561_v39, 0.0 }
  0xb7   : > { %v594_v36 = vmax.f32 %v562_v12, 0.0  ;;  %v517_v47 = vpop.permute.xlu1 %516  ;;  %v512_v48 = vpop.permute.xlu0 %511 }
  0xb8   : > { %627 = vst [vmem:[%s1083_s17 + $0x70] sm:$0xff] %v595_v30  ;;  %628 = vst [vmem:[%s1083_s17 + $0x78] sm:$0xff] %v596_v31  ;;  %v567_v15 = vadd.f32 %v517_v47, %v439_v40  ;;  %v568_v41 = vadd.f32 %v517_v47, %v440_v13  ;;  %v565_v16 = vadd.f32 %v512_v48, %v437_v14 }
  0xb9   : > { %625 = vst [vmem:[%s1083_s17 + $0x60] sm:$0xff] %v593_v35  ;;  %626 = vst [vmem:[%s1083_s17 + $0x68] sm:$0xff] %v594_v36  ;;  %v566_v17 = vadd.f32 %v512_v48, %v438_v29 }
  0xba   : > { %v599_v53 = vmax.f32 %v567_v15, 0.0  ;;  %v600_v54 = vmax.f32 %v568_v41, 0.0  ;;  %v597_v55 = vmax.f32 %v565_v16, 0.0 }
  0xbb   : > { %v598_v56 = vmax.f32 %v566_v17, 0.0  ;;  %v527_v57 = vpop.permute.xlu1 %526  ;;  %v522_v58 = vpop.permute.xlu0 %521 }
  0xbc   : > { %631 = vst [vmem:[%s1083_s17 + $0x90] sm:$0xff] %v599_v53  ;;  %632 = vst [vmem:[%s1083_s17 + $0x98] sm:$0xff] %v600_v54  ;;  %v571_v19 = vadd.f32 %v527_v57, %v443_v42  ;;  %v572_v43 = vadd.f32 %v527_v57, %v444_v18  ;;  %v569_v20 = vadd.f32 %v522_v58, %v441_v49 }
  0xbd   : > { %629 = vst [vmem:[%s1083_s17 + $0x80] sm:$0xff] %v597_v55  ;;  %630 = vst [vmem:[%s1083_s17 + $0x88] sm:$0xff] %v598_v56  ;;  %v570_v21 = vadd.f32 %v522_v58, %v442_v50 }
  0xbe   : > { %v603_v61 = vmax.f32 %v571_v19, 0.0  ;;  %v604_v62 = vmax.f32 %v572_v43, 0.0  ;;  %v601_v3 = vmax.f32 %v569_v20, 0.0 }
  0xbf   : > { %v602_v63 = vmax.f32 %v570_v21, 0.0  ;;  %v537_v37 = vpop.permute.xlu1 %536  ;;  %v532_v0 = vpop.permute.xlu0 %531 }
  0xc0   : > { %635 = vst [vmem:[%s1083_s17 + $0xb0] sm:$0xff] %v603_v61  ;;  %636 = vst [vmem:[%s1083_s17 + $0xb8] sm:$0xff] %v604_v62  ;;  %v575_v23 = vadd.f32 %v537_v37, %v447_v44  ;;  %v576_v45 = vadd.f32 %v537_v37, %v448_v22  ;;  %v573_v24 = vadd.f32 %v532_v0, %v445_v59 }
  0xc1   : > { %633 = vst [vmem:[%s1083_s17 + $0xa0] sm:$0xff] %v601_v3  ;;  %634 = vst [vmem:[%s1083_s17 + $0xa8] sm:$0xff] %v602_v63  ;;  %v574_v25 = vadd.f32 %v532_v0, %v446_v60 }
  0xc2   : > { %v607_v2 = vmax.f32 %v575_v23, 0.0  ;;  %v608_v4 = vmax.f32 %v576_v45, 0.0  ;;  %v605_v5 = vmax.f32 %v573_v24, 0.0 }
  0xc3   : > { %v606_v6 = vmax.f32 %v574_v25, 0.0  ;;  %v547_v7 = vpop.permute.xlu1 %546  ;;  %v542_v8 = vpop.permute.xlu0 %541 }
  0xc4   : > { %639 = vst [vmem:[%s1083_s17 + $0xd0] sm:$0xff] %v607_v2  ;;  %640 = vst [vmem:[%s1083_s17 + $0xd8] sm:$0xff] %v608_v4  ;;  %v579_v51 = vadd.f32 %v547_v7, %v451_v46  ;;  %v580_v27 = vadd.f32 %v547_v7, %v452_v26  ;;  %v577_v32 = vadd.f32 %v542_v8, %v449_v38 }
  0xc5   : > { %637 = vst [vmem:[%s1083_s17 + $0xc0] sm:$0xff] %v605_v5  ;;  %638 = vst [vmem:[%s1083_s17 + $0xc8] sm:$0xff] %v606_v6  ;;  %v578_v33 = vadd.f32 %v542_v8, %v450_v1 }
  0xc6   : > { %v611_v9 = vmax.f32 %v579_v51, 0.0  ;;  %v612_v52 = vmax.f32 %v580_v27, 0.0  ;;  %v609_v34 = vmax.f32 %v577_v32, 0.0 }
  0xc7   : > { %v610_v10 = vmax.f32 %v578_v33, 0.0 }
  0xc8   : > { %643 = vst [vmem:[%s1083_s17 + $0xf0] sm:$0xff] %v611_v9  ;;  %644 = vst [vmem:[%s1083_s17 + $0xf8] sm:$0xff] %v612_v52 }
  0xc9   : > { %641 = vst [vmem:[%s1083_s17 + $0xe0] sm:$0xff] %v609_v34  ;;  %642 = vst [vmem:[%s1083_s17 + $0xe8] sm:$0xff] %v610_v10 }
  0xca PF: > { %s13_s14 = sadd.s32 1, %s854_s14   ;;  %s1185_s12 = smov %s850_s13 }
  0xcb   : > { %p10_p5 = scmp.ge.s32.totalorder %s13_s14, 4   ;;  %s1186_s13 = smov %s1188_s15 }
  0xcd   :  { %12 = sbr.rel (!%p10_p5) target bundleno = 2 (0x2), region = 68 }

// kernel: basic_conv2d.2
= control target key start
LH: loop header
LB: loop body
LE: loop exit
PB: predicated region body
PF: predicated region fallthrough
CT: control target
= control target key end

     0   :  { %s2566_s12 = smov 0   ;;  %s2568_s13 = smov 0   ;;  %s4338_s0 = inlined_call_operand.vmem [shape: f32[2,18,18,4], index: 0, kind: input, shape index: {}]   ;;  %s4339_s1 = inlined_call_operand.vmem [shape: f32[1,36,128], index: 1, kind: input, shape index: {}]   ;;  %s4340_s2 = inlined_call_operand.vmem [shape: f32[2,128,256], index: 2, kind: output, shape index: {0}]   ;;  %s4341_s3 = inlined_call_operand.vmem [shape: f32[2,2,128], index: 3, kind: output, shape index: {1}]  }
   0x1   :  { %s2570_s14 = smov 0  }
   0x2 LB: > { %s33_s15 = sadd.s32 1, %s2531_s13  ;;  %p2311_p0 = scmp.ge.s32.totalorder %s2535_s14, 1  ;;  %s2535_s14 = sphi %s2570_s14, %s14_s14   ;;  %s2531_s13 = sphi %s2568_s13, %s4548_s13   ;;  %s2527_s12 = sphi %s2566_s12, %s4547_s12  }
   0x3   : > { %p35_p1 = scmp.ge.s32.totalorder %s33_s15, 2  ;;  %p165_p2 = scmp.lt.s32.totalorder %s2535_s14, 3 }
   0x5   : > { %s4550_s15 = smov (%p35_p1, %s33_s15), 0  ;;  %p166_p3 = pnand %p2311_p0, %p165_p2 }
   0x7   : > { %169 = sbr.rel (%p166_p3) target bundleno = 997 (0x3e5), region = 28 }
   0xe   : > { %p205_p4 = scmp.lt.s32.totalorder %s2527_s12, 1  ;;  %vm345_vm0 = vcmask 1046528   ;;  %s2537_s20 = smov 4   ;;  %vm426_vm1 = vcmask 1045504   ;;  %vm1662_vm2 = vcmask 1043456   ;;  %vm1301_vm3 = vcmask 31744  }
   0xf   : > { %s2538_s21 = smov 8   ;;  %s2539_s22 = smov 12   ;;  %vm1334_vm4 = vcmask 64512   ;;  %vm1367_vm5 = vcmask 97280   ;;  %vm1400_vm6 = vcmask 130048   ;;  %vm1433_vm7 = vcmask 162816  }
  0x10   : > { %s4552_s12 = smov (!%p205_p4, %s2527_s12), 1  ;;  %s2540_s23 = smov 16   ;;  %vm1466_vm8 = vcmask 195584   ;;  %vm1499_vm9 = vcmask 228352   ;;  %vm1532_vm10 = vcmask 261120   ;;  %vm1565_vm11 = vcmask 293888  }
  0x11   : > { %s2461_s16 = smul.u32 432, %s4552_s12  ;;  %s2541_s28 = smov 20   ;;  %vm2156_vm12 = vcmask 1040384  }
  0x12   : > { %s2542_s6 = smov 24   ;;  %s2543_s9 = smov 28  }
  0x13   : > { %s2590_s19 = scalar_lea.vmem %s4338_s0, %s2461_s16  ;;  %s2544_s10 = smov 32  }
  0x14   : > { %v2593_v0 = vld [vmem:[%s2590_s19 + $0x18] sm:$0xff]  ;;  %v2596_v1 = vld [vmem:[%s2590_s19 + $0x20] sm:$0xff]  ;;  %v2604_v5 = vld [vmem:[%s2590_s19 + $0x8] sm:$0xff]  ;;  %s2315_s11 = sshll.u32 %s4552_s12, 1 }
  0x15   : > { %v2599_v2 = vld [vmem:[%s2590_s19] sm:$0xff]  ;;  %v351_v3 = vrot.slane %v2593_v0, 1  ;;  %v352_v4 = vrot.slane %v2596_v1, 1  ;;  %v2608_v7 = vld [vmem:[%s2590_s19 + $0x28] sm:$0x3]  ;;  %v347_v8 = vrot.slane %v2604_v5, 1  ;;  %s4167_s18 = scalar_lea.vmem %s4341_s3, %s2315_s11 }
  0x16   : > { %4431 = vst [vmem:[#allocation2_spill] sm:$0xff] %v2599_v2  ;;  %v346_v6 = vrot.slane %v2599_v2, 1  ;;  %v354_v9 = vrot.slane %v2608_v7, 1  ;;  %v2613_v10 = vld [vmem:[%s2590_s19 + $0x10] sm:$0x3]  ;;  %v2616_v11 = vld [vmem:[%s2590_s19 + $0x38] sm:$0xff] }
  0x17   : > { %v2619_v12 = vsel %vm345_vm0, %v351_v3, %v352_v4  ;;  %v349_v13 = vrot.slane %v2613_v10, 1  ;;  %v2623_v14 = vld [vmem:[%s2590_s19 + $0x40] sm:$0x3]  ;;  %v2626_v15 = vld [vmem:[%s2590_s19 + $0x30] sm:$0xff]  ;;  %v357_v18 = vrot.slane %v2616_v11, 1  ;;  %v2646_v24 = vld [vmem:[%s2590_s19 + $0x48] sm:$0xff] }
  0x18   : > { %537 = vrot.lane.b32.xlu1 %v2619_v12, %s2537_s20  ;;  %v348_v16 = vsel %vm345_vm0, %v346_v6, %v347_v8  ;;  %v2633_v17 = vsel %vm345_vm0, %v352_v4, %v354_v9  ;;  %v359_v19 = vrot.slane %v2623_v14, 1  ;;  %v356_v21 = vrot.slane %v2626_v15, 1  ;;  %v2640_v22 = vld [vmem:[%s2590_s19 + $0x50] sm:$0xff]  ;;  %v2643_v23 = vld [vmem:[%s2590_s19 + $0x58] sm:$0x3]  ;;  %v2661_v30 = vld [vmem:[%s2590_s19 + $0x68] sm:$0xff] }
  0x19   : > { %533 = vrot.lane.b32.xlu0 %v348_v16, %s2537_s20  ;;  %v350_v20 = vsel %vm345_vm0, %v347_v8, %v349_v13  ;;  %v362_v26 = vrot.slane %v2640_v22, 1  ;;  %v364_v27 = vrot.slane %v2643_v23, 1  ;;  %v361_v29 = vrot.slane %v2646_v24, 1  ;;  %v2664_v31 = vld [vmem:[%s2590_s19 + $0x70] sm:$0x3]  ;;  %v2667_v32 = vld [vmem:[%s2590_s19 + $0x60] sm:$0xff] }
  0x1a   : > { %v2652_v25 = vsel %vm345_vm0, %v357_v18, %v359_v19  ;;  %v2657_v28 = vsel %vm345_vm0, %v356_v21, %v357_v18  ;;  %v367_v34 = vrot.slane %v2661_v30, 1  ;;  %v369_v35 = vrot.slane %v2664_v31, 1  ;;  %v2683_v38 = vld [vmem:[%s2590_s19 + $0x80] sm:$0xff]  ;;  %v2686_v39 = vld [vmem:[%s2590_s19 + $0x88] sm:$0x3]  ;;  %v2689_v40 = vld [vmem:[%s2590_s19 + $0x78] sm:$0xff] }
  0x1b   : > { %v2674_v33 = vsel %vm345_vm0, %v362_v26, %v364_v27  ;;  %v2679_v36 = vsel %vm345_vm0, %v361_v29, %v362_v26  ;;  %v366_v37 = vrot.slane %v2667_v32, 1  ;;  %v372_v42 = vrot.slane %v2683_v38, 1  ;;  %v2705_v46 = vld [vmem:[%s2590_s19 + $0x98] sm:$0xff]  ;;  %v2708_v47 = vld [vmem:[%s2590_s19 + $0xa0] sm:$0x3]  ;;  %v2711_v48 = vld [vmem:[%s2590_s19 + $0x90] sm:$0xff] }
  0x1c   : > { %539 = vrot.lane.b32.xlu1 %v2633_v17, %s2537_s20  ;;  %4432 = vst [vmem:[#allocation3_spill] sm:$0xff] %v2674_v33  ;;  %v2696_v41 = vsel %vm345_vm0, %v367_v34, %v369_v35  ;;  %v374_v43 = vrot.slane %v2686_v39, 1  ;;  %v371_v45 = vrot.slane %v2689_v40, 1  ;;  %v377_v50 = vrot.slane %v2705_v46, 1  ;;  %v2727_v54 = vld [vmem:[%s2590_s19 + $0xb0] sm:$0xff]  ;;  %v2733_v56 = vld [vmem:[%s2590_s19 + $0xa8] sm:$0xff] }
  0x1d   : > { %535 = vrot.lane.b32.xlu0 %v350_v20, %s2537_s20  ;;  %4433 = vst [vmem:[#allocation4_spill] sm:$0xff] %v2696_v41  ;;  %v2701_v44 = vsel %vm345_vm0, %v366_v37, %v367_v34  ;;  %v379_v51 = vrot.slane %v2708_v47, 1  ;;  %v376_v53 = vrot.slane %v2711_v48, 1  ;;  %v2730_v55 = vld [vmem:[%s2590_s19 + $0xb8] sm:$0x3]  ;;  %v382_v58 = vrot.slane %v2727_v54, 1 }
  0x1e   : > { %4434 = vst [vmem:[#allocation5_spill] sm:$0xff] %v2701_v44  ;;  %v2718_v49 = vsel %vm345_vm0, %v372_v42, %v374_v43  ;;  %v2723_v52 = vsel %vm345_vm0, %v371_v45, %v372_v42  ;;  %v384_v59 = vrot.slane %v2730_v55, 1  ;;  %v381_v61 = vrot.slane %v2733_v56, 1  ;;  %v2749_v62 = vld [vmem:[%s2590_s19 + $0xc8] sm:$0xff]  ;;  %v2752_v63 = vld [vmem:[%s2590_s19 + $0xd0] sm:$0x3] }
  0x1f   : > { %4435 = vst [vmem:[#allocation6_spill] sm:$0xff] %v2718_v49  ;;  %4436 = vst [vmem:[#allocation7_spill] sm:$0xff] %v2723_v52  ;;  %v2740_v57 = vsel %vm345_vm0, %v377_v50, %v379_v51  ;;  %v2745_v60 = vsel %vm345_vm0, %v376_v53, %v377_v50  ;;  %v2755_v3 = vld [vmem:[%s2590_s19 + $0xc0] sm:$0xff]  ;;  %v387_v6 = vrot.slane %v2749_v62, 1  ;;  %v389_v8 = vrot.slane %v2752_v63, 1  ;;  %v2777_v19 = vld [vmem:[%s2590_s19 + $0xd8] sm:$0xff] }
  0x20   : > { %543 = vrot.lane.b32.xlu1 %v2652_v25, %s2537_s20  ;;  %4437 = vst [vmem:[#allocation8_spill] sm:$0xff] %v2740_v57  ;;  %4438 = vst [vmem:[#allocation9_spill] sm:$0xff] %v2745_v60  ;;  %v2762_v4 = vsel %vm345_vm0, %v382_v58, %v384_v59  ;;  %v2767_v9 = vsel %vm345_vm0, %v381_v61, %v382_v58  ;;  %v386_v13 = vrot.slane %v2755_v3, 1  ;;  %v2771_v16 = vld [vmem:[%s2590_s19 + $0xe0] sm:$0xff]  ;;  %v2774_v18 = vld [vmem:[%s2590_s19 + $0xe8] sm:$0x3] }
  0x21   : > { %541 = vrot.lane.b32.xlu0 %v2657_v28, %s2537_s20  ;;  %4439 = vst [vmem:[#allocation10_spill] sm:$0xff] %v2762_v4  ;;  %4440 = vst [vmem:[#allocation11_spill] sm:$0xff] %v2767_v9  ;;  %v2784_v20 = vsel %vm345_vm0, %v387_v6, %v389_v8  ;;  %v392_v21 = vrot.slane %v2771_v16, 1  ;;  %v394_v26 = vrot.slane %v2774_v18, 1  ;;  %v391_v29 = vrot.slane %v2777_v19, 1  ;;  %v2793_v34 = vld [vmem:[%s2590_s19 + $0xf8] sm:$0xff] }
  0x22   : > { %4441 = vst [vmem:[#allocation12_spill] sm:$0xff] %v2784_v20  ;;  %v2789_v27 = vsel %vm345_vm0, %v386_v13, %v387_v6  ;;  %v2796_v35 = vld [vmem:[%s2590_s19 + $0x100] sm:$0x3]  ;;  %v2799_v37 = vld [vmem:[%s2590_s19 + $0xf0] sm:$0xff]  ;;  %v397_v43 = vrot.slane %v2793_v34, 1  ;;  %v2821_v59 = vld [vmem:[%s2590_s19 + $0x108] sm:$0xff] }
  0x23   : > { %4442 = vst [vmem:[#allocation13_spill] sm:$0xff] %v2789_v27  ;;  %v2806_v42 = vsel %vm345_vm0, %v392_v21, %v394_v26  ;;  %v399_v45 = vrot.slane %v2796_v35, 1  ;;  %v2811_v50 = vsel %vm345_vm0, %v391_v29, %v392_v21  ;;  %v396_v51 = vrot.slane %v2799_v37, 1  ;;  %v2815_v53 = vld [vmem:[%s2590_s19 + $0x110] sm:$0xff]  ;;  %v2818_v58 = vld [vmem:[%s2590_s19 + $0x118] sm:$0x3] }
  0x24   : > { %547 = vrot.lane.b32.xlu1 %v2674_v33, %s2537_s20  ;;  %4443 = vst [vmem:[#allocation14_spill] sm:$0xff] %v2806_v42  ;;  %4444 = vst [vmem:[#allocation15_spill] sm:$0xff] %v2811_v50  ;;  %v402_v6 = vrot.slane %v2815_v53, 1  ;;  %v404_v8 = vrot.slane %v2818_v58, 1  ;;  %v401_v21 = vrot.slane %v2821_v59, 1  ;;  %v2837_v26 = vld [vmem:[%s2590_s19 + $0x128] sm:$0xff] }
  0x25   : > { %545 = vrot.lane.b32.xlu0 %v2679_v36, %s2537_s20  ;;  %v2828_v61 = vsel %vm345_vm0, %v397_v43, %v399_v45  ;;  %v2833_v13 = vsel %vm345_vm0, %v396_v51, %v397_v43  ;;  %v2840_v29 = vld [vmem:[%s2590_s19 + $0x130] sm:$0x3]  ;;  %v407_v43 = vrot.slane %v2837_v26, 1 }
  0x26   : > { %4445 = vst [vmem:[#allocation16_spill] sm:$0xff] %v2828_v61  ;;  %4446 = vst [vmem:[#allocation17_spill] sm:$0xff] %v2833_v13  ;;  %v2850_v45 = vsel %vm345_vm0, %v402_v6, %v404_v8  ;;  %v409_v51 = vrot.slane %v2840_v29, 1 }
  0x27   : > { %4447 = vst [vmem:[#allocation18_spill] sm:$0xff] %v2850_v45 }
  0x28   : > { %551 = vrot.lane.b32.xlu1 %v2696_v41, %s2537_s20  ;;  %v2872_v8 = vsel %vm345_vm0, %v407_v43, %v409_v51  ;;  %v2906_v41 = vld [vmem:[%s2590_s19 + $0x178] sm:$0x3] }
  0x29   : > { %549 = vrot.lane.b32.xlu0 %v2701_v44, %s2537_s20  ;;  %4449 = vst [vmem:[#allocation20_spill] sm:$0xff] %v2872_v8 }
  0x2c   : > { %555 = vrot.lane.b32.xlu1 %v2718_v49, %s2537_s20 }
  0x2d   : > { %553 = vrot.lane.b32.xlu0 %v2723_v52, %s2537_s20  ;;  %v2903_v52 = vld [vmem:[%s2590_s19 + $0x170] sm:$0xff] }
  0x30   : > { %559 = vrot.lane.b32.xlu1 %v2740_v57, %s2537_s20  ;;  %v2881_v57 = vld [vmem:[%s2590_s19 + $0x158] sm:$0xff] }
  0x31   : > { %557 = vrot.lane.b32.xlu0 %v2745_v60, %s2537_s20 }
  0x34   : > { %563 = vrot.lane.b32.xlu1 %v2762_v4, %s2537_s20 }
  0x35   : > { %561 = vrot.lane.b32.xlu0 %v2767_v9, %s2537_s20 }
  0x38   : > { %567 = vrot.lane.b32.xlu1 %v2784_v20, %s2537_s20 }
  0x39   : > { %565 = vrot.lane.b32.xlu0 %v2789_v27, %s2537_s20  ;;  %v2859_v27 = vld [vmem:[%s2590_s19 + $0x140] sm:$0xff] }
  0x3c   : > { %571 = vrot.lane.b32.xlu1 %v2806_v42, %s2537_s20  ;;  %v2843_v42 = vld [vmem:[%s2590_s19 + $0x120] sm:$0xff] }
  0x3d   : > { %569 = vrot.lane.b32.xlu0 %v2811_v50, %s2537_s20  ;;  %v2855_v50 = vsel %vm345_vm0, %v401_v21, %v402_v6  ;;  %v406_v20 = vrot.slane %v2843_v42, 1  ;;  %v412_v6 = vrot.slane %v2859_v27, 1 }
  0x3e   : > { %4448 = vst [vmem:[#allocation19_spill] sm:$0xff] %v2855_v50 }
  0x3f   : > { %v2877_v4 = vsel %vm345_vm0, %v406_v20, %v407_v43  ;;  %v417_v20 = vrot.slane %v2881_v57, 1 }
  0x40   : > { %575 = vrot.lane.b32.xlu1 %v2828_v61, %s2537_s20  ;;  %v2862_v61 = vld [vmem:[%s2590_s19 + $0x148] sm:$0x3]  ;;  %4450 = vst [vmem:[#allocation21_spill] sm:$0xff] %v2877_v4 }
  0x41   : > { %573 = vrot.lane.b32.xlu0 %v2833_v13, %s2537_s20  ;;  %v2865_v13 = vld [vmem:[%s2590_s19 + $0x138] sm:$0xff]  ;;  %v414_v21 = vrot.slane %v2862_v61, 1 }
  0x42   : > { %v411_v9 = vrot.slane %v2865_v13, 1 }
  0x43   : > { %v2894_v51 = vsel %vm345_vm0, %v412_v6, %v414_v21 }
  0x44   : > { %579 = vrot.lane.b32.xlu1 %v2850_v45, %s2537_s20  ;;  %v2884_v45 = vld [vmem:[%s2590_s19 + $0x160] sm:$0x3]  ;;  %4451 = vst [vmem:[#allocation22_spill] sm:$0xff] %v2894_v51  ;;  %v2899_v60 = vsel %vm345_vm0, %v411_v9, %v412_v6  ;;  %v422_v9 = vrot.slane %v2903_v52, 1  ;;  %v424_v6 = vrot.slane %v2906_v41, 1 }
  0x45   : > { %577 = vrot.lane.b32.xlu0 %v2855_v50, %s2537_s20  ;;  %v2887_v50 = vld [vmem:[%s2590_s19 + $0x150] sm:$0xff]  ;;  %v419_v43 = vrot.slane %v2884_v45, 1  ;;  %4452 = vst [vmem:[#allocation23_spill] sm:$0xff] %v2899_v60 }
  0x46   : > { %v416_v49 = vrot.slane %v2887_v50, 1 }
  0x47   : > { %v2916_v21 = vsel %vm345_vm0, %v417_v20, %v419_v43  ;;  %v428_v43 = vrot.slane %v2604_v5, 2  ;;  %v435_v5 = vrot.slane %v2608_v7, 2  ;;  %v437_v7 = vrot.slane %v2626_v15, 2 }
  0x48   : > { %583 = vrot.lane.b32.xlu1 %v2872_v8, %s2537_s20  ;;  %v2909_v8 = vld [vmem:[%s2590_s19 + $0x168] sm:$0xff]  ;;  %4453 = vst [vmem:[#allocation24_spill] sm:$0xff] %v2916_v21 }
  0x49   : > { %581 = vrot.lane.b32.xlu0 %v2877_v4, %s2537_s20  ;;  %v2921_v4 = vsel %vm345_vm0, %v416_v49, %v417_v20  ;;  %v421_v44 = vrot.slane %v2909_v8, 1  ;;  %v427_v49 = vrot.slane %v2599_v2, 2  ;;  %v470_v2 = vrot.slane %v2752_v63, 2 }
  0x4a   : > { %4454 = vst [vmem:[#allocation25_spill] sm:$0xff] %v2921_v4 }
  0x4b   : > { %v2934_v33 = vsel %vm345_vm0, %v421_v44, %v422_v9  ;;  %v432_v44 = vrot.slane %v2593_v0, 2 }
  0x4c   : > { %587 = vrot.lane.b32.xlu1 %v2894_v51, %s2537_s20  ;;  %v2929_v51 = vsel %vm345_vm0, %v422_v9, %v424_v6  ;;  %4456 = vst [vmem:[#allocation27_spill] sm:$0xff] %v2934_v33  ;;  %v433_v6 = vrot.slane %v2596_v1, 2 }
  0x4d   : > { %585 = vrot.lane.b32.xlu0 %v2899_v60, %s2537_s20  ;;  %4455 = vst [vmem:[#allocation26_spill] sm:$0xff] %v2929_v51  ;;  %v430_v60 = vrot.slane %v2613_v10, 2  ;;  %v429_v10 = vsel %vm426_vm1, %v427_v49, %v428_v43  ;;  %v443_v49 = vrot.slane %v2640_v22, 2 }
  0x4e   : > { %v2949_v9 = vsel %vm426_vm1, %v433_v6, %v435_v5 }
  0x4f   : > { %v431_v20 = vsel %vm426_vm1, %v428_v43, %v430_v60  ;;  %v440_v60 = vrot.slane %v2623_v14, 2 }
  0x50   : > { %591 = vrot.lane.b32.xlu1 %v2916_v21, %s2537_s20  ;;  %v460_v21 = vrot.slane %v2708_v47, 2 }
  0x51   : > { %589 = vrot.lane.b32.xlu0 %v2921_v4, %s2537_s20  ;;  %v465_v4 = vrot.slane %v2730_v55, 2 }
  0x54   : > { %595 = vrot.lane.b32.xlu1 %v2929_v51, %s2537_s20  ;;  %v438_v51 = vrot.slane %v2616_v11, 2 }
  0x55   : > { %593 = vrot.lane.b32.xlu0 %v2934_v33, %s2537_s20  ;;  %v2954_v33 = vsel %vm426_vm1, %v432_v44, %v433_v6  ;;  %v442_v6 = vrot.slane %v2646_v24, 2  ;;  %v450_v44 = vrot.slane %v2664_v31, 2 }
  0x56   : > { %v2962_v43 = vsel %vm426_vm1, %v438_v51, %v440_v60  ;;  %v2967_v14 = vsel %vm426_vm1, %v437_v7, %v438_v51  ;;  %v447_v51 = vrot.slane %v2667_v32, 2  ;;  %v453_v7 = vrot.slane %v2683_v38, 2 }
  0x58   : > { %631 = vrot.lane.b32.xlu1 %v431_v20, %s2538_s21  ;;  %v445_v20 = vrot.slane %v2643_v23, 2  ;;  %v2980_v23 = vsel %vm426_vm1, %v442_v6, %v443_v49 }
  0x59   : > { %629 = vrot.lane.b32.xlu0 %v429_v10, %s2538_s21  ;;  %v448_v10 = vrot.slane %v2661_v30, 2 }
  0x5a   : > { %v2975_v5 = vsel %vm426_vm1, %v443_v49, %v445_v20  ;;  %v455_v20 = vrot.slane %v2686_v39, 2  ;;  %v452_v49 = vrot.slane %v2689_v40, 2 }
  0x5b   : > { %v2988_v60 = vsel %vm426_vm1, %v448_v10, %v450_v44  ;;  %v2993_v31 = vsel %vm426_vm1, %v447_v51, %v448_v10  ;;  %v458_v44 = vrot.slane %v2705_v46, 2  ;;  %v457_v10 = vrot.slane %v2711_v48, 2 }
  0x5c   : > { %635 = vrot.lane.b32.xlu1 %v2949_v9, %s2538_s21  ;;  %v3001_v6 = vsel %vm426_vm1, %v453_v7, %v455_v20  ;;  %v3006_v39 = vsel %vm426_vm1, %v452_v49, %v453_v7  ;;  %v463_v20 = vrot.slane %v2727_v54, 2  ;;  %v462_v7 = vrot.slane %v2733_v56, 2 }
  0x5d   : > { %633 = vrot.lane.b32.xlu0 %v2954_v33, %s2538_s21  ;;  %v3014_v51 = vsel %vm426_vm1, %v458_v44, %v460_v21  ;;  %v3019_v47 = vsel %vm426_vm1, %v457_v10, %v458_v44  ;;  %v468_v21 = vrot.slane %v2749_v62, 2  ;;  %v467_v44 = vrot.slane %v2755_v3, 2 }
  0x5e   : > { %4457 = vst [vmem:[#allocation28_spill] sm:$0xff] %v3014_v51  ;;  %v3027_v49 = vsel %vm426_vm1, %v463_v20, %v465_v4  ;;  %v3032_v55 = vsel %vm426_vm1, %v462_v7, %v463_v20  ;;  %v473_v4 = vrot.slane %v2771_v16, 2  ;;  %v472_v20 = vrot.slane %v2777_v19, 2 }
  0x5f   : > { %4458 = vst [vmem:[#allocation29_spill] sm:$0xff] %v3027_v49  ;;  %4459 = vst [vmem:[#allocation30_spill] sm:$0xff] %v3032_v55  ;;  %v3040_v10 = vsel %vm426_vm1, %v468_v21, %v470_v2  ;;  %v3045_v63 = vsel %vm426_vm1, %v467_v44, %v468_v21  ;;  %v478_v2 = vrot.slane %v2793_v34, 2  ;;  %v477_v21 = vrot.slane %v2799_v37, 2 }
  0x60   : > { %639 = vrot.lane.b32.xlu1 %v2962_v43, %s2538_s21  ;;  %4460 = vst [vmem:[#allocation31_spill] sm:$0xff] %v3040_v10  ;;  %4461 = vst [vmem:[#allocation32_spill] sm:$0xff] %v3045_v63 }
  0x61   : > { %637 = vrot.lane.b32.xlu0 %v2967_v14, %s2538_s21 }
  0x64   : > { %643 = vrot.lane.b32.xlu1 %v2975_v5, %s2538_s21 }
  0x65   : > { %641 = vrot.lane.b32.xlu0 %v2980_v23, %s2538_s21 }
  0x68   : > { %647 = vrot.lane.b32.xlu1 %v2988_v60, %s2538_s21 }
  0x69   : > { %645 = vrot.lane.b32.xlu0 %v2993_v31, %s2538_s21 }
  0x6c   : > { %651 = vrot.lane.b32.xlu1 %v3001_v6, %s2538_s21 }
  0x6d   : > { %649 = vrot.lane.b32.xlu0 %v3006_v39, %s2538_s21 }
  0x70   : > { %655 = vrot.lane.b32.xlu1 %v3014_v51, %s2538_s21  ;;  %v475_v51 = vrot.slane %v2774_v18, 2  ;;  %v3058_v18 = vsel %vm426_vm1, %v472_v20, %v473_v4 }
  0x71   : > { %653 = vrot.lane.b32.xlu0 %v3019_v47, %s2538_s21  ;;  %4463 = vst [vmem:[#allocation34_spill] sm:$0xff] %v3058_v18 }
  0x72   : > { %v3053_v7 = vsel %vm426_vm1, %v473_v4, %v475_v51  ;;  %v483_v51 = vrot.slane %v2815_v53, 2  ;;  %v482_v4 = vrot.slane %v2821_v59, 2 }
  0x73   : > { %4462 = vst [vmem:[#allocation33_spill] sm:$0xff] %v3053_v7 }
  0x74   : > { %659 = vrot.lane.b32.xlu1 %v3027_v49, %s2538_s21  ;;  %v480_v49 = vrot.slane %v2796_v35, 2  ;;  %v3071_v35 = vsel %vm426_vm1, %v477_v21, %v478_v2 }
  0x75   : > { %657 = vrot.lane.b32.xlu0 %v3032_v55, %s2538_s21  ;;  %4465 = vst [vmem:[#allocation36_spill] sm:$0xff] %v3071_v35 }
  0x76   : > { %v3066_v44 = vsel %vm426_vm1, %v478_v2, %v480_v49  ;;  %v488_v49 = vrot.slane %v2837_v26, 2  ;;  %v487_v2 = vrot.slane %v2843_v42, 2 }
  0x77   : > { %4464 = vst [vmem:[#allocation35_spill] sm:$0xff] %v3066_v44 }
  0x78   : > { %663 = vrot.lane.b32.xlu1 %v3040_v10, %s2538_s21  ;;  %v485_v10 = vrot.slane %v2818_v58, 2  ;;  %v3084_v58 = vsel %vm426_vm1, %v482_v4, %v483_v51 }
  0x79   : > { %661 = vrot.lane.b32.xlu0 %v3045_v63, %s2538_s21  ;;  %4467 = vst [vmem:[#allocation38_spill] sm:$0xff] %v3084_v58 }
  0x7a   : > { %v3079_v20 = vsel %vm426_vm1, %v483_v51, %v485_v10  ;;  %v493_v10 = vrot.slane %v2859_v27, 2  ;;  %v492_v51 = vrot.slane %v2865_v13, 2 }
  0x7b   : > { %4466 = vst [vmem:[#allocation37_spill] sm:$0xff] %v3079_v20 }
  0x7c   : > { %667 = vrot.lane.b32.xlu1 %v3053_v7, %s2538_s21  ;;  %v490_v7 = vrot.slane %v2840_v29, 2  ;;  %v3097_v29 = vsel %vm426_vm1, %v487_v2, %v488_v49 }
  0x7d   : > { %665 = vrot.lane.b32.xlu0 %v3058_v18, %s2538_s21  ;;  %4469 = vst [vmem:[#allocation40_spill] sm:$0xff] %v3097_v29 }
  0x7e   : > { %v3092_v21 = vsel %vm426_vm1, %v488_v49, %v490_v7  ;;  %v498_v7 = vrot.slane %v2881_v57, 2  ;;  %v497_v49 = vrot.slane %v2887_v50, 2 }
  0x7f   : > { %4468 = vst [vmem:[#allocation39_spill] sm:$0xff] %v3092_v21 }
  0x80   : > { %671 = vrot.lane.b32.xlu1 %v3066_v44, %s2538_s21  ;;  %v495_v44 = vrot.slane %v2862_v61, 2  ;;  %v3112_v61 = vsel %vm426_vm1, %v492_v51, %v493_v10  ;;  %v502_v51 = vrot.slane %v2909_v8, 2 }
  0x81   : > { %669 = vrot.lane.b32.xlu0 %v3071_v35, %s2538_s21  ;;  %4472 = vst [vmem:[#allocation43_spill] sm:$0xff] %v3112_v61 }
  0x82   : > { %v3105_v4 = vsel %vm426_vm1, %v493_v10, %v495_v44  ;;  %v3129_v10 = vsel %vm426_vm1, %v497_v49, %v498_v7 }
  0x83   : > { %4470 = vst [vmem:[#allocation41_spill] sm:$0xff] %v3105_v4  ;;  %4476 = vst [vmem:[#allocation47_spill] sm:$0xff] %v3129_v10 }
  0x84   : > { %675 = vrot.lane.b32.xlu1 %v3079_v20, %s2538_s21  ;;  %v500_v20 = vrot.slane %v2884_v45, 2  ;;  %v503_v45 = vrot.slane %v2903_v52, 2 }
  0x85   : > { %673 = vrot.lane.b32.xlu0 %v3084_v58, %s2538_s21 }
  0x86   : > { %v3122_v44 = vsel %vm426_vm1, %v498_v7, %v500_v20 }
  0x87   : > { %4474 = vst [vmem:[#allocation45_spill] sm:$0xff] %v3122_v44 }
  0x88   : > { %679 = vrot.lane.b32.xlu1 %v3092_v21, %s2538_s21  ;;  %v505_v21 = vrot.slane %v2906_v41, 2  ;;  %v3144_v41 = vsel %vm426_vm1, %v502_v51, %v503_v45 }
  0x89   : > { %677 = vrot.lane.b32.xlu0 %v3097_v29, %s2538_s21  ;;  %4480 = vst [vmem:[#allocation51_spill] sm:$0xff] %v3144_v41 }
  0x8a   : > { %v3109_v58 = vpop.permute.xlu1 %537  ;;  %v3139_v20 = vsel %vm426_vm1, %v503_v45, %v505_v21 }
  0x8b   : > { %4471 = vst [vmem:[#allocation42_spill] sm:$0xff] %v3109_v58  ;;  %v3115_v2 = vpop.permute.xlu0 %533  ;;  %4478 = vst [vmem:[#allocation49_spill] sm:$0xff] %v3139_v20 }
  0x8c   : > { %4473 = vst [vmem:[#allocation44_spill] sm:$0xff] %v3115_v2  ;;  %683 = vrot.lane.b32.xlu1 %v3105_v4, %s2538_s21 }
  0x8d   : > { %681 = vrot.lane.b32.xlu0 %v3112_v61, %s2538_s21 }
  0x8e   : > { %v3126_v29 = vpop.permute.xlu1 %539 }
  0x8f   : > { %4475 = vst [vmem:[#allocation46_spill] sm:$0xff] %v3126_v29  ;;  %v3132_v35 = vpop.permute.xlu0 %535  ;;  %v293_v29 = vld [vmem:[%s4339_s1 + $0x8] sm:$0xff] }
  0x90   : > { %4477 = vst [vmem:[#allocation48_spill] sm:$0xff] %v3132_v35  ;;  %687 = vrot.lane.b32.xlu1 %v3122_v44, %s2538_s21 }
  0x91   : > { %685 = vrot.lane.b32.xlu0 %v3129_v10, %s2538_s21 }
  0x92   : > { %v3141_v4 = vpop.permute.xlu1 %543 }
  0x93   : > { %4479 = vst [vmem:[#allocation50_spill] sm:$0xff] %v3141_v4  ;;  %v3146_v7 = vpop.permute.xlu0 %541 }
  0x94   : > { %4481 = vst [vmem:[#allocation52_spill] sm:$0xff] %v3146_v7  ;;  %691 = vrot.lane.b32.xlu1 %v3139_v20, %s2538_s21  ;;  %v292_v7 = vld [vmem:[%s4339_s1] sm:$0xff] }
  0x95   : > { %689 = vrot.lane.b32.xlu0 %v3144_v41, %s2538_s21  ;;  %v2447_v63 = vpack.c.bf16 %v293_v29, %v292_v7 }
  0x96   : > { %v3152_v49 = vpop.permute.xlu1 %547 }
  0x97   : > { %v3154_v44 = vpop.permute.xlu0 %545  ;;  %2448 = vmatprep.subr.bf16.mxu0 %v2447_v63  ;;  %2455 = vmatprep.subr.bf16.mxu1 %v2447_v63 }
  0x98   : > { %4482 = vst [vmem:[#allocation53_spill] sm:$0xff] %v3154_v44  ;;  %727 = vrot.lane.b32.xlu1 %v2596_v1, %s2539_s22  ;;  %2450 = vmatpush3.bf16.msra.mxu0 %v2447_v63 }
  0x99   : > { %725 = vrot.lane.b32.xlu0 %v2593_v0, %s2539_s22  ;;  %2458 = vmatpush3.bf16.msra.mxu1 %v2447_v63 }
  0x9a   : > { %v3160_v21 = vpop.permute.xlu1 %551 }
  0x9b   : > { %v3162_v45 = vpop.permute.xlu0 %549 }
  0x9c   : > { %731 = vrot.lane.b32.xlu1 %v2616_v11, %s2539_s22 }
  0x9d   : > { %729 = vrot.lane.b32.xlu0 %v2626_v15, %s2539_s22 }
  0x9e   : > { %v3168_v51 = vpop.permute.xlu1 %555 }
  0x9f   : > { %v3170_v20 = vpop.permute.xlu0 %553 }
  0xa0   : > { %735 = vrot.lane.b32.xlu1 %v2640_v22, %s2539_s22 }
  0xa1   : > { %733 = vrot.lane.b32.xlu0 %v2646_v24, %s2539_s22 }
  0xa2   : > { %v3176_v0 = vpop.permute.xlu1 %559 }
  0xa3   : > { %v3178_v1 = vpop.permute.xlu0 %557 }
  0xa4   : > { %739 = vrot.lane.b32.xlu1 %v2661_v30, %s2539_s22 }
  0xa5   : > { %737 = vrot.lane.b32.xlu0 %v2667_v32, %s2539_s22 }
  0xa6   : > { %v3184_v41 = vpop.permute.xlu1 %563 }
  0xa7   : > { %v3186_v10 = vpop.permute.xlu0 %561 }
  0xa8   : > { %743 = vrot.lane.b32.xlu1 %v2683_v38, %s2539_s22 }
  0xa9   : > { %741 = vrot.lane.b32.xlu0 %v2689_v40, %s2539_s22 }
  0xaa   : > { %v3192_v61 = vpop.permute.xlu1 %567 }
  0xab   : > { %v3194_v44 = vpop.permute.xlu0 %565 }
  0xac   : > { %747 = vrot.lane.b32.xlu1 %v2705_v46, %s2539_s22 }
  0xad   : > { %745 = vrot.lane.b32.xlu0 %v2711_v48, %s2539_s22 }
  0xae   : > { %v3200_v4 = vpop.permute.xlu1 %571 }
  0xaf   : > { %v3202_v18 = vpop.permute.xlu0 %569 }
  0xb0   : > { %823 = vrot.lane.b32.xlu1 %v2633_v17, %s2540_s23  ;;  %v294_v17 = vld [vmem:[%s4339_s1 + $0x10] sm:$0xff] }
  0xb1   : > { %821 = vrot.lane.b32.xlu0 %v2619_v12, %s2540_s23  ;;  %v295_v12 = vld [vmem:[%s4339_s1 + $0x18] sm:$0xff] }
  0xb2   : > { %v3214_v58 = vpop.permute.xlu1 %575  ;;  %v2451_v29 = vpack.c.bf16 %v295_v12, %v294_v17 }
  0xb3   : > { %v3216_v35 = vpop.permute.xlu0 %573 }
  0xb4   : > { %919 = vrot.lane.b32.xlu1 %v2949_v9, %s2541_s28  ;;  %2452 = vmatprep.subr.bf16.mxu0 %v2451_v29 }
  0xb5   : > { %917 = vrot.lane.b32.xlu0 %v2954_v33, %s2541_s28  ;;  %2456 = vmatprep.subr.bf16.mxu1 %v2451_v29  ;;  %v296_v33 = vld [vmem:[%s4339_s1 + $0x20] sm:$0xf] }
  0xb6   : > { %v3228_v7 = vpop.permute.xlu1 %579  ;;  %2454 = vmatpush3.bf16.msra.mxu0 %v2451_v29  ;;  %2459 = vmatpush3.bf16.msra.mxu1 %v2451_v29 }
  0xb7   : > { %v3230_v2 = vpop.permute.xlu0 %577  ;;  %2397 = vmatprep.subr.msk.mxu0 %vm1662_vm2, %v296_v33  ;;  %2457 = vmatprep.subr.msk.mxu1 %vm1662_vm2, %v296_v33 }
  0xb8   : > { %1015 = vrot.lane.b32.xlu1 %v2616_v11, %s2542_s6 }
  0xb9   : > { %1013 = vrot.lane.b32.xlu0 %v2626_v15, %s2542_s6 }
  0xba   : > { %v3239_v9 = vpop.permute.xlu1 %583  ;;  %2398 = vmatpush3.msk.msra.mxu0 %vm1662_vm2, %v296_v33  ;;  %2460 = vmatpush3.msk.msra.mxu1 %vm1662_vm2, %v296_v33 }
  0xbb   : > { %v3241_v63 = vpop.permute.xlu0 %581 }
  0xbc   : > { %825 = vrot.lane.b32.xlu1 %v2657_v28, %s2540_s23 }
  0xbd   : > { %1109 = vrot.lane.b32.xlu0 %v2657_v28, %s2543_s9 }
  0xbe   : > { %v3247_v11 = vpop.permute.xlu1 %587 }
  0xbf   : > { %v3249_v15 = vpop.permute.xlu0 %585 }
  0xc0   : > { %1205 = vrot.lane.b32.xlu1 %v2967_v14, %s2544_s10 }
  0xc1   : > { %1111 = vrot.lane.b32.xlu0 %v2652_v25, %s2543_s9 }
  0xc2   : > { %v3255_v17 = vpop.permute.xlu1 %591 }
  0xc3   : > { %v3257_v12 = vpop.permute.xlu0 %589 }
  0xc4   : > { %921 = vrot.lane.b32.xlu1 %v2967_v14, %s2541_s28 }
  0xc5   : > { %827 = vrot.lane.b32.xlu0 %v2652_v25, %s2540_s23 }
  0xc6   : > { %v3263_v28 = vpop.permute.xlu1 %595 }
  0xc7   : > { %v3265_v29 = vpop.permute.xlu0 %593 }
  0xc8   : > { %923 = vrot.lane.b32.xlu1 %v2962_v43, %s2541_s28 }
  0xc9   : > { %1207 = vrot.lane.b32.xlu0 %v2962_v43, %s2544_s10 }
  0xca   : > { %v3271_v33 = vpop.permute.xlu1 %631 }
  0xcb   : > { %4483 = vst [vmem:[#allocation54_spill] sm:$0xff] %v3271_v33  ;;  %v3273_v55 = vpop.permute.xlu0 %629 }
  0xcc   : > { %4484 = vst [vmem:[#allocation55_spill] sm:$0xff] %v3273_v55  ;;  %1019 = vrot.lane.b32.xlu1 %v2640_v22, %s2542_s6 }
  0xcd   : > { %1017 = vrot.lane.b32.xlu0 %v2646_v24, %s2542_s6  ;;  %v4489_v24 = vld [vmem:[#allocation3_spill] sm:$0xff] }
  0xce   : > { %v3279_v25 = vpop.permute.xlu1 %635 }
  0xcf   : > { %4485 = vst [vmem:[#allocation56_spill] sm:$0xff] %v3279_v25  ;;  %v3281_v14 = vpop.permute.xlu0 %633  ;;  %v1309_v25 = vsel %vm1301_vm3, %v2640_v22, %v3152_v49  ;;  %v1310_v22 = vsel %vm1301_vm3, %v2667_v32, %v3162_v45  ;;  %v1312_v45 = vsel %vm1301_vm3, %v2689_v40, %v3170_v20  ;;  %v1314_v20 = vsel %vm1301_vm3, %v2711_v48, %v3178_v1 }
  0xd0   : > { %4486 = vst [vmem:[#allocation57_spill] sm:$0xff] %v3281_v14  ;;  %829 = vrot.lane.b32.xlu1 %v2679_v36, %s2540_s23  ;;  %v1316_v1 = vsel %vm1301_vm3, %v2733_v56, %v3186_v10  ;;  %v1318_v10 = vsel %vm1301_vm3, %v2755_v3, %v3194_v44  ;;  %v1320_v44 = vsel %vm1301_vm3, %v2777_v19, %v3202_v18 }
  0xd1   : > { %1113 = vrot.lane.b32.xlu0 %v2679_v36, %s2543_s9  ;;  %v1322_v18 = vsel %vm1301_vm3, %v2799_v37, %v3216_v35  ;;  %v1324_v37 = vsel %vm1301_vm3, %v2821_v59, %v3230_v2  ;;  %v1326_v59 = vsel %vm1301_vm3, %v2843_v42, %v3241_v63  ;;  %v1328_v42 = vsel %vm1301_vm3, %v2865_v13, %v3249_v15 }
  0xd2   : > { %v3287_v43 = vpop.permute.xlu1 %639  ;;  %v1330_v13 = vsel %vm1301_vm3, %v2887_v50, %v3257_v12  ;;  %v1332_v50 = vsel %vm1301_vm3, %v2909_v8, %v3265_v29 }
  0xd3   : > { %4487 = vst [vmem:[#allocation58_spill] sm:$0xff] %v3287_v43  ;;  %v3289_v33 = vpop.permute.xlu0 %637  ;;  %v1311_v43 = vsel %vm1301_vm3, %v2661_v30, %v3160_v21 }
  0xd4   : > { %4488 = vst [vmem:[#allocation59_spill] sm:$0xff] %v3289_v33  ;;  %1209 = vrot.lane.b32.xlu1 %v2980_v23, %s2544_s10 }
  0xd5   : > { %1115 = vrot.lane.b32.xlu0 %v4489_v24, %s2543_s9 }
  0xd6   : > { %v644_v14 = vpop.permute.xlu1 %643 }
  0xd7   : > { %v3299_v55 = vsel %vm1334_vm4, %v1309_v25, %v644_v14  ;;  %v3301_v36 = vpop.permute.xlu0 %641 }
  0xd8   : > { %925 = vrot.lane.b32.xlu1 %v2980_v23, %s2541_s28  ;;  %v1313_v23 = vsel %vm1301_vm3, %v2683_v38, %v3168_v51 }
  0xd9   : > { %831 = vrot.lane.b32.xlu0 %v4489_v24, %s2540_s23 }
  0xda   : > { %v648_v33 = vpop.permute.xlu1 %647 }
  0xdb   : > { %v3314_v49 = vsel %vm1334_vm4, %v1311_v43, %v648_v33  ;;  %v646_v25 = vpop.permute.xlu0 %645 }
  0xdc   : > { %v3317_v14 = vsel %vm1334_vm4, %v1310_v22, %v646_v25  ;;  %927 = vrot.lane.b32.xlu1 %v2975_v5, %s2541_s28 }
  0xdd   : > { %1211 = vrot.lane.b32.xlu0 %v2975_v5, %s2544_s10  ;;  %v1315_v5 = vsel %vm1301_vm3, %v2705_v46, %v3176_v0 }
  0xde   : > { %v652_v21 = vpop.permute.xlu1 %651 }
  0xdf   : > { %v3330_v33 = vsel %vm1334_vm4, %v1313_v23, %v652_v21  ;;  %v650_v43 = vpop.permute.xlu0 %649 }
  0xe0   : > { %v3333_v24 = vsel %vm1334_vm4, %v1312_v45, %v650_v43  ;;  %1023 = vrot.lane.b32.xlu1 %v2661_v30, %s2542_s6  ;;  %v4490_v30 = vld [vmem:[#allocation5_spill] sm:$0xff] }
  0xe1   : > { %1021 = vrot.lane.b32.xlu0 %v2667_v32, %s2542_s6  ;;  %v1317_v32 = vsel %vm1301_vm3, %v2727_v54, %v3184_v41  ;;  %v1319_v41 = vsel %vm1301_vm3, %v2749_v62, %v3192_v61  ;;  %v1321_v61 = vsel %vm1301_vm3, %v2771_v16, %v3200_v4 }
  0xe2   : > { %v656_v51 = vpop.permute.xlu1 %655 }
  0xe3   : > { %v3346_v22 = vsel %vm1334_vm4, %v1315_v5, %v656_v51  ;;  %v654_v25 = vpop.permute.xlu0 %653  ;;  %v4491_v5 = vld [vmem:[#allocation4_spill] sm:$0xff] }
  0xe4   : > { %v3349_v23 = vsel %vm1334_vm4, %v1314_v20, %v654_v25  ;;  %833 = vrot.lane.b32.xlu1 %v4490_v30, %s2540_s23 }
  0xe5   : > { %1117 = vrot.lane.b32.xlu0 %v4490_v30, %s2543_s9 }
  0xe6   : > { %v660_v0 = vpop.permute.xlu1 %659 }
  0xe7   : > { %v3362_v21 = vsel %vm1334_vm4, %v1317_v32, %v660_v0  ;;  %v658_v45 = vpop.permute.xlu0 %657 }
  0xe8   : > { %v3365_v43 = vsel %vm1334_vm4, %v1316_v1, %v658_v45  ;;  %1213 = vrot.lane.b32.xlu1 %v2993_v31, %s2544_s10 }
  0xe9   : > { %1119 = vrot.lane.b32.xlu0 %v4491_v5, %s2543_s9 }
  0xea   : > { %v664_v51 = vpop.permute.xlu1 %663 }
  0xeb   : > { %v3378_v20 = vsel %vm1334_vm4, %v1319_v41, %v664_v51  ;;  %v662_v25 = vpop.permute.xlu0 %661 }
  0xec   : > { %v3381_v30 = vsel %vm1334_vm4, %v1318_v10, %v662_v25  ;;  %929 = vrot.lane.b32.xlu1 %v2993_v31, %s2541_s28  ;;  %v1323_v31 = vsel %vm1301_vm3, %v2793_v34, %v3214_v58  ;;  %v1325_v34 = vsel %vm1301_vm3, %v2815_v53, %v3228_v7 }
  0xed   : > { %835 = vrot.lane.b32.xlu0 %v4491_v5, %s2540_s23 }
  0xee   : > { %v668_v32 = vpop.permute.xlu1 %667 }
  0xef   : > { %v3394_v0 = vsel %vm1334_vm4, %v1321_v61, %v668_v32  ;;  %v666_v1 = vpop.permute.xlu0 %665  ;;  %v4493_v61 = vld [vmem:[#allocation6_spill] sm:$0xff] }
  0xf0   : > { %v3397_v45 = vsel %vm1334_vm4, %v1320_v44, %v666_v1  ;;  %931 = vrot.lane.b32.xlu1 %v2988_v60, %s2541_s28 }
  0xf1   : > { %1215 = vrot.lane.b32.xlu0 %v2988_v60, %s2544_s10 }
  0xf2   : > { %v672_v4 = vpop.permute.xlu1 %671 }
  0xf3   : > { %v3410_v5 = vsel %vm1334_vm4, %v1323_v31, %v672_v4  ;;  %v670_v41 = vpop.permute.xlu0 %669 }
  0xf4   : > { %v3413_v51 = vsel %vm1334_vm4, %v1322_v18, %v670_v41  ;;  %1027 = vrot.lane.b32.xlu1 %v2683_v38, %s2542_s6  ;;  %v4492_v38 = vld [vmem:[#allocation7_spill] sm:$0xff] }
  0xf5   : > { %1025 = vrot.lane.b32.xlu0 %v2689_v40, %s2542_s6  ;;  %v1327_v40 = vsel %vm1301_vm3, %v2837_v26, %v3239_v9  ;;  %v1329_v26 = vsel %vm1301_vm3, %v2859_v27, %v3247_v11  ;;  %v1331_v27 = vsel %vm1301_vm3, %v2881_v57, %v3255_v17  ;;  %v1333_v57 = vsel %vm1301_vm3, %v2903_v52, %v3263_v28  ;;  %v4494_v28 = vld [vmem:[#allocation9_spill] sm:$0xff] }
  0xf6   : > { %v676_v60 = vpop.permute.xlu1 %675 }
  0xf7   : > { %v3426_v35 = vsel %vm1334_vm4, %v1325_v34, %v676_v60  ;;  %v674_v58 = vpop.permute.xlu0 %673  ;;  %v4496_v60 = vld [vmem:[#allocation28_spill] sm:$0xff] }
  0xf8   : > { %v3429_v10 = vsel %vm1334_vm4, %v1324_v37, %v674_v58  ;;  %837 = vrot.lane.b32.xlu1 %v4492_v38, %s2540_s23 }
  0xf9   : > { %1121 = vrot.lane.b32.xlu0 %v4492_v38, %s2543_s9 }
  0xfa   : > { %v680_v53 = vpop.permute.xlu1 %679 }
  0xfb   : > { %v3442_v2 = vsel %vm1334_vm4, %v1327_v40, %v680_v53  ;;  %v678_v7 = vpop.permute.xlu0 %677  ;;  %v4497_v40 = vld [vmem:[#allocation11_spill] sm:$0xff] }
  0xfc   : > { %v3445_v25 = vsel %vm1334_vm4, %v1326_v59, %v678_v7  ;;  %1217 = vrot.lane.b32.xlu1 %v3006_v39, %s2544_s10 }
  0xfd   : > { %1123 = vrot.lane.b32.xlu0 %v4493_v61, %s2543_s9 }
  0xfe   : > { %v684_v9 = vpop.permute.xlu1 %683 }
  0xff   : > { %v3458_v63 = vsel %vm1334_vm4, %v1329_v26, %v684_v9  ;;  %v682_v32 = vpop.permute.xlu0 %681  ;;  %v4499_v26 = vld [vmem:[#allocation10_spill] sm:$0xff] }
 0x100   : > { %v3461_v44 = vsel %vm1334_vm4, %v1328_v42, %v682_v32  ;;  %933 = vrot.lane.b32.xlu1 %v3006_v39, %s2541_s28  ;;  %v4500_v32 = vld [vmem:[#allocation44_spill] sm:$0xff] }
 0x101   : > { %839 = vrot.lane.b32.xlu0 %v4493_v61, %s2540_s23  ;;  %v4498_v61 = vld [vmem:[#allocation30_spill] sm:$0xff] }
 0x102   : > { %v688_v11 = vpop.permute.xlu1 %687 }
 0x103   : > { %v3474_v15 = vsel %vm1334_vm4, %v1331_v27, %v688_v11  ;;  %v686_v1 = vpop.permute.xlu0 %685  ;;  %v4501_v27 = vld [vmem:[#allocation2_spill] sm:$0xff] }
 0x104   : > { %v3477_v31 = vsel %vm1334_vm4, %v1330_v13, %v686_v1  ;;  %935 = vrot.lane.b32.xlu1 %v3001_v6, %s2541_s28  ;;  %v1302_v11 = vsel %vm1301_vm3, %v4501_v27, %v4500_v32 }
 0x105   : > { %1219 = vrot.lane.b32.xlu0 %v3001_v6, %s2544_s10 }
 0x106   : > { %v692_v39 = vpop.permute.xlu1 %691 }
 0x107   : > { %v3490_v17 = vsel %vm1334_vm4, %v1333_v57, %v692_v39  ;;  %v690_v12 = vpop.permute.xlu0 %689 }
 0x108   : > { %v3493_v4 = vsel %vm1334_vm4, %v1332_v50, %v690_v12  ;;  %1031 = vrot.lane.b32.xlu1 %v2705_v46, %s2542_s6  ;;  %v4495_v46 = vld [vmem:[#allocation8_spill] sm:$0xff] }
 0x109   : > { %1029 = vrot.lane.b32.xlu0 %v2711_v48, %s2542_s6 }
 0x10a   : > { %v3499_v6 = vpop.permute.xlu1 %727 }
 0x10b   : > { %v726_v52 = vpop.permute.xlu0 %725 }
 0x10c   : > { %841 = vrot.lane.b32.xlu1 %v4494_v28, %s2540_s23 }
 0x10d   : > { %1125 = vrot.lane.b32.xlu0 %v4494_v28, %s2543_s9  ;;  %v4503_v28 = vld [vmem:[#allocation29_spill] sm:$0xff] }
 0x10e   : > { %v3505_v8 = vpop.permute.xlu1 %731 }
 0x10f   : > { %v3507_v29 = vpop.permute.xlu0 %729 }
 0x110   : > { %1221 = vrot.lane.b32.xlu1 %v3019_v47, %s2544_s10 }
 0x111   : > { %1127 = vrot.lane.b32.xlu0 %v4495_v46, %s2543_s9 }
 0x112   : > { %v3513_v48 = vpop.permute.xlu1 %735 }
 0x113   : > { %v3515_v18 = vpop.permute.xlu0 %733 }
 0x114   : > { %937 = vrot.lane.b32.xlu1 %v3019_v47, %s2541_s28 }
 0x115   : > { %843 = vrot.lane.b32.xlu0 %v4495_v46, %s2540_s23 }
 0x116   : > { %v3521_v41 = vpop.permute.xlu1 %739 }
 0x117   : > { %v3523_v34 = vpop.permute.xlu0 %737 }
 0x118   : > { %939 = vrot.lane.b32.xlu1 %v4496_v60, %s2541_s28 }
 0x119   : > { %1223 = vrot.lane.b32.xlu0 %v4496_v60, %s2544_s10 }
 0x11a   : > { %v3529_v37 = vpop.permute.xlu1 %743 }
 0x11b   : > { %v3531_v58 = vpop.permute.xlu0 %741 }
 0x11c   : > { %749 = vrot.lane.b32.xlu1 %v2733_v56, %s2539_s22 }
 0x11d   : > { %1033 = vrot.lane.b32.xlu0 %v2733_v56, %s2542_s6 }
 0x11e   : > { %v3537_v47 = vpop.permute.xlu1 %747 }
 0x11f   : > { %v3539_v38 = vpop.permute.xlu0 %745 }
 0x120   : > { %1129 = vrot.lane.b32.xlu1 %v4497_v40, %s2543_s9 }
 0x121   : > { %1035 = vrot.lane.b32.xlu0 %v2727_v54, %s2542_s6 }
 0x122   : > { %v824_v53 = vpop.permute.xlu1 %823 }
 0x123   : > { %v822_v59 = vpop.permute.xlu0 %821 }
 0x124   : > { %845 = vrot.lane.b32.xlu1 %v4497_v40, %s2540_s23 }
 0x125   : > { %751 = vrot.lane.b32.xlu0 %v2727_v54, %s2539_s22  ;;  %v4502_v54 = vld [vmem:[#allocation55_spill] sm:$0xff] }
 0x126   : > { %v920_v7 = vpop.permute.xlu1 %919  ;;  %v1335_v13 = vsel %vm1334_vm4, %v1302_v11, %v4502_v54 }
 0x127   : > { %v918_v56 = vpop.permute.xlu0 %917  ;;  %v1368_v1 = vsel %vm1367_vm5, %v1335_v13, %v726_v52 }
 0x128   : > { %1225 = vrot.lane.b32.xlu1 %v4498_v61, %s2544_s10  ;;  %v1401_v39 = vsel %vm1400_vm6, %v1368_v1, %v822_v59  ;;  %v4506_v1 = vld [vmem:[#allocation13_spill] sm:$0xff] }
 0x129   : > { %1131 = vrot.lane.b32.xlu0 %v4499_v26, %s2543_s9  ;;  %v1434_v12 = vsel %vm1433_vm7, %v1401_v39, %v918_v56  ;;  %v2495_v56 = vld [vmem:[%s2590_s19 + $0x8] sm:$0xff] }
 0x12a   : > { %v1016_v9 = vpop.permute.xlu1 %1015 }
 0x12b   : > { %v1014_v42 = vpop.permute.xlu0 %1013 }
 0x12c   : > { %941 = vrot.lane.b32.xlu1 %v4498_v61, %s2541_s28  ;;  %v1467_v46 = vsel %vm1466_vm8, %v1434_v12, %v1014_v42  ;;  %v4504_v61 = vld [vmem:[#allocation48_spill] sm:$0xff]  ;;  %v4505_v42 = vld [vmem:[#allocation54_spill] sm:$0xff] }
 0x12d   : > { %847 = vrot.lane.b32.xlu0 %v4499_v26, %s2540_s23  ;;  %v1303_v26 = vsel %vm1301_vm3, %v2495_v56, %v4504_v61  ;;  %v4510_v56 = vld [vmem:[#allocation12_spill] sm:$0xff] }
 0x12e   : > { %v826_v57 = vpop.permute.xlu1 %825  ;;  %v1336_v32 = vsel %vm1334_vm4, %v1303_v26, %v4505_v42 }
 0x12f   : > { %v1110_v50 = vpop.permute.xlu0 %1109  ;;  %v1369_v11 = vsel %vm1367_vm5, %v1336_v32, %v3499_v6 }
 0x130   : > { %943 = vrot.lane.b32.xlu1 %v4503_v28, %s2541_s28  ;;  %v1500_v52 = vsel %vm1499_vm9, %v1467_v46, %v1110_v50  ;;  %v1402_v13 = vsel %vm1400_vm6, %v1369_v11, %v824_v53  ;;  %v2496_v46 = vld [vmem:[%s2590_s19 + $0x18] sm:$0xff] }
 0x131   : > { %1227 = vrot.lane.b32.xlu0 %v4503_v28, %s2544_s10  ;;  %v1435_v39 = vsel %vm1433_vm7, %v1402_v13, %v920_v7 }
 0x132   : > { %v1206_v60 = vpop.permute.xlu1 %1205 }
 0x133   : > { %v1112_v40 = vpop.permute.xlu0 %1111  ;;  %v1533_v59 = vsel %vm1532_vm10, %v1500_v52, %v1206_v60  ;;  %v4507_v52 = vld [vmem:[#allocation42_spill] sm:$0xff]  ;;  %v4508_v60 = vld [vmem:[#allocation32_spill] sm:$0xff] }
 0x134   : > { %753 = vrot.lane.b32.xlu1 %v2755_v3, %s2539_s22  ;;  %2399 = vmatprep.mubr.msk.f32.mxu0 %vm1565_vm11, %v1533_v59 }
 0x135   : > { %1037 = vrot.lane.b32.xlu0 %v2755_v3, %s2542_s6  ;;  %v1468_v3 = vsel %vm1466_vm8, %v1435_v39, %v1016_v9  ;;  %v1304_v9 = vsel %vm1301_vm3, %v2496_v46, %v4507_v52 }
 0x136   : > { %v922_v27 = vpop.permute.xlu1 %921  ;;  %v1501_v12 = vsel %vm1499_vm9, %v1468_v3, %v1112_v40  ;;  %v4509_v40 = vld [vmem:[#allocation57_spill] sm:$0xff]  ;;  %v4511_v3 = vld [vmem:[#allocation31_spill] sm:$0xff] }
 0x137   : > { %v828_v54 = vpop.permute.xlu0 %827  ;;  %v1337_v59 = vsel %vm1334_vm4, %v1304_v9, %v4509_v40 }
 0x138   : > { %1133 = vrot.lane.b32.xlu1 %v4506_v1, %s2543_s9 }
 0x139   : > { %1039 = vrot.lane.b32.xlu0 %v2749_v62, %s2542_s6 }
 0x13a   : > { %v924_v50 = vpop.permute.xlu1 %923 }
 0x13b   : > { %v1208_v28 = vpop.permute.xlu0 %1207 }
 0x13c   : > { %v1534_v6 = vsel %vm1532_vm10, %v1501_v12, %v1208_v28  ;;  %849 = vrot.lane.b32.xlu1 %v4506_v1, %s2540_s23  ;;  %v4513_v28 = vld [vmem:[#allocation56_spill] sm:$0xff] }
 0x13d   : > { %755 = vrot.lane.b32.xlu0 %v2749_v62, %s2539_s22  ;;  %2400 = vmatmul.mubr.msk.f32.vlgmr.msra.gmra.mrb[0].mxu0 %vm1565_vm11, %v1534_v6  ;;  %v1370_v62 = vsel %vm1367_vm5, %v1337_v59, %v3507_v29 }
 0x13e   : > { %v1020_v53 = vpop.permute.xlu1 %1019  ;;  %v1403_v26 = vsel %vm1400_vm6, %v1370_v62, %v826_v57  ;;  %v2497_v57 = vld [vmem:[%s2590_s19 + $0x20] sm:$0xff] }
 0x13f   : > { %v1018_v7 = vpop.permute.xlu0 %1017  ;;  %v1436_v32 = vsel %vm1433_vm7, %v1403_v26, %v922_v27  ;;  %v4512_v27 = vld [vmem:[#allocation46_spill] sm:$0xff]  ;;  %v4514_v26 = vld [vmem:[#allocation15_spill] sm:$0xff] }
 0x140   : > { %1229 = vrot.lane.b32.xlu1 %v4508_v60, %s2544_s10  ;;  %v1469_v11 = vsel %vm1466_vm8, %v1436_v32, %v1018_v7  ;;  %v1305_v12 = vsel %vm1301_vm3, %v2497_v57, %v4512_v27  ;;  %v4516_v32 = vld [vmem:[#allocation59_spill] sm:$0xff]  ;;  %v4517_v57 = vld [vmem:[#allocation34_spill] sm:$0xff] }
 0x141   : > { %1135 = vrot.lane.b32.xlu0 %v4510_v56, %s2543_s9  ;;  %v1338_v6 = vsel %vm1334_vm4, %v1305_v12, %v4513_v28  ;;  %v4518_v12 = vld [vmem:[#allocation14_spill] sm:$0xff] }
 0x142   : > { %v830_v61 = vpop.permute.xlu1 %829  ;;  %v1371_v46 = vsel %vm1367_vm5, %v1338_v6, %v3505_v8 }
 0x143   : > { %v1114_v42 = vpop.permute.xlu0 %1113  ;;  %v1404_v9 = vsel %vm1400_vm6, %v1371_v46, %v828_v54 }
 0x144   : > { %945 = vrot.lane.b32.xlu1 %v4508_v60, %s2541_s28  ;;  %v1502_v13 = vsel %vm1499_vm9, %v1469_v11, %v1114_v42  ;;  %v1437_v60 = vsel %vm1433_vm7, %v1404_v9, %v924_v50  ;;  %v2498_v42 = vld [vmem:[%s2590_s19 + $0x30] sm:$0xff]  ;;  %v4520_v9 = vld [vmem:[#allocation58_spill] sm:$0xff] }
 0x145   : > { %851 = vrot.lane.b32.xlu0 %v4510_v56, %s2540_s23  ;;  %v1470_v40 = vsel %vm1466_vm8, %v1437_v60, %v1020_v53 }
 0x146   : > { %v1210_v1 = vpop.permute.xlu1 %1209 }
 0x147   : > { %v1535_v39 = vsel %vm1532_vm10, %v1502_v13, %v1210_v1  ;;  %v1116_v29 = vpop.permute.xlu0 %1115 }
 0x148   : > { %947 = vrot.lane.b32.xlu1 %v4511_v3, %s2541_s28  ;;  %2402 = vmatprep.mubr.msk.f32.mxu0 %vm1565_vm11, %v1535_v39  ;;  %v1503_v56 = vsel %vm1499_vm9, %v1470_v40, %v1116_v29 }
 0x149   : > { %1231 = vrot.lane.b32.xlu0 %v4511_v3, %s2544_s10 }
 0x14a   : > { %v926_v7 = vpop.permute.xlu1 %925 }
 0x14b   : > { %v832_v52 = vpop.permute.xlu0 %831 }
 0x14c   : > { %757 = vrot.lane.b32.xlu1 %v2777_v19, %s2539_s22 }
 0x14d   : > { %1041 = vrot.lane.b32.xlu0 %v2777_v19, %s2542_s6  ;;  %v4515_v19 = vld [vmem:[#allocation52_spill] sm:$0xff] }
 0x14e   : > { %v928_v59 = vpop.permute.xlu1 %927  ;;  %v1306_v53 = vsel %vm1301_vm3, %v2498_v42, %v4515_v19 }
 0x14f   : > { %v1212_v62 = vpop.permute.xlu0 %1211  ;;  %v1339_v11 = vsel %vm1334_vm4, %v1306_v53, %v4516_v32 }
 0x150   : > { %v1536_v8 = vsel %vm1532_vm10, %v1503_v56, %v1212_v62  ;;  %1137 = vrot.lane.b32.xlu1 %v4514_v26, %s2543_s9  ;;  %v1372_v13 = vsel %vm1367_vm5, %v1339_v11, %v3515_v18  ;;  %v2500_v11 = vld [vmem:[%s2590_s19 + $0xf0] sm:$0xff] }
 0x151   : > { %1043 = vrot.lane.b32.xlu0 %v2771_v16, %s2542_s6  ;;  %2403 = vmatmul.mubr.msk.f32.gmra.mrb[2].mxu0 %vm1565_vm11, %v1536_v8  ;;  %v1405_v39 = vsel %vm1400_vm6, %v1372_v13, %v830_v61  ;;  %v2499_v61 = vld [vmem:[%s2590_s19 + $0x38] sm:$0xff]  ;;  %v2501_v13 = vld [vmem:[%s2590_s19 + $0x48] sm:$0xff] }
 0x152   : > { %v1024_v54 = vpop.permute.xlu1 %1023  ;;  %v1438_v3 = vsel %vm1433_vm7, %v1405_v39, %v926_v7  ;;  %v4519_v7 = vld [vmem:[#allocation50_spill] sm:$0xff]  ;;  %v4522_v39 = vld [vmem:[#allocation53_spill] sm:$0xff] }
 0x153   : > { %v1022_v50 = vpop.permute.xlu0 %1021  ;;  %v1307_v46 = vsel %vm1301_vm3, %v2499_v61, %v4519_v7 }
 0x154   : > { %853 = vrot.lane.b32.xlu1 %v4514_v26, %s2540_s23  ;;  %v1471_v27 = vsel %vm1466_vm8, %v1438_v3, %v1022_v50  ;;  %v1340_v60 = vsel %vm1334_vm4, %v1307_v46, %v4520_v9  ;;  %v4521_v26 = vld [vmem:[#allocation33_spill] sm:$0xff] }
 0x155   : > { %759 = vrot.lane.b32.xlu0 %v2771_v16, %s2539_s22  ;;  %v1373_v56 = vsel %vm1367_vm5, %v1340_v60, %v3513_v48  ;;  %v1375_v60 = vsel %vm1367_vm5, %v3299_v55, %v3521_v41  ;;  %v4526_v41 = vld [vmem:[#allocation35_spill] sm:$0xff] }
 0x156   : > { %v834_v1 = vpop.permute.xlu1 %833  ;;  %v1406_v8 = vsel %vm1400_vm6, %v1373_v56, %v832_v52 }
 0x157   : > { %v1118_v29 = vpop.permute.xlu0 %1117  ;;  %v1439_v50 = vsel %vm1433_vm7, %v1406_v8, %v928_v59 }
 0x158   : > { %1233 = vrot.lane.b32.xlu1 %v4517_v57, %s2544_s10  ;;  %v1504_v28 = vsel %vm1499_vm9, %v1471_v27, %v1118_v29  ;;  %v1472_v42 = vsel %vm1466_vm8, %v1439_v50, %v1024_v54  ;;  %v1308_v29 = vsel %vm1301_vm3, %v2501_v13, %v4522_v39  ;;  %v4523_v54 = vld [vmem:[#allocation17_spill] sm:$0xff]  ;;  %v4527_v39 = vld [vmem:[#allocation19_spill] sm:$0xff] }
 0x159   : > { %1139 = vrot.lane.b32.xlu0 %v4518_v12, %s2543_s9  ;;  %v1341_v3 = vsel %vm1334_vm4, %v1308_v29, %v3301_v36 }
 0x15a   : > { %v1214_v16 = vpop.permute.xlu1 %1213  ;;  %v1374_v27 = vsel %vm1367_vm5, %v1341_v3, %v3523_v34  ;;  %v4524_v34 = vld [vmem:[#allocation36_spill] sm:$0xff] }
 0x15b   : > { %v1537_v6 = vsel %vm1532_vm10, %v1504_v28, %v1214_v16  ;;  %v1120_v18 = vpop.permute.xlu0 %1119  ;;  %v1407_v28 = vsel %vm1400_vm6, %v1374_v27, %v834_v1  ;;  %v4525_v1 = vld [vmem:[#allocation16_spill] sm:$0xff] }
 0x15c   : > { %949 = vrot.lane.b32.xlu1 %v4517_v57, %s2541_s28  ;;  %2405 = vmatprep.mubr.msk.f32.mxu0 %vm1565_vm11, %v1537_v6  ;;  %v1505_v53 = vsel %vm1499_vm9, %v1472_v42, %v1120_v18  ;;  %v2502_v57 = vld [vmem:[%s2590_s19 + $0xf8] sm:$0xff] }
 0x15d   : > { %855 = vrot.lane.b32.xlu0 %v4518_v12, %s2540_s23 }
 0x15e   : > { %v930_v40 = vpop.permute.xlu1 %929 }
 0x15f   : > { %v836_v62 = vpop.permute.xlu0 %835  ;;  %v1440_v6 = vsel %vm1433_vm7, %v1407_v28, %v930_v40 }
 0x160   : > { %951 = vrot.lane.b32.xlu1 %v4521_v26, %s2541_s28  ;;  %v1408_v56 = vsel %vm1400_vm6, %v1375_v60, %v836_v62 }
 0x161   : > { %1235 = vrot.lane.b32.xlu0 %v4521_v26, %s2544_s10 }
 0x162   : > { %v932_v19 = vpop.permute.xlu1 %931 }
 0x163   : > { %v1216_v32 = vpop.permute.xlu0 %1215  ;;  %v1441_v8 = vsel %vm1433_vm7, %v1408_v56, %v932_v19  ;;  %v2505_v56 = vld [vmem:[%s2590_s19 + $0x120] sm:$0xff] }
 0x164   : > { %v1538_v48 = vsel %vm1532_vm10, %v1505_v53, %v1216_v32  ;;  %761 = vrot.lane.b32.xlu1 %v2500_v11, %s2539_s22  ;;  %v2503_v32 = vld [vmem:[%s2590_s19 + $0x108] sm:$0xff] }
 0x165   : > { %1045 = vrot.lane.b32.xlu0 %v2500_v11, %s2542_s6  ;;  %2406 = vmatmul.mubr.msk.f32.gmra.mrb[4].mxu0 %vm1565_vm11, %v1538_v48  ;;  %v1376_v48 = vsel %vm1367_vm5, %v3317_v14, %v3531_v58 }
 0x166   : > { %v1028_v52 = vpop.permute.xlu1 %1027 }
 0x167   : > { %v1026_v59 = vpop.permute.xlu0 %1025  ;;  %v1474_v26 = vsel %vm1466_vm8, %v1441_v8, %v1028_v52  ;;  %v1378_v8 = vsel %vm1367_vm5, %v3333_v24, %v3539_v38 }
 0x168   : > { %1141 = vrot.lane.b32.xlu1 %v4523_v54, %s2543_s9  ;;  %v1473_v18 = vsel %vm1466_vm8, %v1440_v6, %v1026_v59  ;;  %v4528_v6 = vld [vmem:[#allocation38_spill] sm:$0xff] }
 0x169   : > { %1047 = vrot.lane.b32.xlu0 %v2502_v57, %s2542_s6 }
 0x16a   : > { %v838_v12 = vpop.permute.xlu1 %837 }
 0x16b   : > { %v1122_v16 = vpop.permute.xlu0 %1121  ;;  %v1409_v52 = vsel %vm1400_vm6, %v1376_v48, %v838_v12  ;;  %v1377_v12 = vsel %vm1367_vm5, %v3314_v49, %v3529_v37 }
 0x16c   : > { %857 = vrot.lane.b32.xlu1 %v4523_v54, %s2540_s23  ;;  %v1506_v36 = vsel %vm1499_vm9, %v1473_v18, %v1122_v16  ;;  %v2504_v54 = vld [vmem:[%s2590_s19 + $0x110] sm:$0xff] }
 0x16d   : > { %763 = vrot.lane.b32.xlu0 %v2502_v57, %s2539_s22 }
 0x16e   : > { %v1218_v61 = vpop.permute.xlu1 %1217 }
 0x16f   : > { %v1539_v7 = vsel %vm1532_vm10, %v1506_v36, %v1218_v61  ;;  %v1124_v46 = vpop.permute.xlu0 %1123  ;;  %v4529_v36 = vld [vmem:[#allocation18_spill] sm:$0xff] }
 0x170   : > { %1237 = vrot.lane.b32.xlu1 %v4524_v34, %s2544_s10  ;;  %2408 = vmatprep.mubr.msk.f32.mxu0 %vm1565_vm11, %v1539_v7  ;;  %v1507_v42 = vsel %vm1499_vm9, %v1474_v26, %v1124_v46 }
 0x171   : > { %1143 = vrot.lane.b32.xlu0 %v4525_v1, %s2543_s9 }
 0x172   : > { %v934_v9 = vpop.permute.xlu1 %933 }
 0x173   : > { %v840_v40 = vpop.permute.xlu0 %839  ;;  %v1442_v13 = vsel %vm1433_vm7, %v1409_v52, %v934_v9  ;;  %v4530_v9 = vld [vmem:[#allocation37_spill] sm:$0xff] }
 0x174   : > { %953 = vrot.lane.b32.xlu1 %v4524_v34, %s2541_s28  ;;  %v1410_v16 = vsel %vm1400_vm6, %v1377_v12, %v840_v40 }
 0x175   : > { %859 = vrot.lane.b32.xlu0 %v4525_v1, %s2540_s23 }
 0x176   : > { %v936_v50 = vpop.permute.xlu1 %935 }
 0x177   : > { %v1220_v53 = vpop.permute.xlu0 %1219  ;;  %v1443_v18 = vsel %vm1433_vm7, %v1410_v16, %v936_v50  ;;  %v2507_v16 = vld [vmem:[%s2590_s19 + $0x138] sm:$0xff] }
 0x178   : > { %v1540_v55 = vsel %vm1532_vm10, %v1507_v42, %v1220_v53  ;;  %955 = vrot.lane.b32.xlu1 %v4526_v41, %s2541_s28 }
 0x179   : > { %1239 = vrot.lane.b32.xlu0 %v4526_v41, %s2544_s10  ;;  %2409 = vmatmul.mubr.msk.f32.gmra.mrb[6].mxu0 %vm1565_vm11, %v1540_v55  ;;  %v4531_v55 = vld [vmem:[#allocation21_spill] sm:$0xff] }
 0x17a   : > { %v1032_v62 = vpop.permute.xlu1 %1031 }
 0x17b   : > { %v1030_v19 = vpop.permute.xlu0 %1029  ;;  %v1476_v61 = vsel %vm1466_vm8, %v1443_v18, %v1032_v62  ;;  %v2506_v62 = vld [vmem:[%s2590_s19 + $0x128] sm:$0xff] }
 0x17c   : > { %765 = vrot.lane.b32.xlu1 %v2503_v32, %s2539_s22  ;;  %v1475_v29 = vsel %vm1466_vm8, %v1442_v13, %v1030_v19  ;;  %v4532_v13 = vld [vmem:[#allocation40_spill] sm:$0xff] }
 0x17d   : > { %1049 = vrot.lane.b32.xlu0 %v2503_v32, %s2542_s6 }
 0x17e   : > { %v842_v11 = vpop.permute.xlu1 %841 }
 0x17f   : > { %v1126_v59 = vpop.permute.xlu0 %1125  ;;  %v1411_v50 = vsel %vm1400_vm6, %v1378_v8, %v842_v11  ;;  %v1379_v11 = vsel %vm1367_vm5, %v3330_v33, %v3537_v47 }
 0x180   : > { %1145 = vrot.lane.b32.xlu1 %v4527_v39, %s2543_s9  ;;  %v1508_v3 = vsel %vm1499_vm9, %v1475_v29, %v1126_v59  ;;  %v4533_v29 = vld [vmem:[#allocation20_spill] sm:$0xff] }
 0x181   : > { %1051 = vrot.lane.b32.xlu0 %v2504_v54, %s2542_s6 }
 0x182   : > { %v1222_v57 = vpop.permute.xlu1 %1221 }
 0x183   : > { %v1541_v27 = vsel %vm1532_vm10, %v1508_v3, %v1222_v57  ;;  %v1128_v14 = vpop.permute.xlu0 %1127 }
 0x184   : > { %861 = vrot.lane.b32.xlu1 %v4527_v39, %s2540_s23  ;;  %2411 = vmatprep.mubr.msk.f32.mxu0 %vm1565_vm11, %v1541_v27  ;;  %v1509_v46 = vsel %vm1499_vm9, %v1476_v61, %v1128_v14 }
 0x185   : > { %767 = vrot.lane.b32.xlu0 %v2504_v54, %s2539_s22 }
 0x186   : > { %v938_v58 = vpop.permute.xlu1 %937 }
 0x187   : > { %v844_v28 = vpop.permute.xlu0 %843  ;;  %v1444_v53 = vsel %vm1433_vm7, %v1411_v50, %v938_v58  ;;  %v4534_v58 = vld [vmem:[#allocation39_spill] sm:$0xff] }
 0x188   : > { %1241 = vrot.lane.b32.xlu1 %v4528_v6, %s2544_s10  ;;  %v1412_v59 = vsel %vm1400_vm6, %v1379_v11, %v844_v28  ;;  %v2509_v11 = vld [vmem:[%s2590_s19 + $0x150] sm:$0xff] }
 0x189   : > { %1147 = vrot.lane.b32.xlu0 %v4529_v36, %s2543_s9 }
 0x18a   : > { %v940_v7 = vpop.permute.xlu1 %939 }
 0x18b   : > { %v1224_v34 = vpop.permute.xlu0 %1223  ;;  %v1445_v39 = vsel %vm1433_vm7, %v1412_v59, %v940_v7 }
 0x18c   : > { %v1542_v49 = vsel %vm1532_vm10, %v1509_v46, %v1224_v34  ;;  %957 = vrot.lane.b32.xlu1 %v4528_v6, %s2541_s28  ;;  %v4535_v46 = vld [vmem:[#allocation23_spill] sm:$0xff] }
 0x18d   : > { %863 = vrot.lane.b32.xlu0 %v4529_v36, %s2540_s23  ;;  %2412 = vmatmul.mubr.msk.f32.gmra.mrb[8].mxu0 %vm1565_vm11, %v1542_v49  ;;  %v2508_v49 = vld [vmem:[%s2590_s19 + $0x140] sm:$0xff] }
 0x18e   : > { %v750_v37 = vpop.permute.xlu1 %749 }
 0x18f   : > { %v1034_v1 = vpop.permute.xlu0 %1033  ;;  %v1380_v6 = vsel %vm1367_vm5, %v3349_v23, %v750_v37 }
 0x190   : > { %959 = vrot.lane.b32.xlu1 %v4530_v9, %s2541_s28  ;;  %v1477_v41 = vsel %vm1466_vm8, %v1444_v53, %v1034_v1  ;;  %v4537_v53 = vld [vmem:[#allocation22_spill] sm:$0xff] }
 0x191   : > { %1243 = vrot.lane.b32.xlu0 %v4530_v9, %s2544_s10 }
 0x192   : > { %v1130_v60 = vpop.permute.xlu1 %1129 }
 0x193   : > { %v1036_v40 = vpop.permute.xlu0 %1035  ;;  %v1510_v19 = vsel %vm1499_vm9, %v1477_v41, %v1130_v60 }
 0x194   : > { %769 = vrot.lane.b32.xlu1 %v2505_v56, %s2539_s22  ;;  %v1478_v54 = vsel %vm1466_vm8, %v1445_v39, %v1036_v40 }
 0x195   : > { %1053 = vrot.lane.b32.xlu0 %v2505_v56, %s2542_s6 }
 0x196   : > { %v846_v26 = vpop.permute.xlu1 %845 }
 0x197   : > { %v752_v42 = vpop.permute.xlu0 %751  ;;  %v1413_v36 = vsel %vm1400_vm6, %v1380_v6, %v846_v26  ;;  %v4536_v26 = vld [vmem:[#allocation43_spill] sm:$0xff] }
 0x198   : > { %1149 = vrot.lane.b32.xlu1 %v4531_v55, %s2543_s9  ;;  %v1381_v40 = vsel %vm1367_vm5, %v3346_v22, %v752_v42 }
 0x199   : > { %1055 = vrot.lane.b32.xlu0 %v2506_v62, %s2542_s6 }
 0x19a   : > { %v1226_v32 = vpop.permute.xlu1 %1225 }
 0x19b   : > { %v1543_v48 = vsel %vm1532_vm10, %v1510_v19, %v1226_v32  ;;  %v1132_v24 = vpop.permute.xlu0 %1131 }
 0x19c   : > { %865 = vrot.lane.b32.xlu1 %v4531_v55, %s2540_s23  ;;  %2414 = vmatprep.mubr.msk.f32.mxu0 %vm1565_vm11, %v1543_v48  ;;  %v1511_v57 = vsel %vm1499_vm9, %v1478_v54, %v1132_v24  ;;  %v4538_v48 = vld [vmem:[#allocation41_spill] sm:$0xff] }
 0x19d   : > { %771 = vrot.lane.b32.xlu0 %v2506_v62, %s2539_s22  ;;  %v4539_v54 = vld [vmem:[#allocation25_spill] sm:$0xff] }
 0x19e   : > { %v942_v38 = vpop.permute.xlu1 %941 }
 0x19f   : > { %v848_v52 = vpop.permute.xlu0 %847  ;;  %v1446_v7 = vsel %vm1433_vm7, %v1413_v36, %v942_v38 }
 0x1a0   : > { %1245 = vrot.lane.b32.xlu1 %v4532_v13, %s2544_s10  ;;  %v1414_v8 = vsel %vm1400_vm6, %v1381_v40, %v848_v52 }
 0x1a1   : > { %1151 = vrot.lane.b32.xlu0 %v4533_v29, %s2543_s9 }
 0x1a2   : > { %v944_v3 = vpop.permute.xlu1 %943 }
 0x1a3   : > { %v1228_v27 = vpop.permute.xlu0 %1227  ;;  %v1447_v50 = vsel %vm1433_vm7, %v1414_v8, %v944_v3 }
 0x1a4   : > { %v1544_v33 = vsel %vm1532_vm10, %v1511_v57, %v1228_v27  ;;  %961 = vrot.lane.b32.xlu1 %v4532_v13, %s2541_s28  ;;  %v2510_v57 = vld [vmem:[%s2590_s19 + $0x158] sm:$0xff] }
 0x1a5   : > { %867 = vrot.lane.b32.xlu0 %v4533_v29, %s2540_s23  ;;  %2415 = vmatmul.mubr.msk.f32.gmra.mrb[10].mxu0 %vm1565_vm11, %v1544_v33 }
 0x1a6   : > { %v754_v47 = vpop.permute.xlu1 %753 }
 0x1a7   : > { %v1038_v14 = vpop.permute.xlu0 %1037  ;;  %v1382_v52 = vsel %vm1367_vm5, %v3365_v43, %v754_v47 }
 0x1a8   : > { %963 = vrot.lane.b32.xlu1 %v4534_v58, %s2541_s28  ;;  %v1479_v34 = vsel %vm1466_vm8, %v1446_v7, %v1038_v14 }
 0x1a9   : > { %1247 = vrot.lane.b32.xlu0 %v4534_v58, %s2544_s10 }
 0x1aa   : > { %v1134_v12 = vpop.permute.xlu1 %1133 }
 0x1ab   : > { %v1040_v28 = vpop.permute.xlu0 %1039  ;;  %v1512_v1 = vsel %vm1499_vm9, %v1479_v34, %v1134_v12 }
 0x1ac   : > { %773 = vrot.lane.b32.xlu1 %v2507_v16, %s2539_s22  ;;  %v1480_v55 = vsel %vm1466_vm8, %v1447_v50, %v1040_v28  ;;  %v4543_v50 = vld [vmem:[#allocation27_spill] sm:$0xff] }
 0x1ad   : > { %1057 = vrot.lane.b32.xlu0 %v2507_v16, %s2542_s6  ;;  %v4540_v16 = vld [vmem:[#allocation47_spill] sm:$0xff] }
 0x1ae   : > { %v850_v18 = vpop.permute.xlu1 %849 }
 0x1af   : > { %v756_v61 = vpop.permute.xlu0 %755  ;;  %v1415_v13 = vsel %vm1400_vm6, %v1382_v52, %v850_v18  ;;  %v4541_v18 = vld [vmem:[#allocation24_spill] sm:$0xff] }
 0x1b0   : > { %1153 = vrot.lane.b32.xlu1 %v4535_v46, %s2543_s9  ;;  %v1383_v58 = vsel %vm1367_vm5, %v3362_v21, %v756_v61 }
 0x1b1   : > { %1059 = vrot.lane.b32.xlu0 %v2508_v49, %s2542_s6 }
 0x1b2   : > { %v1230_v9 = vpop.permute.xlu1 %1229 }
 0x1b3   : > { %v1545_v60 = vsel %vm1532_vm10, %v1512_v1, %v1230_v9  ;;  %v1136_v23 = vpop.permute.xlu0 %1135  ;;  %v4542_v1 = vld [vmem:[#allocation45_spill] sm:$0xff] }
 0x1b4   : > { %869 = vrot.lane.b32.xlu1 %v4535_v46, %s2540_s23  ;;  %2417 = vmatprep.mubr.msk.f32.mxu0 %vm1565_vm11, %v1545_v60  ;;  %v1513_v62 = vsel %vm1499_vm9, %v1480_v55, %v1136_v23  ;;  %v2511_v23 = vld [vmem:[%s2590_s19 + $0x168] sm:$0xff]  ;;  %v2512_v55 = vld [vmem:[%s2590_s19 + $0x170] sm:$0xff] }
 0x1b5   : > { %775 = vrot.lane.b32.xlu0 %v2508_v49, %s2539_s22 }
 0x1b6   : > { %v946_v37 = vpop.permute.xlu1 %945 }
 0x1b7   : > { %v852_v56 = vpop.permute.xlu0 %851  ;;  %v1448_v29 = vsel %vm1433_vm7, %v1415_v13, %v946_v37 }
 0x1b8   : > { %1249 = vrot.lane.b32.xlu1 %v4536_v26, %s2544_s10  ;;  %v1416_v28 = vsel %vm1400_vm6, %v1383_v58, %v852_v56 }
 0x1b9   : > { %1155 = vrot.lane.b32.xlu0 %v4537_v53, %s2543_s9 }
 0x1ba   : > { %v948_v41 = vpop.permute.xlu1 %947 }
 0x1bb   : > { %v1232_v19 = vpop.permute.xlu0 %1231  ;;  %v1449_v6 = vsel %vm1433_vm7, %v1416_v28, %v948_v41 }
 0x1bc   : > { %v1546_v22 = vsel %vm1532_vm10, %v1513_v62, %v1232_v19  ;;  %965 = vrot.lane.b32.xlu1 %v4536_v26, %s2541_s28 }
 0x1bd   : > { %871 = vrot.lane.b32.xlu0 %v4537_v53, %s2540_s23  ;;  %2418 = vmatmul.mubr.msk.f32.gmra.mrb[12].mxu0 %vm1565_vm11, %v1546_v22 }
 0x1be   : > { %v758_v42 = vpop.permute.xlu1 %757 }
 0x1bf   : > { %v1042_v32 = vpop.permute.xlu0 %1041  ;;  %v1384_v37 = vsel %vm1367_vm5, %v3381_v30, %v758_v42 }
 0x1c0   : > { %967 = vrot.lane.b32.xlu1 %v4538_v48, %s2541_s28  ;;  %v1481_v3 = vsel %vm1466_vm8, %v1448_v29, %v1042_v32 }
 0x1c1   : > { %1251 = vrot.lane.b32.xlu0 %v4538_v48, %s2544_s10 }
 0x1c2   : > { %v1138_v24 = vpop.permute.xlu1 %1137 }
 0x1c3   : > { %v1044_v38 = vpop.permute.xlu0 %1043  ;;  %v1514_v27 = vsel %vm1499_vm9, %v1481_v3, %v1138_v24  ;;  %v4544_v24 = vld [vmem:[#allocation51_spill] sm:$0xff] }
 0x1c4   : > { %777 = vrot.lane.b32.xlu1 %v2509_v11, %s2539_s22  ;;  %v1482_v36 = vsel %vm1466_vm8, %v1449_v6, %v1044_v38  ;;  %v285_v3 = vld [vmem:[%s2590_s19 + $0x188] sm:$0xff] }
 0x1c5   : > { %1061 = vrot.lane.b32.xlu0 %v2509_v11, %s2542_s6  ;;  %v4545_v11 = vld [vmem:[#allocation26_spill] sm:$0xff] }
 0x1c6   : > { %v854_v59 = vpop.permute.xlu1 %853 }
 0x1c7   : > { %v760_v39 = vpop.permute.xlu0 %759  ;;  %v1417_v56 = vsel %vm1400_vm6, %v1384_v37, %v854_v59 }
 0x1c8   : > { %1157 = vrot.lane.b32.xlu1 %v4539_v54, %s2543_s9  ;;  %v1385_v42 = vsel %vm1367_vm5, %v3378_v20, %v760_v39 }
 0x1c9   : > { %1063 = vrot.lane.b32.xlu0 %v2510_v57, %s2542_s6 }
 0x1ca   : > { %v1234_v33 = vpop.permute.xlu1 %1233 }
 0x1cb   : > { %v1547_v14 = vsel %vm1532_vm10, %v1514_v27, %v1234_v33  ;;  %v1140_v43 = vpop.permute.xlu0 %1139  ;;  %v4546_v27 = vld [vmem:[#allocation49_spill] sm:$0xff] }
 0x1cc   : > { %873 = vrot.lane.b32.xlu1 %v4539_v54, %s2540_s23  ;;  %2420 = vmatprep.mubr.msk.f32.mxu0 %vm1565_vm11, %v1547_v14  ;;  %v1515_v46 = vsel %vm1499_vm9, %v1482_v36, %v1140_v43  ;;  %v284_v54 = vld [vmem:[%s2590_s19 + $0x180] sm:$0xff]  ;;  %v511_v14 = vrot.slane %v285_v3, 1 }
 0x1cd   : > { %779 = vrot.lane.b32.xlu0 %v2510_v57, %s2539_s22  ;;  %v510_v33 = vrot.slane %v284_v54, 1 }
 0x1ce   : > { %v950_v47 = vpop.permute.xlu1 %949 }
 0x1cf   : > { %v856_v12 = vpop.permute.xlu0 %855  ;;  %v1450_v26 = vsel %vm1433_vm7, %v1417_v56, %v950_v47  ;;  %v512_v58 = vsel %vm345_vm0, %v510_v33, %v511_v14 }
 0x1d0   : > { %1253 = vrot.lane.b32.xlu1 %v4540_v16, %s2544_s10  ;;  %v1418_v48 = vsel %vm1400_vm6, %v1385_v42, %v856_v12 }
 0x1d1   : > { %1159 = vrot.lane.b32.xlu0 %v4541_v18, %s2543_s9 }
 0x1d2   : > { %v952_v7 = vpop.permute.xlu1 %951 }
 0x1d3   : > { %v1236_v34 = vpop.permute.xlu0 %1235  ;;  %v1451_v38 = vsel %vm1433_vm7, %v1418_v48, %v952_v7 }
 0x1d4   : > { %v1548_v21 = vsel %vm1532_vm10, %v1515_v46, %v1236_v34  ;;  %969 = vrot.lane.b32.xlu1 %v4540_v16, %s2541_s28  ;;  %v515_v46 = vrot.slane %v284_v54, 2  ;;  %v516_v34 = vrot.slane %v285_v3, 2 }
 0x1d5   : > { %875 = vrot.lane.b32.xlu0 %v4541_v18, %s2540_s23  ;;  %2421 = vmatmul.mubr.msk.f32.gmra.mrb[14].mxu0 %vm1565_vm11, %v1548_v21  ;;  %v286_v18 = vld [vmem:[%s2590_s19 + $0x190] sm:$0x3] }
 0x1d6   : > { %v762_v61 = vpop.permute.xlu1 %761 }
 0x1d7   : > { %v1046_v49 = vpop.permute.xlu0 %1045  ;;  %v1386_v12 = vsel %vm1367_vm5, %v3397_v45, %v762_v61  ;;  %v513_v45 = vrot.slane %v286_v18, 1 }
 0x1d8   : > { %971 = vrot.lane.b32.xlu1 %v4542_v1, %s2541_s28  ;;  %v1483_v53 = vsel %vm1466_vm8, %v1450_v26, %v1046_v49 }
 0x1d9   : > { %1255 = vrot.lane.b32.xlu0 %v4542_v1, %s2544_s10 }
 0x1da   : > { %v1142_v9 = vpop.permute.xlu1 %1141 }
 0x1db   : > { %v1048_v60 = vpop.permute.xlu0 %1047  ;;  %v1516_v41 = vsel %vm1499_vm9, %v1483_v53, %v1142_v9  ;;  %v517_v9 = vsel %vm426_vm1, %v515_v46, %v516_v34 }
 0x1dc   : > { %781 = vrot.lane.b32.xlu1 %v2511_v23, %s2539_s22  ;;  %v1484_v52 = vsel %vm1466_vm8, %v1451_v38, %v1048_v60 }
 0x1dd   : > { %1065 = vrot.lane.b32.xlu0 %v2511_v23, %s2542_s6  ;;  %v514_v23 = vsel %vm345_vm0, %v511_v14, %v513_v45 }
 0x1de   : > { %v858_v40 = vpop.permute.xlu1 %857 }
 0x1df   : > { %v3892_v8 = vpop.permute.xlu0 %763  ;;  %v1419_v16 = vsel %vm1400_vm6, %v1386_v12, %v858_v40 }
 0x1e0   : > { %1161 = vrot.lane.b32.xlu1 %v4543_v50, %s2543_s9  ;;  %v1387_v37 = vsel %vm1367_vm5, %v3394_v0, %v3892_v8 }
 0x1e1   : > { %1067 = vrot.lane.b32.xlu0 %v2512_v55, %s2542_s6 }
 0x1e2   : > { %v1238_v62 = vpop.permute.xlu1 %1237 }
 0x1e3   : > { %v1144_v19 = vpop.permute.xlu0 %1143  ;;  %v1549_v30 = vsel %vm1532_vm10, %v1516_v41, %v1238_v62 }
 0x1e4   : > { %877 = vrot.lane.b32.xlu1 %v4543_v50, %s2540_s23  ;;  %2423 = vmatprep.mubr.msk.f32.mxu1 %vm1565_vm11, %v1549_v30  ;;  %v1517_v13 = vsel %vm1499_vm9, %v1484_v52, %v1144_v19  ;;  %v518_v50 = vrot.slane %v286_v18, 2  ;;  %v288_v30 = vld [vmem:[%s2590_s19 + $0x1a0] sm:$0xff] }
 0x1e5   : > { %783 = vrot.lane.b32.xlu0 %v2512_v55, %s2539_s22  ;;  %v524_v48 = vrot.slane %v288_v30, 1 }
 0x1e6   : > { %v954_v22 = vpop.permute.xlu1 %953  ;;  %v519_v8 = vsel %vm426_vm1, %v516_v34, %v518_v50 }
 0x1e7   : > { %v860_v32 = vpop.permute.xlu0 %859  ;;  %v1452_v36 = vsel %vm1433_vm7, %v1419_v16, %v954_v22  ;;  %v289_v22 = vld [vmem:[%s2590_s19 + $0x1a8] sm:$0x3] }
 0x1e8   : > { %1257 = vrot.lane.b32.xlu1 %v4544_v24, %s2544_s10  ;;  %v1420_v56 = vsel %vm1400_vm6, %v1387_v37, %v860_v32  ;;  %v287_v32 = vld [vmem:[%s2590_s19 + $0x198] sm:$0xff]  ;;  %s2351_s19 = sshll.u32 %s4552_s12, 8 }
 0x1e9   : > { %1163 = vrot.lane.b32.xlu0 %v4545_v11, %s2543_s9 }
 0x1ea   : > { %v956_v59 = vpop.permute.xlu1 %955 }
 0x1eb   : > { %v1240_v29 = vpop.permute.xlu0 %1239  ;;  %v1453_v26 = vsel %vm1433_vm7, %v1420_v56, %v956_v59  ;;  %v529_v59 = vrot.slane %v288_v30, 2 }
 0x1ec   : > { %v1550_v20 = vsel %vm1532_vm10, %v1517_v13, %v1240_v29  ;;  %973 = vrot.lane.b32.xlu1 %v4544_v24, %s2541_s28  ;;  %v526_v24 = vrot.slane %v289_v22, 1  ;;  %v531_v29 = vrot.slane %v289_v22, 2 }
 0x1ed   : > { %879 = vrot.lane.b32.xlu0 %v4545_v11, %s2540_s23  ;;  %2424 = vmatmul.mubr.msk.f32.vlgmr.msra.gmra.mrb[0].mxu1 %vm1565_vm11, %v1550_v20  ;;  %v523_v11 = vrot.slane %v287_v32, 1 }
 0x1ee   : > { %v3922_v39 = vpop.permute.xlu1 %765  ;;  %v527_v13 = vsel %vm345_vm0, %v524_v48, %v526_v24 }
 0x1ef   : > { %v1050_v57 = vpop.permute.xlu0 %1049  ;;  %v1388_v20 = vsel %vm1367_vm5, %v3413_v51, %v3922_v39  ;;  %v532_v51 = vsel %vm426_vm1, %v529_v59, %v531_v29 }
 0x1f0   : > { %975 = vrot.lane.b32.xlu1 %v4546_v27, %s2541_s28  ;;  %v1485_v7 = vsel %vm1466_vm8, %v1452_v36, %v1050_v57  ;;  %v525_v57 = vsel %vm345_vm0, %v523_v11, %v524_v48 }
 0x1f1   : > { %1259 = vrot.lane.b32.xlu0 %v4546_v27, %s2544_s10 }
 0x1f2   : > { %v1146_v43 = vpop.permute.xlu1 %1145 }
 0x1f3   : > { %v1052_v47 = vpop.permute.xlu0 %1051  ;;  %v1518_v21 = vsel %vm1499_vm9, %v1485_v7, %v1146_v43 }
 0x1f4   : > { %785 = vrot.lane.b32.xlu1 %v284_v54, %s2539_s22  ;;  %v1486_v53 = vsel %vm1466_vm8, %v1453_v26, %v1052_v47 }
 0x1f5   : > { %1069 = vrot.lane.b32.xlu0 %v284_v54, %s2542_s6  ;;  %v528_v54 = vrot.slane %v287_v32, 2 }
 0x1f6   : > { %v862_v28 = vpop.permute.xlu1 %861 }
 0x1f7   : > { %v3936_v6 = vpop.permute.xlu0 %767  ;;  %v1421_v27 = vsel %vm1400_vm6, %v1388_v20, %v862_v28  ;;  %v530_v16 = vsel %vm426_vm1, %v528_v54, %v529_v59 }
 0x1f8   : > { %1165 = vrot.lane.b32.xlu1 %v512_v58, %s2543_s9  ;;  %v1389_v46 = vsel %vm1367_vm5, %v3410_v5, %v3936_v6 }
 0x1f9   : > { %1071 = vrot.lane.b32.xlu0 %v285_v3, %s2542_s6 }
 0x1fa   : > { %v1242_v49 = vpop.permute.xlu1 %1241 }
 0x1fb   : > { %v1551_v61 = vsel %vm1532_vm10, %v1518_v21, %v1242_v49  ;;  %v1148_v1 = vpop.permute.xlu0 %1147 }
 0x1fc   : > { %881 = vrot.lane.b32.xlu1 %v512_v58, %s2540_s23  ;;  %2426 = vmatprep.mubr.msk.f32.mxu1 %vm1565_vm11, %v1551_v61  ;;  %v1519_v41 = vsel %vm1499_vm9, %v1486_v53, %v1148_v1 }
 0x1fd   : > { %787 = vrot.lane.b32.xlu0 %v285_v3, %s2539_s22  ;;  %s4192_s22 = scalar_lea.vmem %s4340_s2, %s2351_s19 }
 0x1fe   : > { %v958_v60 = vpop.permute.xlu1 %957 }
 0x1ff   : > { %v864_v40 = vpop.permute.xlu0 %863  ;;  %v1454_v14 = vsel %vm1433_vm7, %v1421_v27, %v958_v60 }
 0x200   : > { %1261 = vrot.lane.b32.xlu1 %v517_v9, %s2544_s10  ;;  %v1422_v21 = vsel %vm1400_vm6, %v1389_v46, %v864_v40 }
 0x201   : > { %1167 = vrot.lane.b32.xlu0 %v514_v23, %s2543_s9 }
 0x202   : > { %v960_v55 = vpop.permute.xlu1 %959 }
 0x203   : > { %v1244_v62 = vpop.permute.xlu0 %1243  ;;  %v1455_v49 = vsel %vm1433_vm7, %v1422_v21, %v960_v55 }
 0x204   : > { %v1552_v0 = vsel %vm1532_vm10, %v1519_v41, %v1244_v62  ;;  %977 = vrot.lane.b32.xlu1 %v517_v9, %s2541_s28 }
 0x205   : > { %883 = vrot.lane.b32.xlu0 %v514_v23, %s2540_s23  ;;  %2427 = vmatmul.mubr.msk.f32.gmra.mrb[2].mxu1 %vm1565_vm11, %v1552_v0 }
 0x206   : > { %v770_v19 = vpop.permute.xlu1 %769 }
 0x207   : > { %v1054_v42 = vpop.permute.xlu0 %1053  ;;  %v1390_v40 = vsel %vm1367_vm5, %v3429_v10, %v770_v19 }
 0x208   : > { %979 = vrot.lane.b32.xlu1 %v519_v8, %s2541_s28  ;;  %v1487_v47 = vsel %vm1466_vm8, %v1454_v14, %v1054_v42 }
 0x209   : > { %1263 = vrot.lane.b32.xlu0 %v519_v8, %s2544_s10 }
 0x20a   : > { %v1150_v38 = vpop.permute.xlu1 %1149 }
 0x20b   : > { %v1056_v52 = vpop.permute.xlu0 %1055  ;;  %v1520_v39 = vsel %vm1499_vm9, %v1487_v47, %v1150_v38 }
 0x20c   : > { %1075 = vrot.lane.b32.xlu1 %v288_v30, %s2542_s6  ;;  %v1488_v45 = vsel %vm1466_vm8, %v1455_v49, %v1056_v52 }
 0x20d   : > { %1073 = vrot.lane.b32.xlu0 %v287_v32, %s2542_s6 }
 0x20e   : > { %v866_v3 = vpop.permute.xlu1 %865 }
 0x20f   : > { %v772_v33 = vpop.permute.xlu0 %771  ;;  %v1423_v55 = vsel %vm1400_vm6, %v1390_v40, %v866_v3 }
 0x210   : > { %v3978_v43 = vpop.f32.mrb[0].mxu0  ;;  %1171 = vrot.lane.b32.xlu1 %v527_v13, %s2543_s9  ;;  %v1391_v19 = vsel %vm1367_vm5, %v3426_v35, %v772_v33 }
 0x211   : > { %v3982_v58 = vpop.f32.mrb[1].mxu0  ;;  %1169 = vrot.lane.b32.xlu0 %v525_v57, %s2543_s9 }
 0x212   : > { %v1987_v12 = vadd.f32 %v3978_v43, %v3982_v58  ;;  %v1246_v28 = vpop.permute.xlu1 %1245 }
 0x213   : > { %v1553_v18 = vsel %vm1532_vm10, %v1520_v39, %v1246_v28  ;;  %v1152_v36 = vpop.permute.xlu0 %1151 }
 0x214   : > { %1267 = vrot.lane.b32.xlu1 %v532_v51, %s2544_s10  ;;  %2429 = vmatprep.mubr.msk.f32.mxu1 %vm1565_vm11, %v1553_v18  ;;  %v1521_v1 = vsel %vm1499_vm9, %v1488_v45, %v1152_v36 }
 0x215   : > { %1265 = vrot.lane.b32.xlu0 %v530_v16, %s2544_s10 }
 0x216   : > { %v962_v7 = vpop.permute.xlu1 %961 }
 0x217   : > { %v868_v34 = vpop.permute.xlu0 %867  ;;  %v1456_v62 = vsel %vm1433_vm7, %v1423_v55, %v962_v7 }
 0x218   : > { %v1424_v24 = vsel %vm1400_vm6, %v1391_v19, %v868_v34 }
 0x21a   : > { %v964_v61 = vpop.permute.xlu1 %963 }
 0x21b   : > { %v1248_v9 = vpop.permute.xlu0 %1247  ;;  %v1457_v38 = vsel %vm1433_vm7, %v1424_v24, %v964_v61 }
 0x21c   : > { %v1554_v60 = vsel %vm1532_vm10, %v1521_v1, %v1248_v9 }
 0x21d   : > { %2430 = vmatmul.mubr.msk.f32.gmra.mrb[4].mxu1 %vm1565_vm11, %v1554_v60 }
 0x21e   : > { %v774_v23 = vpop.permute.xlu1 %773 }
 0x21f   : > { %v1058_v37 = vpop.permute.xlu0 %1057  ;;  %v1392_v47 = vsel %vm1367_vm5, %v3445_v25, %v774_v23 }
 0x220   : > { %v1489_v8 = vsel %vm1466_vm8, %v1456_v62, %v1058_v37 }
 0x222   : > { %v1154_v56 = vpop.permute.xlu1 %1153 }
 0x223   : > { %v1060_v26 = vpop.permute.xlu0 %1059  ;;  %v1522_v30 = vsel %vm1499_vm9, %v1489_v8, %v1154_v56 }
 0x224   : > { %v4003_v5 = vpop.f32.mrb[2].mxu0  ;;  %v1490_v11 = vsel %vm1466_vm8, %v1457_v38, %v1060_v26 }
 0x225   : > { %v4005_v6 = vpop.f32.mrb[3].mxu0 }
 0x226   : > { %v1988_v50 = vadd.f32 %v1987_v12, %v4005_v6  ;;  %v870_v53 = vpop.permute.xlu1 %869 }
 0x227   : > { %v776_v41 = vpop.permute.xlu0 %775  ;;  %v1425_v39 = vsel %vm1400_vm6, %v1392_v47, %v870_v53 }
 0x228   : > { %v1989_v0 = vadd.f32 %v4003_v5, %v1988_v50  ;;  %v1393_v34 = vsel %vm1367_vm5, %v3442_v2, %v776_v41 }
 0x22a   : > { %v1250_v22 = vpop.permute.xlu1 %1249 }
 0x22b   : > { %v1555_v42 = vsel %vm1532_vm10, %v1522_v30, %v1250_v22  ;;  %v1156_v32 = vpop.permute.xlu0 %1155 }
 0x22c   : > { %2432 = vmatprep.mubr.msk.f32.mxu1 %vm1565_vm11, %v1555_v42  ;;  %v1523_v59 = vsel %vm1499_vm9, %v1490_v11, %v1156_v32 }
 0x22e   : > { %v966_v10 = vpop.permute.xlu1 %965 }
 0x22f   : > { %v872_v48 = vpop.permute.xlu0 %871  ;;  %v1458_v28 = vsel %vm1433_vm7, %v1425_v39, %v966_v10 }
 0x230   : > { %v1426_v49 = vsel %vm1400_vm6, %v1393_v34, %v872_v48 }
 0x232   : > { %v968_v52 = vpop.permute.xlu1 %967 }
 0x233   : > { %1891 = vxpose.xlu0.b32.start [1/16] %v3982_v58, 128  ;;  %v1252_v13 = vpop.permute.xlu0 %1251  ;;  %v1459_v45 = vsel %vm1433_vm7, %v1426_v49, %v968_v52 }
 0x234   : > { %v1556_v29 = vsel %vm1532_vm10, %v1523_v59, %v1252_v13 }
 0x235   : > { %2433 = vmatmul.mubr.msk.f32.gmra.mrb[6].mxu1 %vm1565_vm11, %v1556_v29 }
 0x236   : > { %v778_v20 = vpop.permute.xlu1 %777 }
 0x237   : > { %1892 = vxpose.xlu0.b32.cont [2/16] %v3978_v43, 128  ;;  %v1062_v35 = vpop.permute.xlu0 %1061  ;;  %v1394_v41 = vsel %vm1367_vm5, %v3461_v44, %v778_v20 }
 0x238   : > { %v4027_v54 = vpop.f32.mrb[4].mxu0  ;;  %v1491_v16 = vsel %vm1466_vm8, %v1458_v28, %v1062_v35 }
 0x239   : > { %v4029_v3 = vpop.f32.mrb[5].mxu0 }
 0x23a   : > { %v1990_v57 = vadd.f32 %v1989_v0, %v4029_v3  ;;  %v1158_v27 = vpop.permute.xlu1 %1157 }
 0x23b   : > { %1893 = vxpose.xlu0.b32.cont [3/16] %v4005_v6, 128  ;;  %v1064_v33 = vpop.permute.xlu0 %1063  ;;  %v1524_v18 = vsel %vm1499_vm9, %v1491_v16, %v1158_v27 }
 0x23c   : > { %v1991_v14 = vadd.f32 %v4027_v54, %v1990_v57  ;;  %v1492_v61 = vsel %vm1466_vm8, %v1459_v45, %v1064_v33 }
 0x23e   : > { %v874_v51 = vpop.permute.xlu1 %873 }
 0x23f   : > { %1894 = vxpose.xlu0.b32.cont [4/16] %v4003_v5, 128  ;;  %v780_v12 = vpop.permute.xlu0 %779  ;;  %v1427_v0 = vsel %vm1400_vm6, %v1394_v41, %v874_v51 }
 0x240   : > { %v1395_v44 = vsel %vm1367_vm5, %v3458_v63, %v780_v12 }
 0x242   : > { %v1254_v36 = vpop.permute.xlu1 %1253 }
 0x243   : > { %v1557_v7 = vsel %vm1532_vm10, %v1524_v18, %v1254_v36  ;;  %1895 = vxpose.xlu0.b32.cont [5/16] %v4029_v3, 128  ;;  %v1160_v46 = vpop.permute.xlu0 %1159 }
 0x244   : > { %2435 = vmatprep.mubr.msk.f32.mxu1 %vm1565_vm11, %v1557_v7  ;;  %v1525_v9 = vsel %vm1499_vm9, %v1492_v61, %v1160_v46 }
 0x246   : > { %v970_v25 = vpop.permute.xlu1 %969 }
 0x247   : > { %1896 = vxpose.xlu0.b32.cont [6/16] %v4027_v54, 128  ;;  %v876_v21 = vpop.permute.xlu0 %875  ;;  %v1460_v30 = vsel %vm1433_vm7, %v1427_v0, %v970_v25 }
 0x248   : > { %v1428_v38 = vsel %vm1400_vm6, %v1395_v44, %v876_v21 }
 0x24a   : > { %v972_v1 = vpop.permute.xlu1 %971 }
 0x24b   : > { %v1256_v60 = vpop.permute.xlu0 %1255  ;;  %v1461_v52 = vsel %vm1433_vm7, %v1428_v38, %v972_v1 }
 0x24c   : > { %v1558_v23 = vsel %vm1532_vm10, %v1525_v9, %v1256_v60  ;;  %v4052_v37 = vpop.f32.mrb[6].mxu0 }
 0x24d   : > { %v4054_v56 = vpop.f32.mrb[7].mxu0  ;;  %2436 = vmatmul.mubr.msk.f32.gmra.mrb[8].mxu1 %vm1565_vm11, %v1558_v23 }
 0x24e   : > { %v1992_v2 = vadd.f32 %v1991_v14, %v4054_v56  ;;  %1897 = vxpose.xlu0.b32.cont [7/16] %v4054_v56, 128  ;;  %v782_v26 = vpop.permute.xlu1 %781 }
 0x24f   : > { %v1066_v40 = vpop.permute.xlu0 %1065  ;;  %v1396_v39 = vsel %vm1367_vm5, %v3477_v31, %v782_v26 }
 0x250   : > { %v1993_v50 = vadd.f32 %v4052_v37, %v1992_v2  ;;  %v1493_v22 = vsel %vm1466_vm8, %v1460_v30, %v1066_v40 }
 0x252   : > { %1898 = vxpose.xlu0.b32.cont [8/16] %v4052_v37, 128  ;;  %v1162_v53 = vpop.permute.xlu1 %1161 }
 0x253   : > { %v1068_v55 = vpop.permute.xlu0 %1067  ;;  %v1526_v42 = vsel %vm1499_vm9, %v1493_v22, %v1162_v53 }
 0x254   : > { %v1494_v13 = vsel %vm1466_vm8, %v1461_v52, %v1068_v55 }
 0x256   : > { %v878_v62 = vpop.permute.xlu1 %877 }
 0x257   : > { %v784_v8 = vpop.permute.xlu0 %783  ;;  %v1429_v28 = vsel %vm1400_vm6, %v1396_v39, %v878_v62 }
 0x258   : > { %v1397_v31 = vsel %vm1367_vm5, %v3474_v15, %v784_v8 }
 0x25a   : > { %v1258_v32 = vpop.permute.xlu1 %1257 }
 0x25b   : > { %v1559_v10 = vsel %vm1532_vm10, %v1526_v42, %v1258_v32  ;;  %v1164_v19 = vpop.permute.xlu0 %1163 }
 0x25c   : > { %2438 = vmatprep.mubr.msk.f32.mxu1 %vm1565_vm11, %v1559_v10  ;;  %v1527_v35 = vsel %vm1499_vm9, %v1494_v13, %v1164_v19 }
 0x25e   : > { %v974_v48 = vpop.permute.xlu1 %973 }
 0x25f   : > { %v880_v24 = vpop.permute.xlu0 %879  ;;  %v1462_v18 = vsel %vm1433_vm7, %v1429_v28, %v974_v48 }
 0x260   : > { %v4072_v11 = vpop.f32.mrb[8].mxu0  ;;  %v1430_v45 = vsel %vm1400_vm6, %v1397_v31, %v880_v24 }
 0x261   : > { %v4075_v59 = vpop.f32.mrb[9].mxu0 }
 0x262   : > { %v1994_v29 = vadd.f32 %v1993_v50, %v4075_v59  ;;  %1899 = vxpose.xlu0.b32.cont [9/16] %v4075_v59, 128  ;;  %v976_v20 = vpop.permute.xlu1 %975 }
 0x263   : > { %v1260_v57 = vpop.permute.xlu0 %1259  ;;  %v1463_v1 = vsel %vm1433_vm7, %v1430_v45, %v976_v20 }
 0x264   : > { %v1560_v63 = vsel %vm1532_vm10, %v1527_v35, %v1260_v57  ;;  %v1995_v27 = vadd.f32 %v4072_v11, %v1994_v29 }
 0x265   : > { %2439 = vmatmul.mubr.msk.f32.gmra.mrb[10].mxu1 %vm1565_vm11, %v1560_v63 }
 0x266   : > { %1900 = vxpose.xlu0.b32.cont [10/16] %v4072_v11, 128  ;;  %v786_v33 = vpop.permute.xlu1 %785 }
 0x267   : > { %v1070_v14 = vpop.permute.xlu0 %1069  ;;  %v1398_v0 = vsel %vm1367_vm5, %v3493_v4, %v786_v33 }
 0x268   : > { %v1495_v36 = vsel %vm1466_vm8, %v1462_v18, %v1070_v14 }
 0x26a   : > { %v1166_v47 = vpop.permute.xlu1 %1165 }
 0x26b   : > { %v1072_v51 = vpop.permute.xlu0 %1071  ;;  %v1528_v7 = vsel %vm1499_vm9, %v1495_v36, %v1166_v47 }
 0x26c   : > { %v1496_v60 = vsel %vm1466_vm8, %v1463_v1, %v1072_v51 }
 0x26e   : > { %v882_v12 = vpop.permute.xlu1 %881 }
 0x26f   : > { %v788_v16 = vpop.permute.xlu0 %787  ;;  %v1431_v22 = vsel %vm1400_vm6, %v1398_v0, %v882_v12 }
 0x270   : > { %v1399_v41 = vsel %vm1367_vm5, %v3490_v17, %v788_v16 }
 0x272   : > { %v1262_v46 = vpop.permute.xlu1 %1261 }
 0x273   : > { %v1561_v25 = vsel %vm1532_vm10, %v1528_v7, %v1262_v46  ;;  %v1168_v34 = vpop.permute.xlu0 %1167 }
 0x274   : > { %2441 = vmatprep.mubr.msk.f32.mxu1 %vm1565_vm11, %v1561_v25  ;;  %v1529_v26 = vsel %vm1499_vm9, %v1496_v60, %v1168_v34  ;;  %v2545_v25 = vmov 0.0  }
 0x275   : > { %2130 = vst [vmem:[%s4167_s18] sm:$0x3] %v2545_v25 }
 0x276   : > { %v978_v21 = vpop.permute.xlu1 %977 }
 0x277   : > { %v884_v49 = vpop.permute.xlu0 %883  ;;  %v1464_v32 = vsel %vm1433_vm7, %v1431_v22, %v978_v21 }
 0x278   : > { %v4096_v61 = vpop.f32.mrb[10].mxu0  ;;  %v1432_v8 = vsel %vm1400_vm6, %v1399_v41, %v884_v49 }
 0x279   : > { %v4099_v9 = vpop.f32.mrb[11].mxu0 }
 0x27a   : > { %v1996_v23 = vadd.f32 %v1995_v27, %v4099_v9  ;;  %1901 = vxpose.xlu0.b32.cont [11/16] %v4099_v9, 128  ;;  %v980_v2 = vpop.permute.xlu1 %979 }
 0x27b   : > { %v1264_v40 = vpop.permute.xlu0 %1263  ;;  %v1465_v42 = vsel %vm1433_vm7, %v1432_v8, %v980_v2 }
 0x27c   : > { %v1562_v15 = vsel %vm1532_vm10, %v1529_v26, %v1264_v40  ;;  %v1997_v50 = vadd.f32 %v4096_v61, %v1996_v23 }
 0x27d   : > { %2442 = vmatmul.mubr.msk.f32.gmra.mrb[12].mxu1 %vm1565_vm11, %v1562_v15 }
 0x27e   : > { %1902 = vxpose.xlu0.b32.cont [12/16] %v4096_v61, 128  ;;  %v1076_v53 = vpop.permute.xlu1 %1075 }
 0x27f   : > { %v1074_v55 = vpop.permute.xlu0 %1073  ;;  %v1498_v10 = vsel %vm1466_vm8, %v1465_v42, %v1076_v53 }
 0x280   : > { %v1497_v19 = vsel %vm1466_vm8, %v1464_v32, %v1074_v55 }
 0x282   : > { %v1172_v62 = vpop.permute.xlu1 %1171 }
 0x283   : > { %v1170_v30 = vpop.permute.xlu0 %1169  ;;  %v1531_v48 = vsel %vm1499_vm9, %v1498_v10, %v1172_v62 }
 0x284   : > { %v1530_v44 = vsel %vm1499_vm9, %v1497_v19, %v1170_v30 }
 0x286   : > { %v1268_v17 = vpop.permute.xlu1 %1267 }
 0x287   : > { %v1564_v4 = vsel %vm1532_vm10, %v1531_v48, %v1268_v17  ;;  %v1266_v24 = vpop.permute.xlu0 %1265 }
 0x288   : > { %v1563_v38 = vsel %vm1532_vm10, %v1530_v44, %v1266_v24 }
 0x289   : > { %2444 = vmatprep.mubr.msk.f32.mxu1 %vm1565_vm11, %v1563_v38 }
 0x28a   : > { %2445 = vmatmul.mubr.msk.f32.gmra.mrb[14].mxu1 %vm1565_vm11, %v1564_v4 }
 0x290   : > { %v4125_v52 = vpop.f32.mrb[12].mxu0 }
 0x291   : > { %v4127_v13 = vpop.f32.mrb[13].mxu0 }
 0x292   : > { %v1998_v29 = vadd.f32 %v1997_v50, %v4127_v13  ;;  %1903 = vxpose.xlu0.b32.cont [13/16] %v4127_v13, 128 }
 0x294   : > { %v1999_v20 = vadd.f32 %v4125_v52, %v1998_v29 }
 0x296   : > { %1904 = vxpose.xlu0.b32.cont [14/16] %v4125_v52, 128 }
 0x2a8   : > { %v4133_v35 = vpop.f32.mrb[14].mxu0 }
 0x2a9   : > { %v4135_v57 = vpop.f32.mrb[15].mxu0 }
 0x2aa   : > { %v2000_v63 = vadd.f32 %v1999_v20, %v4135_v57  ;;  %1905 = vxpose.xlu0.b32.cont [15/16] %v4135_v57, 128 }
 0x2ac   : > { %v2001_v27 = vadd.f32 %v4133_v35, %v2000_v63 }
 0x2ae   : > { %1906 = vxpose.xlu0.b32.end [16/16] %v4133_v35, 128 }
 0x2c0   : > { %v4141_v33 = vpop.f32.mrb[0].mxu1 }
 0x2c1   : > { %v4143_v14 = vpop.f32.mrb[1].mxu1 }
 0x2c2   : > { %v2002_v47 = vadd.f32 %v2001_v27, %v4143_v14  ;;  %1923 = vxpose.xlu1.b32.start [1/16] %v4143_v14, 128 }
 0x2c4   : > { %v2003_v51 = vadd.f32 %v4141_v33, %v2002_v47 }
 0x2c6   : > { %1924 = vxpose.xlu1.b32.cont [2/16] %v4141_v33, 128 }
 0x2d8   : > { %v4149_v39 = vpop.f32.mrb[2].mxu1 }
 0x2d9   : > { %v4151_v12 = vpop.f32.mrb[3].mxu1 }
 0x2da   : > { %v2004_v28 = vadd.f32 %v2003_v51, %v4151_v12  ;;  %1925 = vxpose.xlu1.b32.cont [3/16] %v4151_v12, 128 }
 0x2dc   : > { %v2005_v16 = vadd.f32 %v4149_v39, %v2004_v28 }
 0x2de   : > { %1926 = vxpose.xlu1.b32.cont [4/16] %v4149_v39, 128 }
 0x2f0   : > { %v4157_v18 = vpop.f32.mrb[4].mxu1 }
 0x2f1   : > { %v4160_v36 = vpop.f32.mrb[5].mxu1 }
 0x2f2   : > { %v2006_v7 = vadd.f32 %v2005_v16, %v4160_v36  ;;  %1927 = vxpose.xlu1.b32.cont [5/16] %v4160_v36, 128  ;;  %v1907_v2 = vpop.trf.xlu0 }
 0x2f3   : > { %1955 = vst [vmem:[%s4192_s22] sm:$0xff] %v1907_v2 }
 0x2f4   : > { %v2007_v46 = vadd.f32 %v4157_v18, %v2006_v7 }
 0x2f6   : > { %1928 = vxpose.xlu1.b32.cont [6/16] %v4157_v18, 128  ;;  %v1908_v50 = vpop.trf.xlu0 }
 0x2f7   : > { %1957 = vst [vmem:[%s4192_s22 + $0x10] sm:$0xff] %v1908_v50 }
 0x2fa   : > { %v1909_v55 = vpop.trf.xlu0 }
 0x2fb   : > { %1959 = vst [vmem:[%s4192_s22 + $0x20] sm:$0xff] %v1909_v55 }
 0x2fe   : > { %v1910_v41 = vpop.trf.xlu0 }
 0x2ff   : > { %1961 = vst [vmem:[%s4192_s22 + $0x30] sm:$0xff] %v1910_v41 }
 0x302   : > { %v1911_v62 = vpop.trf.xlu0 }
 0x303   : > { %1963 = vst [vmem:[%s4192_s22 + $0x40] sm:$0xff] %v1911_v62 }
 0x306   : > { %v1912_v0 = vpop.trf.xlu0 }
 0x307   : > { %1965 = vst [vmem:[%s4192_s22 + $0x50] sm:$0xff] %v1912_v0 }
 0x308   : > { %v4172_v34 = vpop.f32.mrb[6].mxu1 }
 0x309   : > { %v4174_v21 = vpop.f32.mrb[7].mxu1 }
 0x30a   : > { %v2008_v31 = vadd.f32 %v2007_v46, %v4174_v21  ;;  %1929 = vxpose.xlu1.b32.cont [7/16] %v4174_v21, 128  ;;  %v1913_v8 = vpop.trf.xlu0 }
 0x30b   : > { %1967 = vst [vmem:[%s4192_s22 + $0x60] sm:$0xff] %v1913_v8 }
 0x30c   : > { %v2009_v49 = vadd.f32 %v4172_v34, %v2008_v31 }
 0x30e   : > { %1930 = vxpose.xlu1.b32.cont [8/16] %v4172_v34, 128  ;;  %v1914_v32 = vpop.trf.xlu0 }
 0x30f   : > { %1969 = vst [vmem:[%s4192_s22 + $0x70] sm:$0xff] %v1914_v32 }
 0x312   : > { %v1915_v19 = vpop.trf.xlu0 }
 0x313   : > { %1971 = vst [vmem:[%s4192_s22 + $0x80] sm:$0xff] %v1915_v19 }
 0x316   : > { %v1916_v48 = vpop.trf.xlu0 }
 0x317   : > { %1973 = vst [vmem:[%s4192_s22 + $0x90] sm:$0xff] %v1916_v48 }
 0x31a   : > { %v1917_v24 = vpop.trf.xlu0 }
 0x31b   : > { %1975 = vst [vmem:[%s4192_s22 + $0xa0] sm:$0xff] %v1917_v24 }
 0x31e   : > { %v1918_v20 = vpop.trf.xlu0 }
 0x31f   : > { %1977 = vst [vmem:[%s4192_s22 + $0xb0] sm:$0xff] %v1918_v20 }
 0x320   : > { %v4180_v45 = vpop.f32.mrb[8].mxu1 }
 0x321   : > { %v4182_v1 = vpop.f32.mrb[9].mxu1 }
 0x322   : > { %v2010_v60 = vadd.f32 %v2009_v49, %v4182_v1  ;;  %1931 = vxpose.xlu1.b32.cont [9/16] %v4182_v1, 128  ;;  %v1919_v47 = vpop.trf.xlu0 }
 0x323   : > { %1979 = vst [vmem:[%s4192_s22 + $0xc0] sm:$0xff] %v1919_v47 }
 0x324   : > { %v2011_v23 = vadd.f32 %v4180_v45, %v2010_v60 }
 0x326   : > { %1932 = vxpose.xlu1.b32.cont [10/16] %v4180_v45, 128  ;;  %v1920_v16 = vpop.trf.xlu0 }
 0x327   : > { %1981 = vst [vmem:[%s4192_s22 + $0xd0] sm:$0xff] %v1920_v16 }
 0x32a   : > { %v1921_v25 = vpop.trf.xlu0 }
 0x32b   : > { %1983 = vst [vmem:[%s4192_s22 + $0xe0] sm:$0xff] %v1921_v25 }
 0x338   : > { %v4194_v26 = vpop.f32.mrb[10].mxu1 }
 0x339   : > { %v4197_v40 = vpop.f32.mrb[11].mxu1 }
 0x33a   : > { %v2012_v15 = vadd.f32 %v2011_v23, %v4197_v40  ;;  %1933 = vxpose.xlu1.b32.cont [11/16] %v4197_v40, 128 }
 0x33c   : > { %v2013_v53 = vadd.f32 %v4194_v26, %v2012_v15 }
 0x33e   : > { %1934 = vxpose.xlu1.b32.cont [12/16] %v4194_v26, 128 }
 0x350   : > { %v4208_v30 = vpop.f32.mrb[12].mxu1 }
 0x351   : > { %v4211_v22 = vpop.f32.mrb[13].mxu1 }
 0x352   : > { %v2014_v42 = vadd.f32 %v2013_v53, %v4211_v22  ;;  %1935 = vxpose.xlu1.b32.cont [13/16] %v4211_v22, 128  ;;  %v1922_v53 = vpop.trf.xlu0 }
 0x353   : > { %1985 = vst [vmem:[%s4192_s22 + $0xf0] sm:$0xff] %v1922_v53 }
 0x354   : > { %v2015_v10 = vadd.f32 %v4208_v30, %v2014_v42 }
 0x356   : > { %1936 = vxpose.xlu1.b32.cont [14/16] %v4208_v30, 128 }
 0x35d   : > { %v2446_v17 = vpop.f32.mrb[14].mxu1 }
 0x35e   : > { %v1882_v44 = vpop.f32.mrb[15].mxu1 }
 0x35f   : > { %v2016_v4 = vadd.f32 %v2015_v10, %v1882_v44  ;;  %1937 = vxpose.xlu1.b32.cont [15/16] %v1882_v44, 128 }
 0x361   : > { %v2017_v38 = vadd.f32 %v2446_v17, %v2016_v4 }
 0x363   : > { %v2018_v29 = vrot.slane %v2017_v38, 4  ;;  %1938 = vxpose.xlu1.b32.end [16/16] %v2446_v17, 128 }
 0x365   : > { %v2019_v63 = vadd.f32 %v2018_v29, %v2017_v38 }
 0x367   : > { %v2020_v27 = vrot.slane %v2019_v63, 2 }
 0x369   : > { %v2021_v51 = vadd.f32 %v2020_v27, %v2019_v63 }
 0x36b   : > { %v2022_v28 = vrot.slane %v2021_v51, 1 }
 0x36d   : > { %v2023_v7 = vadd.f32 %v2022_v28, %v2021_v51 }
 0x36f   : > { %v4224_v46 = vmul.f32 0.00390625, %v2023_v7 }
 0x371   : > { %v2025_v31 = vsub.f32 %v3982_v58, %v4224_v46  ;;  %v2026_v49 = vsub.f32 %v3978_v43, %v4224_v46  ;;  %v2027_v60 = vsub.f32 %v4005_v6, %v4224_v46  ;;  %v2028_v23 = vsub.f32 %v4003_v5, %v4224_v46 }
 0x372   : > { %v2029_v2 = vsub.f32 %v4029_v3, %v4224_v46  ;;  %v2030_v15 = vsub.f32 %v4027_v54, %v4224_v46  ;;  %v2031_v50 = vsub.f32 %v4054_v56, %v4224_v46  ;;  %v2032_v58 = vsub.f32 %v4052_v37, %v4224_v46 }
 0x373   : > { %v2033_v43 = vsub.f32 %v4075_v59, %v4224_v46  ;;  %v2034_v6 = vsub.f32 %v4072_v11, %v4224_v46  ;;  %v2035_v5 = vsub.f32 %v4099_v9, %v4224_v46  ;;  %v2036_v3 = vsub.f32 %v4096_v61, %v4224_v46 }
 0x374   : > { %v2037_v54 = vsub.f32 %v4127_v13, %v4224_v46  ;;  %v2038_v56 = vsub.f32 %v4125_v52, %v4224_v46  ;;  %v2039_v37 = vsub.f32 %v4135_v57, %v4224_v46  ;;  %v2040_v59 = vsub.f32 %v4133_v35, %v4224_v46 }
 0x375   : > { %v2041_v11 = vsub.f32 %v4143_v14, %v4224_v46  ;;  %v2042_v61 = vsub.f32 %v4141_v33, %v4224_v46  ;;  %v2043_v9 = vsub.f32 %v4151_v12, %v4224_v46  ;;  %v2044_v13 = vsub.f32 %v4149_v39, %v4224_v46 }
 0x376   : > { %v2045_v52 = vsub.f32 %v4160_v36, %v4224_v46  ;;  %v2046_v57 = vsub.f32 %v4157_v18, %v4224_v46  ;;  %v2047_v35 = vsub.f32 %v4174_v21, %v4224_v46  ;;  %v2048_v14 = vsub.f32 %v4172_v34, %v4224_v46 }
 0x377   : > { %v2049_v33 = vsub.f32 %v4182_v1, %v4224_v46  ;;  %v2050_v12 = vsub.f32 %v4180_v45, %v4224_v46  ;;  %v2051_v39 = vsub.f32 %v4197_v40, %v4224_v46  ;;  %v4284_v36 = vsub.f32 %v4194_v26, %v4224_v46 }
 0x378   : > { %v4288_v18 = vsub.f32 %v4211_v22, %v4224_v46  ;;  %v4292_v34 = vsub.f32 %v4208_v30, %v4224_v46  ;;  %v4295_v21 = vsub.f32 %v1882_v44, %v4224_v46  ;;  %v4298_v45 = vsub.f32 %v2446_v17, %v4224_v46 }
 0x379   : > { %v2057_v1 = vmul.f32 %v2025_v31, %v2025_v31  ;;  %v2058_v40 = vmul.f32 %v2026_v49, %v2026_v49  ;;  %v2059_v55 = vmul.f32 %v2027_v60, %v2027_v60  ;;  %v2060_v26 = vmul.f32 %v2028_v23, %v2028_v23 }
 0x37a   : > { %v2061_v0 = vmul.f32 %v2029_v2, %v2029_v2  ;;  %v2062_v22 = vmul.f32 %v2030_v15, %v2030_v15  ;;  %v2063_v32 = vmul.f32 %v2031_v50, %v2031_v50  ;;  %v2064_v30 = vmul.f32 %v2032_v58, %v2032_v58 }
 0x37b   : > { %v2089_v41 = vadd.f32 %v2058_v40, %v2057_v1  ;;  %v2065_v48 = vmul.f32 %v2033_v43, %v2033_v43  ;;  %v2066_v4 = vmul.f32 %v2034_v6, %v2034_v6  ;;  %v2067_v17 = vmul.f32 %v2035_v5, %v2035_v5 }
 0x37c   : > { %v2068_v29 = vmul.f32 %v2036_v3, %v2036_v3  ;;  %v2069_v63 = vmul.f32 %v2037_v54, %v2037_v54  ;;  %v2070_v47 = vmul.f32 %v2038_v56, %v2038_v56  ;;  %v2071_v28 = vmul.f32 %v2039_v37, %v2039_v37 }
 0x37d   : > { %v2090_v62 = vadd.f32 %v2089_v41, %v2059_v55  ;;  %v2072_v7 = vmul.f32 %v2040_v59, %v2040_v59  ;;  %v2073_v31 = vmul.f32 %v2041_v11, %v2041_v11  ;;  %v2074_v60 = vmul.f32 %v2042_v61, %v2042_v61 }
 0x37e   : > { %v2075_v2 = vmul.f32 %v2043_v9, %v2043_v9  ;;  %v2076_v50 = vmul.f32 %v2044_v13, %v2044_v13  ;;  %v2077_v43 = vmul.f32 %v2045_v52, %v2045_v52  ;;  %v2078_v5 = vmul.f32 %v2046_v57, %v2046_v57 }
 0x37f   : > { %v2091_v8 = vadd.f32 %v2090_v62, %v2060_v26  ;;  %v2079_v54 = vmul.f32 %v2047_v35, %v2047_v35  ;;  %v2080_v37 = vmul.f32 %v2048_v14, %v2048_v14  ;;  %v2081_v61 = vmul.f32 %v2049_v33, %v2049_v33 }
 0x380   : > { %v2082_v9 = vmul.f32 %v2050_v12, %v2050_v12  ;;  %v2083_v52 = vmul.f32 %v2051_v39, %v2051_v39  ;;  %v2084_v57 = vmul.f32 %v4284_v36, %v4284_v36  ;;  %v2085_v14 = vmul.f32 %v4288_v18, %v4288_v18 }
 0x381   : > { %v2092_v42 = vadd.f32 %v2091_v8, %v2061_v0  ;;  %v2086_v12 = vmul.f32 %v4292_v34, %v4292_v34  ;;  %v2087_v39 = vmul.f32 %v4295_v21, %v4295_v21  ;;  %v2088_v0 = vmul.f32 %v4298_v45, %v4298_v45 }
 0x383   : > { %v2093_v10 = vadd.f32 %v2092_v42, %v2062_v22  ;;  %v2131_v42 = vld [vmem:[%s4167_s18] sm:$0x3] }
 0x384   : > { %v2135_v34 = vsub.f32 %v4224_v46, %v2131_v42 }
 0x385   : > { %v2094_v19 = vadd.f32 %v2093_v10, %v2063_v32 }
 0x386   : > { %v2144_v21 = vmul.f32 %v2135_v34, %v2135_v34 }
 0x387   : > { %v2095_v44 = vadd.f32 %v2094_v19, %v2064_v30 }
 0x389   : > { %v2096_v24 = vadd.f32 %v2095_v44, %v2065_v48 }
 0x38b   : > { %v2097_v38 = vadd.f32 %v2096_v24, %v2066_v4  ;;  %v2151_v4 = vmul.f32 0.0, %v2144_v21 }
 0x38d   : > { %v2098_v20 = vadd.f32 %v2097_v38, %v2067_v17  ;;  %v2153_v46 = vrot.slane %v2151_v4, 7 }
 0x38f   : > { %v2099_v27 = vadd.f32 %v2098_v20, %v2068_v29  ;;  %v2142_v20 = vadd.f32 %v2135_v34, %v2131_v42 }
 0x391   : > { %v2100_v51 = vadd.f32 %v2099_v27, %v2069_v63 }
 0x393   : > { %v2101_v16 = vadd.f32 %v2100_v51, %v2070_v47 }
 0x395   : > { %v2102_v25 = vadd.f32 %v2101_v16, %v2071_v28 }
 0x397   : > { %v2103_v49 = vadd.f32 %v2102_v25, %v2072_v7 }
 0x399   : > { %v2104_v23 = vadd.f32 %v2103_v49, %v2073_v31 }
 0x39b   : > { %v2105_v15 = vadd.f32 %v2104_v23, %v2074_v60 }
 0x39d   : > { %v2106_v58 = vadd.f32 %v2105_v15, %v2075_v2 }
 0x39f   : > { %v2107_v6 = vadd.f32 %v2106_v58, %v2076_v50 }
 0x3a1   : > { %v2108_v3 = vadd.f32 %v2107_v6, %v2077_v43 }
 0x3a3   : > { %v2109_v56 = vadd.f32 %v2108_v3, %v2078_v5 }
 0x3a5   : > { %v2110_v59 = vadd.f32 %v2109_v56, %v2079_v54 }
 0x3a7   : > { %v1939_v53 = vpop.trf.xlu1  ;;  %v2111_v1 = vadd.f32 %v2110_v59, %v2080_v37 }
 0x3a8   : > { %1956 = vst [vmem:[%s4192_s22 + $0x8] sm:$0xff] %v1939_v53 }
 0x3a9   : > { %v2112_v13 = vadd.f32 %v2111_v1, %v2081_v61 }
 0x3ab   : > { %v1940_v11 = vpop.trf.xlu1  ;;  %v2113_v55 = vadd.f32 %v2112_v13, %v2082_v9 }
 0x3ac   : > { %1958 = vst [vmem:[%s4192_s22 + $0x18] sm:$0xff] %v1940_v11 }
 0x3ad   : > { %v2114_v35 = vadd.f32 %v2113_v55, %v2083_v52 }
 0x3af   : > { %v1941_v40 = vpop.trf.xlu1  ;;  %v2115_v33 = vadd.f32 %v2114_v35, %v2084_v57 }
 0x3b0   : > { %1960 = vst [vmem:[%s4192_s22 + $0x28] sm:$0xff] %v1941_v40 }
 0x3b1   : > { %v2116_v26 = vadd.f32 %v2115_v33, %v2085_v14 }
 0x3b3   : > { %v1942_v41 = vpop.trf.xlu1  ;;  %v2117_v36 = vadd.f32 %v2116_v26, %v2086_v12 }
 0x3b4   : > { %1962 = vst [vmem:[%s4192_s22 + $0x38] sm:$0xff] %v1942_v41 }
 0x3b5   : > { %v2118_v8 = vadd.f32 %v2117_v36, %v2087_v39 }
 0x3b7   : > { %v1943_v62 = vpop.trf.xlu1  ;;  %v2119_v18 = vadd.f32 %v2118_v8, %v2088_v0 }
 0x3b8   : > { %1964 = vst [vmem:[%s4192_s22 + $0x48] sm:$0xff] %v1943_v62 }
 0x3b9   : > { %v2120_v32 = vrot.slane %v2119_v18, 4 }
 0x3bb   : > { %v1944_v22 = vpop.trf.xlu1  ;;  %v2121_v30 = vadd.f32 %v2120_v32, %v2119_v18 }
 0x3bc   : > { %1966 = vst [vmem:[%s4192_s22 + $0x58] sm:$0xff] %v1944_v22 }
 0x3bd   : > { %v2122_v19 = vrot.slane %v2121_v30, 2 }
 0x3bf   : > { %v1945_v10 = vpop.trf.xlu1  ;;  %v2123_v44 = vadd.f32 %v2122_v19, %v2121_v30 }
 0x3c0   : > { %1968 = vst [vmem:[%s4192_s22 + $0x68] sm:$0xff] %v1945_v10 }
 0x3c1   : > { %v2124_v45 = vrot.slane %v2123_v44, 1 }
 0x3c3   : > { %v1946_v48 = vpop.trf.xlu1  ;;  %v2125_v17 = vadd.f32 %v2124_v45, %v2123_v44 }
 0x3c4   : > { %1970 = vst [vmem:[%s4192_s22 + $0x78] sm:$0xff] %v1946_v48 }
 0x3c5   : > { %v2143_v38 = vadd.f32 %v2131_v42, %v2125_v17 }
 0x3c7   : > { %v1947_v24 = vpop.trf.xlu1  ;;  %v2155_v63 = vadd.f32 %v2153_v46, %v2143_v38 }
 0x3c8   : > { %1972 = vst [vmem:[%s4192_s22 + $0x88] sm:$0xff] %v1947_v24 }
 0x3c9   : > { %v2157_v27 = vsel %vm2156_vm12, %v2142_v20, %v2155_v63 }
 0x3ca   : > { %2158 = vst [vmem:[%s4167_s18] sm:$0x3] %v2157_v27 }
 0x3cb   : > { %v1948_v29 = vpop.trf.xlu1 }
 0x3cc   : > { %1974 = vst [vmem:[%s4192_s22 + $0x98] sm:$0xff] %v1948_v29 }
 0x3cf   : > { %v1949_v47 = vpop.trf.xlu1 }
 0x3d0   : > { %1976 = vst [vmem:[%s4192_s22 + $0xa8] sm:$0xff] %v1949_v47 }
 0x3d3   : > { %v1950_v51 = vpop.trf.xlu1 }
 0x3d4   : > { %1978 = vst [vmem:[%s4192_s22 + $0xb8] sm:$0xff] %v1950_v51 }
 0x3d7   : > { %v1951_v28 = vpop.trf.xlu1 }
 0x3d8   : > { %1980 = vst [vmem:[%s4192_s22 + $0xc8] sm:$0xff] %v1951_v28 }
 0x3db   : > { %v1952_v16 = vpop.trf.xlu1 }
 0x3dc   : > { %1982 = vst [vmem:[%s4192_s22 + $0xd8] sm:$0xff] %v1952_v16 }
 0x3df   : > { %v1953_v7 = vpop.trf.xlu1 }
 0x3e0   : > { %1984 = vst [vmem:[%s4192_s22 + $0xe8] sm:$0xff] %v1953_v7 }
 0x3e3   : > { %v1954_v25 = vpop.trf.xlu1 }
 0x3e4   : > { %1986 = vst [vmem:[%s4192_s22 + $0xf8] sm:$0xff] %v1954_v25 }
 0x3e5 PF: > { %s14_s14 = sadd.s32 1, %s2535_s14   ;;  %s4547_s12 = smov %s2531_s13 }
 0x3e6   : > { %p11_p5 = scmp.ge.s32.totalorder %s14_s14, 4   ;;  %s4548_s13 = smov %s4550_s15 }
 0x3e8   :  { %13 = sbr.rel (!%p11_p5) target bundleno = 2 (0x2), region = 76 }

</bundles_post_ra>
